<compile_context>
chip_gen: v5e
topology: v5e:2x2
jax: 0.10.0
libtpu: 0.0.40
codegen_flags: <defaults>
</compile_context>

<pallas_src>
import functools

import numpy as np

import jax
import jax.numpy as jnp
from jax import lax
from jax.experimental import pallas as pl
from jax.experimental.pallas import tpu as pltpu

# ----------------------------- configuration (small shapes) -----------------------------
CFG = dict(
    B=2,            # batch
    C=4,            # num_classes
    H=16, W=16,     # input spatial size
    patch_size=8,   # patch loop window (step = patch_size // 2)
    pool=4,         # output_pooling_size of ProjectionHead
    K=16,           # queue length (K % B == 0)
    L=32,           # latent_feature_size
    LAT_C=256,      # latent channel width (MLP input_channels=256 as in the module)
    m=0.99, Ts=0.1, Tt=0.01,
)

_VMEM = pl.BlockSpec(memory_space=pltpu.MemorySpace.VMEM)


# --------------------------------- in-kernel helpers ------------------------------------
def _l2n_rows(x):
    """F.normalize(x, dim=1): x / max(||x||_2, 1e-12) via EUP rsqrt."""
    ss = jnp.sum(x * x, axis=1, keepdims=True)
    return x * lax.rsqrt(jnp.maximum(ss, 1e-24))


def _l2n_cols(x):
    """Column-wise L2 normalize (== row-normalize of x.T), sublane reduce."""
    ss = jnp.sum(x * x, axis=0, keepdims=True)
    return x * lax.rsqrt(jnp.maximum(ss, 1e-24))


def _chain_from_pack(x, p_ref, specs):
    """Chain of 1x1 convs on a [C_in, N] (channels-on-sublanes, pixels-on-lanes) slab.

    Packed layout (pack_chain): layer li occupies lanes [128*li, 128*li+cin) with W^T
    ([cout, cin]) and lane 128*li+cin holds the bias column.  Tiny contraction dims (4/8) are
    unrolled VPU broadcast-FMAs instead of contraction-starved MXU matmuls."""
    y = x
    for (cin, cout, base) in specs:
        wT = p_ref[0:cout, base:base + cin]                      # [cout, cin]
        bcol = p_ref[0:cout, base + cin:base + cin + 1]          # [cout, 1]
        acc = bcol + wT[:, 0:1] * y[0:1, :]
        for ci in range(1, cin):
            acc = acc + wT[:, ci:ci + 1] * y[ci:ci + 1, :]
        y = acc
    return y


# ------------------------------------ Pallas kernels ------------------------------------
def _fused_main_kernel(imgs_ref, segwb_ref, pm_ref, sp_ref, tp_ref, lc_ref,
                       qw1_ref, qw2_ref, kw1_ref, kw2_ref, pw1_ref, pw2_ref,
                       bias_ref, queue_ref,
                       seg_ref, ystu_ref, ytea_ref, sm_ref,
                       *, B, C, K, L, stu_specs, tea_specs, b_offs, inv_Ts, inv_Tt):
    # imgs_ref : [2B, HW]   rows 0..B-1 = im_q, rows B..2B-1 = im_k
    # segwb_ref: [C, 6]     cols: w_q, w_k_old, w_k_new, b_q, b_k_old, b_k_new
    imgs = imgs_ref[...]

    # ---- seg function outputs: student (q weights on im_q) + teacher pre-EMA (old k on im_k) ----
    # Cin == 1 => each 1x1 conv is an outer product: pure VPU broadcast-FMA, dense [16,256] store.
    for idx, (img_base, wi, bi) in enumerate(((0, 0, 3), (B, 1, 4))):
        for b in range(B):
            wcol = segwb_ref[:, wi:wi + 1]                                    # [C, 1]
            bcol = segwb_ref[:, bi:bi + 1]
            seg_ref[(idx * B + b) * C:(idx * B + b + 1) * C, :] = (
                imgs[img_base + b:img_base + b + 1, :] * wcol + bcol)

    # ---- patch extraction + AdaptiveAvgPool2d(pool) as ONE MXU matmul on the raw images ----
    # (conv1x1 and avg-pool commute for the linear stand-in backbone, exact up to fp reassoc.)
    pooled = jnp.dot(imgs, pm_ref[...], preferred_element_type=jnp.float32)   # [2B, Npix]

    # ---- per (pass, b): backbone conv on pooled pixels, then head(+predictor) chains (VPU) ----
    for b in range(B):
        x_s = pooled[b:b + 1, :] * segwb_ref[:, 0:1] + segwb_ref[:, 3:4]      # student seg     [C, Npix]
        x_t = pooled[B + b:B + b + 1, :] * segwb_ref[:, 2:3] + segwb_ref[:, 5:6]  # teacher post-EMA
        ystu_ref[b] = _chain_from_pack(x_s, sp_ref, stu_specs)                # head + predictor
        ytea_ref[b] = _chain_from_pack(x_t, tp_ref, tea_specs)                # head only

    # ---- latent path:  GAP(conv1x1(ds4(x))) == mean_hw(x) * w_lat + b_lat  (pure algebra) ----
    means = jnp.mean(imgs, axis=1, keepdims=True)                             # [2B, 1]
    g_q = means[0:B] * lc_ref[0:1, :] + lc_ref[1:2, :]                        # [B, LAT_C]
    g_k = means[B:2 * B] * lc_ref[2:3, :] + lc_ref[3:4, :]

    def bias(i):
        off, n = b_offs[i]
        return bias_ref[0:1, off:off + n]                                     # [1, n]

    # MLP heads + latent predictor (MXU, contraction 256 / 32)
    yq = jnp.dot(g_q, qw1_ref[...], preferred_element_type=jnp.float32) + bias(0)
    yq = jnp.dot(yq, qw2_ref[...], preferred_element_type=jnp.float32) + bias(1)
    zq = jnp.dot(yq, pw1_ref[...], preferred_element_type=jnp.float32) + bias(4)
    zq = jnp.dot(zq, pw2_ref[...], preferred_element_type=jnp.float32) + bias(5)  # lat_q pred
    yk = jnp.dot(g_k, kw1_ref[...], preferred_element_type=jnp.float32) + bias(2)
    yk = jnp.dot(yk, kw2_ref[...], preferred_element_type=jnp.float32) + bias(3)  # lat_k

    # latent logits: normalize `queue` ONCE, two anchor matmuls (NT)
    q_n = _l2n_rows(queue_ref[...])                                           # [K, L]
    nt = (((1,), (1,)), ((), ()))
    ell = lax.dot_general(_l2n_rows(yk), q_n, nt, preferred_element_type=jnp.float32) * inv_Tt
    ll = lax.dot_general(_l2n_rows(zq), q_n, nt, preferred_element_type=jnp.float32) * inv_Ts

    # pack tiny results into one output slab: [ell | ll | lat_k]
    sm_ref[:, 0:K] = ell
    sm_ref[:, K:2 * K] = ll
    sm_ref[:, 2 * K:2 * K + L] = yk


def fused_main(imgs, segwb, pm, sp, tp, lc, qw1, qw2, kw1, kw2, pw1, pw2, bpack, queue,
               stu_specs, tea_specs, b_offs, Ts, Tt, *, B, C, HW, K, L):
    npix = pm.shape[1]
    kernel = functools.partial(
        _fused_main_kernel, B=B, C=C, K=K, L=L,
        stu_specs=stu_specs, tea_specs=tea_specs, b_offs=b_offs,
        inv_Ts=1.0 / float(Ts), inv_Tt=1.0 / float(Tt))
    return pl.pallas_call(
        kernel,
        out_shape=(jax.ShapeDtypeStruct((2 * B * C, HW), jnp.float32),   # seg slab (stu | tea_pre)
                   jax.ShapeDtypeStruct((B, C, npix), jnp.float32),      # student head+pred
                   jax.ShapeDtypeStruct((B, C, npix), jnp.float32),      # teacher head
                   jax.ShapeDtypeStruct((B, 2 * K + L), jnp.float32)),   # [ell | ll | lat_k]
        in_specs=[_VMEM] * 14,
        out_specs=(_VMEM,) * 4,
    )(imgs, segwb, pm, sp, tp, lc, qw1, qw2, kw1, kw2, pw1, pw2, bpack, queue)


def _mask_logits_kernel(tea_ref, stu_ref, qmT_ref, eol_ref, ol_ref, *, inv_Ts, inv_Tt):
    # TODO(synk): at production sizes, grid over (M=B*F, N=K*F) tiles ("parallel","arbitrary"),
    # budget tiles against v7x's 64 MiB VMEM; contraction here is only P so MXU rows idle.
    qm_n = _l2n_cols(qmT_ref[...]).astype(jnp.bfloat16)          # [P, K*F], normalized once
    tea_n = _l2n_rows(tea_ref[...]).astype(jnp.bfloat16)         # [B*F, P]
    stu_n = _l2n_rows(stu_ref[...]).astype(jnp.bfloat16)
    eol_ref[...] = jnp.dot(tea_n, qm_n, preferred_element_type=jnp.float32) * inv_Tt
    ol_ref[...] = jnp.dot(stu_n, qm_n, preferred_element_type=jnp.float32) * inv_Ts


def mask_logits(tea_flat, stu_flat, qm_T, Ts, Tt):
    m = tea_flat.shape[0]
    n = qm_T.shape[1]
    kernel = functools.partial(_mask_logits_kernel, inv_Ts=1.0 / float(Ts), inv_Tt=1.0 / float(Tt))
    return pl.pallas_call(
        kernel,
        out_shape=(jax.ShapeDtypeStruct((m, n), jnp.float32),
                   jax.ShapeDtypeStruct((m, n), jnp.float32)),
        in_specs=[_VMEM] * 3,
        out_specs=(_VMEM, _VMEM),
    )(tea_flat, stu_flat, qm_T)


# --------------------------------------- glue ------------------------------------------
def ema_update(k_params, q_params, m):
    return jax.tree_util.tree_map(lambda kk, qq: kk * m + qq * (1.0 - m), k_params, q_params)


def _pool_matrix(H, W, ps, step, pool):
    """Pooling matrix [H*W, P*pool*pool]: patch extraction + AdaptiveAvgPool2d(pool) as a matmul.

    Shared across batch and pass (no kron(eye(B), .) block-diagonal expansion)."""
    r = ps // pool
    iis = list(range(0, H - ps + 1, step))
    jjs = list(range(0, W - ps + 1, step))
    P = len(iis) * len(jjs)
    M = np.zeros((H * W, P * pool * pool), np.float32)
    p = 0
    for i0 in iis:
        for j0 in jjs:
            for u in range(pool):
                for v in range(pool):
                    col = p * pool * pool + u * pool + v
                    for du in range(r):
                        for dv in range(r):
                            h = i0 + u * r + du
                            w = j0 + v * r + dv
                            M[h * W + w, col] = 1.0 / (r * r)
            p += 1
    return M


def pack_chain(layers):
    """Pack a chain of (W [cin, cout], b [cout]) into one [8, 128*n_layers] buffer."""
    n = len(layers)
    buf = jnp.zeros((8, 128 * n), jnp.float32)
    specs = []
    for li, (w, b) in enumerate(layers):
        cin, cout = int(w.shape[0]), int(w.shape[1])
        base = 128 * li
        buf = buf.at[0:cout, base:base + cin].set(w.T)
        buf = buf.at[0:cout, base + cin].set(b)
        specs.append((cin, cout, base))
    return buf, tuple(specs)


def pack_biases(biases):
    """Pack 1-D biases into one [1, W] row; each segment starts at a 128-aligned lane offset."""
    offs = []
    off = 0
    for b in biases:
        n = int(b.shape[0])
        offs.append((off, n))
        off += ((n + 127) // 128) * 128
    buf = jnp.zeros((1, off), jnp.float32)
    for (o, n), b in zip(offs, biases):
        buf = buf.at[0, o:o + n].set(b)
    return buf, tuple(offs)


def init_params(key):
    ks = iter(jax.random.split(key, 40))

    def W(shape, scale=0.1):
        return scale * jax.random.normal(next(ks), shape, jnp.float32)

    C, L, LC = CFG["C"], CFG["L"], CFG["LAT_C"]
    q_bb = dict(w_out=W((1, C)), b_out=W((C,)), w_lat=W((1, LC)), b_lat=W((LC,)))
    k_bb = jax.tree_util.tree_map(lambda a: a, q_bb)    # param_k.copy_(param_q)
    q_out_head = dict(w1=W((C, 2 * C)), b1=W((2 * C,)), w2=W((2 * C, C)), b2=W((C,)))
    k_out_head = dict(w1=W((C, 2 * C)), b1=W((2 * C,)), w2=W((2 * C, C)), b2=W((C,)))
    out_pred = dict(w1=W((C, C)), b1=W((C,)), w2=W((C, C)), b2=W((C,)))
    q_lat_head = dict(w1=W((LC, LC)), b1=W((LC,)), w2=W((LC, L)), b2=W((L,)))
    k_lat_head = dict(w1=W((LC, LC)), b1=W((LC,)), w2=W((LC, L)), b2=W((L,)))
    lat_pred = dict(w1=W((L, L)), b1=W((L,)), w2=W((L, L)), b2=W((L,)))
    return dict(q_bb=q_bb, k_bb=k_bb, q_out_head=q_out_head, k_out_head=k_out_head,
                out_pred=out_pred, q_lat_head=q_lat_head, k_lat_head=k_lat_head,
                lat_pred=lat_pred)


# ------------------------------------ ISD forward ---------------------------------------
def isd_forward(params, queue, queue_mask, queue_ptr, mask_queue_ptr, im_q, im_k, perm,
                Ts=None, Tt=None):
    Ts = CFG["Ts"] if Ts is None else Ts
    Tt = CFG["Tt"] if Tt is None else Tt
    m = CFG["m"]
    B, _, H, W = im_q.shape
    HW = H * W
    C = CFG["C"]
    pool = CFG["pool"]
    ps = CFG["patch_size"]
    step = ps // 2
    K = queue.shape[0]
    L = queue.shape[1]

    # momentum update of key encoder / key heads.
    # NOTE: reference computes ema_output_tmp with the PRE-update key encoder, then updates.
    k_bb_new = ema_update(params["k_bb"], params["q_bb"], m)
    k_out_head_new = ema_update(params["k_out_head"], params["q_out_head"], m)
    k_lat_head_new = ema_update(params["k_lat_head"], params["q_lat_head"], m)

    # TODO(synk): ShuffleBN shuffle/unshuffle is an exact no-op for the per-sample linear
    # stand-in backbone (no BatchNorm), so im_k is consumed directly; `perm` kept for interface.
    _ = perm

    # ---- pack kernel operands (tiny, one DMA each) ----
    imgs = jnp.concatenate([im_q.reshape(B, HW), im_k.reshape(B, HW)], axis=0)          # [2B, HW]
    segwb = jnp.stack([params["q_bb"]["w_out"][0], params["k_bb"]["w_out"][0],
                       k_bb_new["w_out"][0], params["q_bb"]["b_out"],
                       params["k_bb"]["b_out"], k_bb_new["b_out"]], axis=1)             # [C, 6]
    lc = jnp.stack([params["q_bb"]["w_lat"][0], params["q_bb"]["b_lat"],
                    k_bb_new["w_lat"][0], k_bb_new["b_lat"]], axis=0)                   # [4, LAT_C]

    pool_mat = _pool_matrix(H, W, ps, step, pool)            # np constant [HW, P*pool*pool]
    P = pool_mat.shape[1] // (pool * pool)
    pm = jnp.asarray(pool_mat)

    stu_layers = [(params["q_out_head"]["w1"], params["q_out_head"]["b1"]),
                  (params["q_out_head"]["w2"], params["q_out_head"]["b2"]),
                  (params["out_pred"]["w1"], params["out_pred"]["b1"]),
                  (params["out_pred"]["w2"], params["out_pred"]["b2"])]
    tea_layers = [(k_out_head_new["w1"], k_out_head_new["b1"]),
                  (k_out_head_new["w2"], k_out_head_new["b2"])]
    sp, s_specs = pack_chain(stu_layers)
    tp, t_specs = pack_chain(tea_layers)

    bpack, b_offs = pack_biases([params["q_lat_head"]["b1"], params["q_lat_head"]["b2"],
                                 k_lat_head_new["b1"], k_lat_head_new["b2"],
                                 params["lat_pred"]["b1"], params["lat_pred"]["b2"]])

    # ---- Kernel 1: backbone + pooling + head chains + latent path + latent logits ----
    seg_slab, y_stu, y_tea, small = fused_main(
        imgs, segwb, pm, sp, tp, lc,
        params["q_lat_head"]["w1"], params["q_lat_head"]["w2"],
        k_lat_head_new["w1"], k_lat_head_new["w2"],
        params["lat_pred"]["w1"], params["lat_pred"]["w2"],
        bpack, queue, s_specs, t_specs, b_offs, Ts, Tt,
        B=B, C=C, HW=HW, K=K, L=L)

    outputs_tmp = seg_slab[0:B * C].reshape(B, C, H, W)            # student seg
    ema_output_tmp = seg_slab[B * C:2 * B * C].reshape(B, C, H, W) # teacher seg (pre-EMA weights)

    ema_latent_logits = small[:, 0:K]
    latent_logits = small[:, K:2 * K]
    desired_compressed_lat_k = small[:, 2 * K:2 * K + L]

    # ---- reference-mandated (p, b, c, u, v) raw-reshape views (tiny XLA layout glue) ----
    F_dim = C * pool * pool
    stu_p = jnp.transpose(y_stu.reshape(B, C, P, pool, pool), (2, 0, 1, 3, 4))  # [P,B,C,pool,pool]
    tea_p = jnp.transpose(y_tea.reshape(B, C, P, pool, pool), (2, 0, 1, 3, 4))
    tea_tmp = tea_p.reshape(B, P, F_dim)       # == cat().reshape(B,P,C,p,p).reshape(B,P,-1)
    stu_flat = stu_p.reshape(B * F_dim, P)     # == reshape(P,B,-1).reshape(-1,P)
    tea_flat = tea_p.reshape(B * F_dim, P)

    # queue_mask.transpose(0,1).contiguous().reshape(-1, P), then pre-transposed (lane-dense K*F)
    qm_T = jnp.transpose(queue_mask, (1, 0, 2)).reshape(K * F_dim, P).T         # [P, K*F]

    # ---- Kernel 2: both mask-logits matmuls ----
    ema_output_logits, output_logits = mask_logits(tea_flat, stu_flat, qm_T, Ts, Tt)

    # ---- dequeue / enqueue with ring pointers (functional buffer update) ----
    new_queue = lax.dynamic_update_slice_in_dim(queue, desired_compressed_lat_k, queue_ptr, axis=0)
    new_queue_ptr = (queue_ptr + B) % K
    new_queue_mask = lax.dynamic_update_slice_in_dim(queue_mask, tea_tmp, mask_queue_ptr, axis=0)
    new_mask_queue_ptr = (mask_queue_ptr + B) % K

    return (outputs_tmp, ema_output_tmp, ema_latent_logits, latent_logits,
            ema_output_logits, output_logits), (new_queue, new_queue_mask,
                                                new_queue_ptr, new_mask_queue_ptr)


# ------------------------------------------ main ----------------------------------------
if __name__ == "__main__":
    key = jax.random.PRNGKey(0)
    k_par, k_q, k_k, k_queue, k_qmask, k_perm = jax.random.split(key, 6)

    params = init_params(k_par)
    B, H, W = CFG["B"], CFG["H"], CFG["W"]
    im_q = jax.random.normal(k_q, (B, 1, H, W), jnp.float32)
    im_k = jax.random.normal(k_k, (B, 1, H, W), jnp.float32)

    P = ((H - CFG["patch_size"]) // (CFG["patch_size"] // 2) + 1) ** 2     # 9 patches
    F_dim = CFG["C"] * CFG["pool"] ** 2

    # register_buffer('queue', randn(K, L)); normalize(dim=0)
    queue = jax.random.normal(k_queue, (CFG["K"], CFG["L"]), jnp.float32)
    queue = queue / jnp.maximum(jnp.linalg.norm(queue, axis=0, keepdims=True), 1e-12)
    # register_buffer('queue_mask', randn(K, P, C*pool^2)); normalize(dim=0)
    queue_mask = jax.random.normal(k_qmask, (CFG["K"], P, F_dim), jnp.float32)
    queue_mask = queue_mask / jnp.maximum(
        jnp.linalg.norm(queue_mask, axis=0, keepdims=True), 1e-12)

    perm = jax.random.permutation(k_perm, B)            # torch.randperm stand-in (deterministic)
    queue_ptr = jnp.zeros((), jnp.int32)
    mask_queue_ptr = jnp.zeros((), jnp.int32)

    fwd = jax.jit(isd_forward)
    outs, new_state = fwd(params, queue, queue_mask, queue_ptr, mask_queue_ptr, im_q, im_k, perm)
    outs = jax.block_until_ready(outs)
    new_state = jax.block_until_ready(new_state)

    (outputs_tmp, ema_output_tmp, ema_latent_logits, latent_logits,
     ema_output_logits, output_logits) = outs
    new_queue, new_queue_mask, new_qptr, new_mptr = new_state

    assert outputs_tmp.shape == (B, CFG["C"], H, W)
    assert ema_output_tmp.shape == (B, CFG["C"], H, W)
    assert ema_latent_logits.shape == (B, CFG["K"])
    assert latent_logits.shape == (B, CFG["K"])
    assert ema_output_logits.shape == (B * F_dim, CFG["K"] * F_dim)
    assert output_logits.shape == (B * F_dim, CFG["K"] * F_dim)
    assert new_queue.shape == (CFG["K"], CFG["L"])
    assert new_queue_mask.shape == (CFG["K"], P, F_dim)
    assert int(new_qptr) == B % CFG["K"] and int(new_mptr) == B % CFG["K"]
    assert bool(jnp.isfinite(output_logits).all())
    assert bool(jnp.isfinite(ema_output_logits).all())
    assert bool(jnp.isfinite(ema_latent_logits).all())
    assert bool(jnp.isfinite(latent_logits).all())

    print("KERNEL_OK")
</pallas_src>

<mosaic_0001>
module attributes {stable_mosaic.version = 11 : i64} {
  func.func @_fused_main_kernel(%arg0: memref<4x256xf32, #tpu.memory_space<vmem>>, %arg1: memref<4x6xf32, #tpu.memory_space<vmem>>, %arg2: memref<256x144xf32, #tpu.memory_space<vmem>>, %arg3: memref<8x512xf32, #tpu.memory_space<vmem>>, %arg4: memref<8x256xf32, #tpu.memory_space<vmem>>, %arg5: memref<4x256xf32, #tpu.memory_space<vmem>>, %arg6: memref<256x256xf32, #tpu.memory_space<vmem>>, %arg7: memref<256x32xf32, #tpu.memory_space<vmem>>, %arg8: memref<256x256xf32, #tpu.memory_space<vmem>>, %arg9: memref<256x32xf32, #tpu.memory_space<vmem>>, %arg10: memref<32x32xf32, #tpu.memory_space<vmem>>, %arg11: memref<32x32xf32, #tpu.memory_space<vmem>>, %arg12: memref<1x1024xf32, #tpu.memory_space<vmem>>, %arg13: memref<16x32xf32, #tpu.memory_space<vmem>>, %arg14: memref<16x256xf32, #tpu.memory_space<vmem>>, %arg15: memref<2x4x144xf32, #tpu.memory_space<vmem>>, %arg16: memref<2x4x144xf32, #tpu.memory_space<vmem>>, %arg17: memref<2x64xf32, #tpu.memory_space<vmem>>) attributes {dimension_semantics = [], scalar_prefetch = 0 : i64, scratch_operands = 0 : i64, tpu.core_type = #tpu.core_type<tc>} {
    %c0 = arith.constant 0 : index
    %c0_0 = arith.constant 0 : index
    %0 = vector.load %arg0[%c0, %c0_0] : memref<4x256xf32, #tpu.memory_space<vmem>>, vector<4x256xf32>
    %c0_1 = arith.constant 0 : index
    %c0_2 = arith.constant 0 : index
    %1 = vector.load %arg1[%c0_1, %c0_2] : memref<4x6xf32, #tpu.memory_space<vmem>>, vector<4x1xf32>
    %c0_3 = arith.constant 0 : index
    %c3 = arith.constant 3 : index
    %2 = vector.load %arg1[%c0_3, %c3] : memref<4x6xf32, #tpu.memory_space<vmem>>, vector<4x1xf32>
    %3 = vector.extract_strided_slice %0 {offsets = [0, 0], sizes = [1, 256], strides = [1, 1]} : vector<4x256xf32> to vector<1x256xf32>
    %4 = vector.broadcast %3 : vector<1x256xf32> to vector<4x256xf32>
    %5 = vector.broadcast %1 : vector<4x1xf32> to vector<4x256xf32>
    %6 = arith.mulf %4, %5 : vector<4x256xf32>
    %7 = vector.broadcast %2 : vector<4x1xf32> to vector<4x256xf32>
    %8 = arith.addf %6, %7 : vector<4x256xf32>
    %c0_4 = arith.constant 0 : index
    %c0_5 = arith.constant 0 : index
    %9 = vector.load %arg14[%c0_4, %c0_5] : memref<16x256xf32, #tpu.memory_space<vmem>>, vector<4x256xf32>
    tpu.vector_store %arg14[%c0_4, %c0_5], %8 {strides = array<i32>} : memref<16x256xf32, #tpu.memory_space<vmem>>, vector<4x256xf32>,
    %c0_6 = arith.constant 0 : index
    %c0_7 = arith.constant 0 : index
    %10 = vector.load %arg1[%c0_6, %c0_7] : memref<4x6xf32, #tpu.memory_space<vmem>>, vector<4x1xf32>
    %c0_8 = arith.constant 0 : index
    %c3_9 = arith.constant 3 : index
    %11 = vector.load %arg1[%c0_8, %c3_9] : memref<4x6xf32, #tpu.memory_space<vmem>>, vector<4x1xf32>
    %12 = vector.extract_strided_slice %0 {offsets = [1, 0], sizes = [1, 256], strides = [1, 1]} : vector<4x256xf32> to vector<1x256xf32>
    %13 = vector.broadcast %12 : vector<1x256xf32> to vector<4x256xf32>
    %14 = vector.broadcast %10 : vector<4x1xf32> to vector<4x256xf32>
    %15 = arith.mulf %13, %14 : vector<4x256xf32>
    %16 = vector.broadcast %11 : vector<4x1xf32> to vector<4x256xf32>
    %17 = arith.addf %15, %16 : vector<4x256xf32>
    %c4 = arith.constant 4 : index
    %c0_10 = arith.constant 0 : index
    %18 = vector.load %arg14[%c4, %c0_10] : memref<16x256xf32, #tpu.memory_space<vmem>>, vector<4x256xf32>
    tpu.vector_store %arg14[%c4, %c0_10], %17 {strides = array<i32>} : memref<16x256xf32, #tpu.memory_space<vmem>>, vector<4x256xf32>,
    %c0_11 = arith.constant 0 : index
    %c1 = arith.constant 1 : index
    %19 = vector.load %arg1[%c0_11, %c1] : memref<4x6xf32, #tpu.memory_space<vmem>>, vector<4x1xf32>
    %c0_12 = arith.constant 0 : index
    %c4_13 = arith.constant 4 : index
    %20 = vector.load %arg1[%c0_12, %c4_13] : memref<4x6xf32, #tpu.memory_space<vmem>>, vector<4x1xf32>
    %21 = vector.extract_strided_slice %0 {offsets = [2, 0], sizes = [1, 256], strides = [1, 1]} : vector<4x256xf32> to vector<1x256xf32>
    %22 = vector.broadcast %21 : vector<1x256xf32> to vector<4x256xf32>
    %23 = vector.broadcast %19 : vector<4x1xf32> to vector<4x256xf32>
    %24 = arith.mulf %22, %23 : vector<4x256xf32>
    %25 = vector.broadcast %20 : vector<4x1xf32> to vector<4x256xf32>
    %26 = arith.addf %24, %25 : vector<4x256xf32>
    %c8 = arith.constant 8 : index
    %c0_14 = arith.constant 0 : index
    %27 = vector.load %arg14[%c8, %c0_14] : memref<16x256xf32, #tpu.memory_space<vmem>>, vector<4x256xf32>
    tpu.vector_store %arg14[%c8, %c0_14], %26 {strides = array<i32>} : memref<16x256xf32, #tpu.memory_space<vmem>>, vector<4x256xf32>,
    %c0_15 = arith.constant 0 : index
    %c1_16 = arith.constant 1 : index
    %28 = vector.load %arg1[%c0_15, %c1_16] : memref<4x6xf32, #tpu.memory_space<vmem>>, vector<4x1xf32>
    %c0_17 = arith.constant 0 : index
    %c4_18 = arith.constant 4 : index
    %29 = vector.load %arg1[%c0_17, %c4_18] : memref<4x6xf32, #tpu.memory_space<vmem>>, vector<4x1xf32>
    %30 = vector.extract_strided_slice %0 {offsets = [3, 0], sizes = [1, 256], strides = [1, 1]} : vector<4x256xf32> to vector<1x256xf32>
    %31 = vector.broadcast %30 : vector<1x256xf32> to vector<4x256xf32>
    %32 = vector.broadcast %28 : vector<4x1xf32> to vector<4x256xf32>
    %33 = arith.mulf %31, %32 : vector<4x256xf32>
    %34 = vector.broadcast %29 : vector<4x1xf32> to vector<4x256xf32>
    %35 = arith.addf %33, %34 : vector<4x256xf32>
    %c12 = arith.constant 12 : index
    %c0_19 = arith.constant 0 : index
    %36 = vector.load %arg14[%c12, %c0_19] : memref<16x256xf32, #tpu.memory_space<vmem>>, vector<4x256xf32>
    tpu.vector_store %arg14[%c12, %c0_19], %35 {strides = array<i32>} : memref<16x256xf32, #tpu.memory_space<vmem>>, vector<4x256xf32>,
    %c0_20 = arith.constant 0 : index
    %c0_21 = arith.constant 0 : index
    %37 = vector.load %arg2[%c0_20, %c0_21] : memref<256x144xf32, #tpu.memory_space<vmem>>, vector<256x144xf32>
    %cst = arith.constant dense<0.000000e+00> : vector<4x144xf32>
    %38 = tpu.matmul %0, %37, %cst {dimension_numbers = #tpu.dot_dimension_numbers<[1], [0], [0], [1], [0, 0, 1, 1], [], []>} : vector<4x256xf32>, vector<256x144xf32>, vector<4x144xf32> -> vector<4x144xf32>
    %39 = vector.extract_strided_slice %38 {offsets = [0, 0], sizes = [1, 144], strides = [1, 1]} : vector<4x144xf32> to vector<1x144xf32>
    %c0_22 = arith.constant 0 : index
    %c0_23 = arith.constant 0 : index
    %40 = vector.load %arg1[%c0_22, %c0_23] : memref<4x6xf32, #tpu.memory_space<vmem>>, vector<4x1xf32>
    %41 = vector.broadcast %39 : vector<1x144xf32> to vector<4x144xf32>
    %42 = vector.broadcast %40 : vector<4x1xf32> to vector<4x144xf32>
    %43 = arith.mulf %41, %42 : vector<4x144xf32>
    %c0_24 = arith.constant 0 : index
    %c3_25 = arith.constant 3 : index
    %44 = vector.load %arg1[%c0_24, %c3_25] : memref<4x6xf32, #tpu.memory_space<vmem>>, vector<4x1xf32>
    %45 = vector.broadcast %44 : vector<4x1xf32> to vector<4x144xf32>
    %46 = arith.addf %43, %45 : vector<4x144xf32>
    %47 = vector.extract_strided_slice %38 {offsets = [2, 0], sizes = [1, 144], strides = [1, 1]} : vector<4x144xf32> to vector<1x144xf32>
    %c0_26 = arith.constant 0 : index
    %c2 = arith.constant 2 : index
    %48 = vector.load %arg1[%c0_26, %c2] : memref<4x6xf32, #tpu.memory_space<vmem>>, vector<4x1xf32>
    %49 = vector.broadcast %47 : vector<1x144xf32> to vector<4x144xf32>
    %50 = vector.broadcast %48 : vector<4x1xf32> to vector<4x144xf32>
    %51 = arith.mulf %49, %50 : vector<4x144xf32>
    %c0_27 = arith.constant 0 : index
    %c5 = arith.constant 5 : index
    %52 = vector.load %arg1[%c0_27, %c5] : memref<4x6xf32, #tpu.memory_space<vmem>>, vector<4x1xf32>
    %53 = vector.broadcast %52 : vector<4x1xf32> to vector<4x144xf32>
    %54 = arith.addf %51, %53 : vector<4x144xf32>
    %c0_28 = arith.constant 0 : index
    %c0_29 = arith.constant 0 : index
    %55 = vector.load %arg3[%c0_28, %c0_29] : memref<8x512xf32, #tpu.memory_space<vmem>>, vector<8x4xf32>
    %c0_30 = arith.constant 0 : index
    %c4_31 = arith.constant 4 : index
    %56 = vector.load %arg3[%c0_30, %c4_31] : memref<8x512xf32, #tpu.memory_space<vmem>>, vector<8x1xf32>
    %57 = vector.extract_strided_slice %55 {offsets = [0, 0], sizes = [8, 1], strides = [1, 1]} : vector<8x4xf32> to vector<8x1xf32>
    %58 = vector.extract_strided_slice %46 {offsets = [0, 0], sizes = [1, 144], strides = [1, 1]} : vector<4x144xf32> to vector<1x144xf32>
    %59 = vector.broadcast %57 : vector<8x1xf32> to vector<8x144xf32>
    %60 = vector.broadcast %58 : vector<1x144xf32> to vector<8x144xf32>
    %61 = arith.mulf %59, %60 : vector<8x144xf32>
    %62 = vector.broadcast %56 : vector<8x1xf32> to vector<8x144xf32>
    %63 = arith.addf %62, %61 : vector<8x144xf32>
    %64 = vector.extract_strided_slice %55 {offsets = [0, 1], sizes = [8, 1], strides = [1, 1]} : vector<8x4xf32> to vector<8x1xf32>
    %65 = vector.extract_strided_slice %46 {offsets = [1, 0], sizes = [1, 144], strides = [1, 1]} : vector<4x144xf32> to vector<1x144xf32>
    %66 = vector.broadcast %64 : vector<8x1xf32> to vector<8x144xf32>
    %67 = vector.broadcast %65 : vector<1x144xf32> to vector<8x144xf32>
    %68 = arith.mulf %66, %67 : vector<8x144xf32>
    %69 = arith.addf %63, %68 : vector<8x144xf32>
    %70 = vector.extract_strided_slice %55 {offsets = [0, 2], sizes = [8, 1], strides = [1, 1]} : vector<8x4xf32> to vector<8x1xf32>
    %71 = vector.extract_strided_slice %46 {offsets = [2, 0], sizes = [1, 144], strides = [1, 1]} : vector<4x144xf32> to vector<1x144xf32>
    %72 = vector.broadcast %70 : vector<8x1xf32> to vector<8x144xf32>
    %73 = vector.broadcast %71 : vector<1x144xf32> to vector<8x144xf32>
    %74 = arith.mulf %72, %73 : vector<8x144xf32>
    %75 = arith.addf %69, %74 : vector<8x144xf32>
    %76 = vector.extract_strided_slice %55 {offsets = [0, 3], sizes = [8, 1], strides = [1, 1]} : vector<8x4xf32> to vector<8x1xf32>
    %77 = vector.extract_strided_slice %46 {offsets = [3, 0], sizes = [1, 144], strides = [1, 1]} : vector<4x144xf32> to vector<1x144xf32>
    %78 = vector.broadcast %76 : vector<8x1xf32> to vector<8x144xf32>
    %79 = vector.broadcast %77 : vector<1x144xf32> to vector<8x144xf32>
    %80 = arith.mulf %78, %79 : vector<8x144xf32>
    %81 = arith.addf %75, %80 : vector<8x144xf32>
    %c0_32 = arith.constant 0 : index
    %c128 = arith.constant 128 : index
    %82 = vector.load %arg3[%c0_32, %c128] : memref<8x512xf32, #tpu.memory_space<vmem>>, vector<4x8xf32>
    %c0_33 = arith.constant 0 : index
    %c136 = arith.constant 136 : index
    %83 = vector.load %arg3[%c0_33, %c136] : memref<8x512xf32, #tpu.memory_space<vmem>>, vector<4x1xf32>
    %84 = vector.extract_strided_slice %82 {offsets = [0, 0], sizes = [4, 1], strides = [1, 1]} : vector<4x8xf32> to vector<4x1xf32>
    %85 = vector.extract_strided_slice %81 {offsets = [0, 0], sizes = [1, 144], strides = [1, 1]} : vector<8x144xf32> to vector<1x144xf32>
    %86 = vector.broadcast %84 : vector<4x1xf32> to vector<4x144xf32>
    %87 = vector.broadcast %85 : vector<1x144xf32> to vector<4x144xf32>
    %88 = arith.mulf %86, %87 : vector<4x144xf32>
    %89 = vector.broadcast %83 : vector<4x1xf32> to vector<4x144xf32>
    %90 = arith.addf %89, %88 : vector<4x144xf32>
    %91 = vector.extract_strided_slice %82 {offsets = [0, 1], sizes = [4, 1], strides = [1, 1]} : vector<4x8xf32> to vector<4x1xf32>
    %92 = vector.extract_strided_slice %81 {offsets = [1, 0], sizes = [1, 144], strides = [1, 1]} : vector<8x144xf32> to vector<1x144xf32>
    %93 = vector.broadcast %91 : vector<4x1xf32> to vector<4x144xf32>
    %94 = vector.broadcast %92 : vector<1x144xf32> to vector<4x144xf32>
    %95 = arith.mulf %93, %94 : vector<4x144xf32>
    %96 = arith.addf %90, %95 : vector<4x144xf32>
    %97 = vector.extract_strided_slice %82 {offsets = [0, 2], sizes = [4, 1], strides = [1, 1]} : vector<4x8xf32> to vector<4x1xf32>
    %98 = vector.extract_strided_slice %81 {offsets = [2, 0], sizes = [1, 144], strides = [1, 1]} : vector<8x144xf32> to vector<1x144xf32>
    %99 = vector.broadcast %97 : vector<4x1xf32> to vector<4x144xf32>
    %100 = vector.broadcast %98 : vector<1x144xf32> to vector<4x144xf32>
    %101 = arith.mulf %99, %100 : vector<4x144xf32>
    %102 = arith.addf %96, %101 : vector<4x144xf32>
    %103 = vector.extract_strided_slice %82 {offsets = [0, 3], sizes = [4, 1], strides = [1, 1]} : vector<4x8xf32> to vector<4x1xf32>
    %104 = vector.extract_strided_slice %81 {offsets = [3, 0], sizes = [1, 144], strides = [1, 1]} : vector<8x144xf32> to vector<1x144xf32>
    %105 = vector.broadcast %103 : vector<4x1xf32> to vector<4x144xf32>
    %106 = vector.broadcast %104 : vector<1x144xf32> to vector<4x144xf32>
    %107 = arith.mulf %105, %106 : vector<4x144xf32>
    %108 = arith.addf %102, %107 : vector<4x144xf32>
    %109 = vector.extract_strided_slice %82 {offsets = [0, 4], sizes = [4, 1], strides = [1, 1]} : vector<4x8xf32> to vector<4x1xf32>
    %110 = vector.extract_strided_slice %81 {offsets = [4, 0], sizes = [1, 144], strides = [1, 1]} : vector<8x144xf32> to vector<1x144xf32>
    %111 = vector.broadcast %109 : vector<4x1xf32> to vector<4x144xf32>
    %112 = vector.broadcast %110 : vector<1x144xf32> to vector<4x144xf32>
    %113 = arith.mulf %111, %112 : vector<4x144xf32>
    %114 = arith.addf %108, %113 : vector<4x144xf32>
    %115 = vector.extract_strided_slice %82 {offsets = [0, 5], sizes = [4, 1], strides = [1, 1]} : vector<4x8xf32> to vector<4x1xf32>
    %116 = vector.extract_strided_slice %81 {offsets = [5, 0], sizes = [1, 144], strides = [1, 1]} : vector<8x144xf32> to vector<1x144xf32>
    %117 = vector.broadcast %115 : vector<4x1xf32> to vector<4x144xf32>
    %118 = vector.broadcast %116 : vector<1x144xf32> to vector<4x144xf32>
    %119 = arith.mulf %117, %118 : vector<4x144xf32>
    %120 = arith.addf %114, %119 : vector<4x144xf32>
    %121 = vector.extract_strided_slice %82 {offsets = [0, 6], sizes = [4, 1], strides = [1, 1]} : vector<4x8xf32> to vector<4x1xf32>
    %122 = vector.extract_strided_slice %81 {offsets = [6, 0], sizes = [1, 144], strides = [1, 1]} : vector<8x144xf32> to vector<1x144xf32>
    %123 = vector.broadcast %121 : vector<4x1xf32> to vector<4x144xf32>
    %124 = vector.broadcast %122 : vector<1x144xf32> to vector<4x144xf32>
    %125 = arith.mulf %123, %124 : vector<4x144xf32>
    %126 = arith.addf %120, %125 : vector<4x144xf32>
    %127 = vector.extract_strided_slice %82 {offsets = [0, 7], sizes = [4, 1], strides = [1, 1]} : vector<4x8xf32> to vector<4x1xf32>
    %128 = vector.extract_strided_slice %81 {offsets = [7, 0], sizes = [1, 144], strides = [1, 1]} : vector<8x144xf32> to vector<1x144xf32>
    %129 = vector.broadcast %127 : vector<4x1xf32> to vector<4x144xf32>
    %130 = vector.broadcast %128 : vector<1x144xf32> to vector<4x144xf32>
    %131 = arith.mulf %129, %130 : vector<4x144xf32>
    %132 = arith.addf %126, %131 : vector<4x144xf32>
    %c0_34 = arith.constant 0 : index
    %c256 = arith.constant 256 : index
    %133 = vector.load %arg3[%c0_34, %c256] : memref<8x512xf32, #tpu.memory_space<vmem>>, vector<4x4xf32>
    %c0_35 = arith.constant 0 : index
    %c260 = arith.constant 260 : index
    %134 = vector.load %arg3[%c0_35, %c260] : memref<8x512xf32, #tpu.memory_space<vmem>>, vector<4x1xf32>
    %135 = vector.extract_strided_slice %133 {offsets = [0, 0], sizes = [4, 1], strides = [1, 1]} : vector<4x4xf32> to vector<4x1xf32>
    %136 = vector.extract_strided_slice %132 {offsets = [0, 0], sizes = [1, 144], strides = [1, 1]} : vector<4x144xf32> to vector<1x144xf32>
    %137 = vector.broadcast %135 : vector<4x1xf32> to vector<4x144xf32>
    %138 = vector.broadcast %136 : vector<1x144xf32> to vector<4x144xf32>
    %139 = arith.mulf %137, %138 : vector<4x144xf32>
    %140 = vector.broadcast %134 : vector<4x1xf32> to vector<4x144xf32>
    %141 = arith.addf %140, %139 : vector<4x144xf32>
    %142 = vector.extract_strided_slice %133 {offsets = [0, 1], sizes = [4, 1], strides = [1, 1]} : vector<4x4xf32> to vector<4x1xf32>
    %143 = vector.extract_strided_slice %132 {offsets = [1, 0], sizes = [1, 144], strides = [1, 1]} : vector<4x144xf32> to vector<1x144xf32>
    %144 = vector.broadcast %142 : vector<4x1xf32> to vector<4x144xf32>
    %145 = vector.broadcast %143 : vector<1x144xf32> to vector<4x144xf32>
    %146 = arith.mulf %144, %145 : vector<4x144xf32>
    %147 = arith.addf %141, %146 : vector<4x144xf32>
    %148 = vector.extract_strided_slice %133 {offsets = [0, 2], sizes = [4, 1], strides = [1, 1]} : vector<4x4xf32> to vector<4x1xf32>
    %149 = vector.extract_strided_slice %132 {offsets = [2, 0], sizes = [1, 144], strides = [1, 1]} : vector<4x144xf32> to vector<1x144xf32>
    %150 = vector.broadcast %148 : vector<4x1xf32> to vector<4x144xf32>
    %151 = vector.broadcast %149 : vector<1x144xf32> to vector<4x144xf32>
    %152 = arith.mulf %150, %151 : vector<4x144xf32>
    %153 = arith.addf %147, %152 : vector<4x144xf32>
    %154 = vector.extract_strided_slice %133 {offsets = [0, 3], sizes = [4, 1], strides = [1, 1]} : vector<4x4xf32> to vector<4x1xf32>
    %155 = vector.extract_strided_slice %132 {offsets = [3, 0], sizes = [1, 144], strides = [1, 1]} : vector<4x144xf32> to vector<1x144xf32>
    %156 = vector.broadcast %154 : vector<4x1xf32> to vector<4x144xf32>
    %157 = vector.broadcast %155 : vector<1x144xf32> to vector<4x144xf32>
    %158 = arith.mulf %156, %157 : vector<4x144xf32>
    %159 = arith.addf %153, %158 : vector<4x144xf32>
    %c0_36 = arith.constant 0 : index
    %c384 = arith.constant 384 : index
    %160 = vector.load %arg3[%c0_36, %c384] : memref<8x512xf32, #tpu.memory_space<vmem>>, vector<4x4xf32>
    %c0_37 = arith.constant 0 : index
    %c388 = arith.constant 388 : index
    %161 = vector.load %arg3[%c0_37, %c388] : memref<8x512xf32, #tpu.memory_space<vmem>>, vector<4x1xf32>
    %162 = vector.extract_strided_slice %160 {offsets = [0, 0], sizes = [4, 1], strides = [1, 1]} : vector<4x4xf32> to vector<4x1xf32>
    %163 = vector.extract_strided_slice %159 {offsets = [0, 0], sizes = [1, 144], strides = [1, 1]} : vector<4x144xf32> to vector<1x144xf32>
    %164 = vector.broadcast %162 : vector<4x1xf32> to vector<4x144xf32>
    %165 = vector.broadcast %163 : vector<1x144xf32> to vector<4x144xf32>
    %166 = arith.mulf %164, %165 : vector<4x144xf32>
    %167 = vector.broadcast %161 : vector<4x1xf32> to vector<4x144xf32>
    %168 = arith.addf %167, %166 : vector<4x144xf32>
    %169 = vector.extract_strided_slice %160 {offsets = [0, 1], sizes = [4, 1], strides = [1, 1]} : vector<4x4xf32> to vector<4x1xf32>
    %170 = vector.extract_strided_slice %159 {offsets = [1, 0], sizes = [1, 144], strides = [1, 1]} : vector<4x144xf32> to vector<1x144xf32>
    %171 = vector.broadcast %169 : vector<4x1xf32> to vector<4x144xf32>
    %172 = vector.broadcast %170 : vector<1x144xf32> to vector<4x144xf32>
    %173 = arith.mulf %171, %172 : vector<4x144xf32>
    %174 = arith.addf %168, %173 : vector<4x144xf32>
    %175 = vector.extract_strided_slice %160 {offsets = [0, 2], sizes = [4, 1], strides = [1, 1]} : vector<4x4xf32> to vector<4x1xf32>
    %176 = vector.extract_strided_slice %159 {offsets = [2, 0], sizes = [1, 144], strides = [1, 1]} : vector<4x144xf32> to vector<1x144xf32>
    %177 = vector.broadcast %175 : vector<4x1xf32> to vector<4x144xf32>
    %178 = vector.broadcast %176 : vector<1x144xf32> to vector<4x144xf32>
    %179 = arith.mulf %177, %178 : vector<4x144xf32>
    %180 = arith.addf %174, %179 : vector<4x144xf32>
    %181 = vector.extract_strided_slice %160 {offsets = [0, 3], sizes = [4, 1], strides = [1, 1]} : vector<4x4xf32> to vector<4x1xf32>
    %182 = vector.extract_strided_slice %159 {offsets = [3, 0], sizes = [1, 144], strides = [1, 1]} : vector<4x144xf32> to vector<1x144xf32>
    %183 = vector.broadcast %181 : vector<4x1xf32> to vector<4x144xf32>
    %184 = vector.broadcast %182 : vector<1x144xf32> to vector<4x144xf32>
    %185 = arith.mulf %183, %184 : vector<4x144xf32>
    %186 = arith.addf %180, %185 : vector<4x144xf32>
    %c0_38 = arith.constant 0 : index
    %c0_39 = arith.constant 0 : index
    %c0_40 = arith.constant 0 : index
    %187 = vector.load %arg15[%c0_38, %c0_39, %c0_40] : memref<2x4x144xf32, #tpu.memory_space<vmem>>, vector<1x4x144xf32>
    %188 = vector.shape_cast %187 : vector<1x4x144xf32> to vector<4x144xf32>
    %189 = vector.shape_cast %186 : vector<4x144xf32> to vector<1x4x144xf32>
    tpu.vector_store %arg15[%c0_38, %c0_39, %c0_40], %189 {strides = array<i32>} : memref<2x4x144xf32, #tpu.memory_space<vmem>>, vector<1x4x144xf32>,
    %c0_41 = arith.constant 0 : index
    %c0_42 = arith.constant 0 : index
    %190 = vector.load %arg4[%c0_41, %c0_42] : memref<8x256xf32, #tpu.memory_space<vmem>>, vector<8x4xf32>
    %c0_43 = arith.constant 0 : index
    %c4_44 = arith.constant 4 : index
    %191 = vector.load %arg4[%c0_43, %c4_44] : memref<8x256xf32, #tpu.memory_space<vmem>>, vector<8x1xf32>
    %192 = vector.extract_strided_slice %190 {offsets = [0, 0], sizes = [8, 1], strides = [1, 1]} : vector<8x4xf32> to vector<8x1xf32>
    %193 = vector.extract_strided_slice %54 {offsets = [0, 0], sizes = [1, 144], strides = [1, 1]} : vector<4x144xf32> to vector<1x144xf32>
    %194 = vector.broadcast %192 : vector<8x1xf32> to vector<8x144xf32>
    %195 = vector.broadcast %193 : vector<1x144xf32> to vector<8x144xf32>
    %196 = arith.mulf %194, %195 : vector<8x144xf32>
    %197 = vector.broadcast %191 : vector<8x1xf32> to vector<8x144xf32>
    %198 = arith.addf %197, %196 : vector<8x144xf32>
    %199 = vector.extract_strided_slice %190 {offsets = [0, 1], sizes = [8, 1], strides = [1, 1]} : vector<8x4xf32> to vector<8x1xf32>
    %200 = vector.extract_strided_slice %54 {offsets = [1, 0], sizes = [1, 144], strides = [1, 1]} : vector<4x144xf32> to vector<1x144xf32>
    %201 = vector.broadcast %199 : vector<8x1xf32> to vector<8x144xf32>
    %202 = vector.broadcast %200 : vector<1x144xf32> to vector<8x144xf32>
    %203 = arith.mulf %201, %202 : vector<8x144xf32>
    %204 = arith.addf %198, %203 : vector<8x144xf32>
    %205 = vector.extract_strided_slice %190 {offsets = [0, 2], sizes = [8, 1], strides = [1, 1]} : vector<8x4xf32> to vector<8x1xf32>
    %206 = vector.extract_strided_slice %54 {offsets = [2, 0], sizes = [1, 144], strides = [1, 1]} : vector<4x144xf32> to vector<1x144xf32>
    %207 = vector.broadcast %205 : vector<8x1xf32> to vector<8x144xf32>
    %208 = vector.broadcast %206 : vector<1x144xf32> to vector<8x144xf32>
    %209 = arith.mulf %207, %208 : vector<8x144xf32>
    %210 = arith.addf %204, %209 : vector<8x144xf32>
    %211 = vector.extract_strided_slice %190 {offsets = [0, 3], sizes = [8, 1], strides = [1, 1]} : vector<8x4xf32> to vector<8x1xf32>
    %212 = vector.extract_strided_slice %54 {offsets = [3, 0], sizes = [1, 144], strides = [1, 1]} : vector<4x144xf32> to vector<1x144xf32>
    %213 = vector.broadcast %211 : vector<8x1xf32> to vector<8x144xf32>
    %214 = vector.broadcast %212 : vector<1x144xf32> to vector<8x144xf32>
    %215 = arith.mulf %213, %214 : vector<8x144xf32>
    %216 = arith.addf %210, %215 : vector<8x144xf32>
    %c0_45 = arith.constant 0 : index
    %c128_46 = arith.constant 128 : index
    %217 = vector.load %arg4[%c0_45, %c128_46] : memref<8x256xf32, #tpu.memory_space<vmem>>, vector<4x8xf32>
    %c0_47 = arith.constant 0 : index
    %c136_48 = arith.constant 136 : index
    %218 = vector.load %arg4[%c0_47, %c136_48] : memref<8x256xf32, #tpu.memory_space<vmem>>, vector<4x1xf32>
    %219 = vector.extract_strided_slice %217 {offsets = [0, 0], sizes = [4, 1], strides = [1, 1]} : vector<4x8xf32> to vector<4x1xf32>
    %220 = vector.extract_strided_slice %216 {offsets = [0, 0], sizes = [1, 144], strides = [1, 1]} : vector<8x144xf32> to vector<1x144xf32>
    %221 = vector.broadcast %219 : vector<4x1xf32> to vector<4x144xf32>
    %222 = vector.broadcast %220 : vector<1x144xf32> to vector<4x144xf32>
    %223 = arith.mulf %221, %222 : vector<4x144xf32>
    %224 = vector.broadcast %218 : vector<4x1xf32> to vector<4x144xf32>
    %225 = arith.addf %224, %223 : vector<4x144xf32>
    %226 = vector.extract_strided_slice %217 {offsets = [0, 1], sizes = [4, 1], strides = [1, 1]} : vector<4x8xf32> to vector<4x1xf32>
    %227 = vector.extract_strided_slice %216 {offsets = [1, 0], sizes = [1, 144], strides = [1, 1]} : vector<8x144xf32> to vector<1x144xf32>
    %228 = vector.broadcast %226 : vector<4x1xf32> to vector<4x144xf32>
    %229 = vector.broadcast %227 : vector<1x144xf32> to vector<4x144xf32>
    %230 = arith.mulf %228, %229 : vector<4x144xf32>
    %231 = arith.addf %225, %230 : vector<4x144xf32>
    %232 = vector.extract_strided_slice %217 {offsets = [0, 2], sizes = [4, 1], strides = [1, 1]} : vector<4x8xf32> to vector<4x1xf32>
    %233 = vector.extract_strided_slice %216 {offsets = [2, 0], sizes = [1, 144], strides = [1, 1]} : vector<8x144xf32> to vector<1x144xf32>
    %234 = vector.broadcast %232 : vector<4x1xf32> to vector<4x144xf32>
    %235 = vector.broadcast %233 : vector<1x144xf32> to vector<4x144xf32>
    %236 = arith.mulf %234, %235 : vector<4x144xf32>
    %237 = arith.addf %231, %236 : vector<4x144xf32>
    %238 = vector.extract_strided_slice %217 {offsets = [0, 3], sizes = [4, 1], strides = [1, 1]} : vector<4x8xf32> to vector<4x1xf32>
    %239 = vector.extract_strided_slice %216 {offsets = [3, 0], sizes = [1, 144], strides = [1, 1]} : vector<8x144xf32> to vector<1x144xf32>
    %240 = vector.broadcast %238 : vector<4x1xf32> to vector<4x144xf32>
    %241 = vector.broadcast %239 : vector<1x144xf32> to vector<4x144xf32>
    %242 = arith.mulf %240, %241 : vector<4x144xf32>
    %243 = arith.addf %237, %242 : vector<4x144xf32>
    %244 = vector.extract_strided_slice %217 {offsets = [0, 4], sizes = [4, 1], strides = [1, 1]} : vector<4x8xf32> to vector<4x1xf32>
    %245 = vector.extract_strided_slice %216 {offsets = [4, 0], sizes = [1, 144], strides = [1, 1]} : vector<8x144xf32> to vector<1x144xf32>
    %246 = vector.broadcast %244 : vector<4x1xf32> to vector<4x144xf32>
    %247 = vector.broadcast %245 : vector<1x144xf32> to vector<4x144xf32>
    %248 = arith.mulf %246, %247 : vector<4x144xf32>
    %249 = arith.addf %243, %248 : vector<4x144xf32>
    %250 = vector.extract_strided_slice %217 {offsets = [0, 5], sizes = [4, 1], strides = [1, 1]} : vector<4x8xf32> to vector<4x1xf32>
    %251 = vector.extract_strided_slice %216 {offsets = [5, 0], sizes = [1, 144], strides = [1, 1]} : vector<8x144xf32> to vector<1x144xf32>
    %252 = vector.broadcast %250 : vector<4x1xf32> to vector<4x144xf32>
    %253 = vector.broadcast %251 : vector<1x144xf32> to vector<4x144xf32>
    %254 = arith.mulf %252, %253 : vector<4x144xf32>
    %255 = arith.addf %249, %254 : vector<4x144xf32>
    %256 = vector.extract_strided_slice %217 {offsets = [0, 6], sizes = [4, 1], strides = [1, 1]} : vector<4x8xf32> to vector<4x1xf32>
    %257 = vector.extract_strided_slice %216 {offsets = [6, 0], sizes = [1, 144], strides = [1, 1]} : vector<8x144xf32> to vector<1x144xf32>
    %258 = vector.broadcast %256 : vector<4x1xf32> to vector<4x144xf32>
    %259 = vector.broadcast %257 : vector<1x144xf32> to vector<4x144xf32>
    %260 = arith.mulf %258, %259 : vector<4x144xf32>
    %261 = arith.addf %255, %260 : vector<4x144xf32>
    %262 = vector.extract_strided_slice %217 {offsets = [0, 7], sizes = [4, 1], strides = [1, 1]} : vector<4x8xf32> to vector<4x1xf32>
    %263 = vector.extract_strided_slice %216 {offsets = [7, 0], sizes = [1, 144], strides = [1, 1]} : vector<8x144xf32> to vector<1x144xf32>
    %264 = vector.broadcast %262 : vector<4x1xf32> to vector<4x144xf32>
    %265 = vector.broadcast %263 : vector<1x144xf32> to vector<4x144xf32>
    %266 = arith.mulf %264, %265 : vector<4x144xf32>
    %267 = arith.addf %261, %266 : vector<4x144xf32>
    %c0_49 = arith.constant 0 : index
    %c0_50 = arith.constant 0 : index
    %c0_51 = arith.constant 0 : index
    %268 = vector.load %arg16[%c0_49, %c0_50, %c0_51] : memref<2x4x144xf32, #tpu.memory_space<vmem>>, vector<1x4x144xf32>
    %269 = vector.shape_cast %268 : vector<1x4x144xf32> to vector<4x144xf32>
    %270 = vector.shape_cast %267 : vector<4x144xf32> to vector<1x4x144xf32>
    tpu.vector_store %arg16[%c0_49, %c0_50, %c0_51], %270 {strides = array<i32>} : memref<2x4x144xf32, #tpu.memory_space<vmem>>, vector<1x4x144xf32>,
    %271 = vector.extract_strided_slice %38 {offsets = [1, 0], sizes = [1, 144], strides = [1, 1]} : vector<4x144xf32> to vector<1x144xf32>
    %c0_52 = arith.constant 0 : index
    %c0_53 = arith.constant 0 : index
    %272 = vector.load %arg1[%c0_52, %c0_53] : memref<4x6xf32, #tpu.memory_space<vmem>>, vector<4x1xf32>
    %273 = vector.broadcast %271 : vector<1x144xf32> to vector<4x144xf32>
    %274 = vector.broadcast %272 : vector<4x1xf32> to vector<4x144xf32>
    %275 = arith.mulf %273, %274 : vector<4x144xf32>
    %c0_54 = arith.constant 0 : index
    %c3_55 = arith.constant 3 : index
    %276 = vector.load %arg1[%c0_54, %c3_55] : memref<4x6xf32, #tpu.memory_space<vmem>>, vector<4x1xf32>
    %277 = vector.broadcast %276 : vector<4x1xf32> to vector<4x144xf32>
    %278 = arith.addf %275, %277 : vector<4x144xf32>
    %279 = vector.extract_strided_slice %38 {offsets = [3, 0], sizes = [1, 144], strides = [1, 1]} : vector<4x144xf32> to vector<1x144xf32>
    %c0_56 = arith.constant 0 : index
    %c2_57 = arith.constant 2 : index
    %280 = vector.load %arg1[%c0_56, %c2_57] : memref<4x6xf32, #tpu.memory_space<vmem>>, vector<4x1xf32>
    %281 = vector.broadcast %279 : vector<1x144xf32> to vector<4x144xf32>
    %282 = vector.broadcast %280 : vector<4x1xf32> to vector<4x144xf32>
    %283 = arith.mulf %281, %282 : vector<4x144xf32>
    %c0_58 = arith.constant 0 : index
    %c5_59 = arith.constant 5 : index
    %284 = vector.load %arg1[%c0_58, %c5_59] : memref<4x6xf32, #tpu.memory_space<vmem>>, vector<4x1xf32>
    %285 = vector.broadcast %284 : vector<4x1xf32> to vector<4x144xf32>
    %286 = arith.addf %283, %285 : vector<4x144xf32>
    %c0_60 = arith.constant 0 : index
    %c0_61 = arith.constant 0 : index
    %287 = vector.load %arg3[%c0_60, %c0_61] : memref<8x512xf32, #tpu.memory_space<vmem>>, vector<8x4xf32>
    %c0_62 = arith.constant 0 : index
    %c4_63 = arith.constant 4 : index
    %288 = vector.load %arg3[%c0_62, %c4_63] : memref<8x512xf32, #tpu.memory_space<vmem>>, vector<8x1xf32>
    %289 = vector.extract_strided_slice %287 {offsets = [0, 0], sizes = [8, 1], strides = [1, 1]} : vector<8x4xf32> to vector<8x1xf32>
    %290 = vector.extract_strided_slice %278 {offsets = [0, 0], sizes = [1, 144], strides = [1, 1]} : vector<4x144xf32> to vector<1x144xf32>
    %291 = vector.broadcast %289 : vector<8x1xf32> to vector<8x144xf32>
    %292 = vector.broadcast %290 : vector<1x144xf32> to vector<8x144xf32>
    %293 = arith.mulf %291, %292 : vector<8x144xf32>
    %294 = vector.broadcast %288 : vector<8x1xf32> to vector<8x144xf32>
    %295 = arith.addf %294, %293 : vector<8x144xf32>
    %296 = vector.extract_strided_slice %287 {offsets = [0, 1], sizes = [8, 1], strides = [1, 1]} : vector<8x4xf32> to vector<8x1xf32>
    %297 = vector.extract_strided_slice %278 {offsets = [1, 0], sizes = [1, 144], strides = [1, 1]} : vector<4x144xf32> to vector<1x144xf32>
    %298 = vector.broadcast %296 : vector<8x1xf32> to vector<8x144xf32>
    %299 = vector.broadcast %297 : vector<1x144xf32> to vector<8x144xf32>
    %300 = arith.mulf %298, %299 : vector<8x144xf32>
    %301 = arith.addf %295, %300 : vector<8x144xf32>
    %302 = vector.extract_strided_slice %287 {offsets = [0, 2], sizes = [8, 1], strides = [1, 1]} : vector<8x4xf32> to vector<8x1xf32>
    %303 = vector.extract_strided_slice %278 {offsets = [2, 0], sizes = [1, 144], strides = [1, 1]} : vector<4x144xf32> to vector<1x144xf32>
    %304 = vector.broadcast %302 : vector<8x1xf32> to vector<8x144xf32>
    %305 = vector.broadcast %303 : vector<1x144xf32> to vector<8x144xf32>
    %306 = arith.mulf %304, %305 : vector<8x144xf32>
    %307 = arith.addf %301, %306 : vector<8x144xf32>
    %308 = vector.extract_strided_slice %287 {offsets = [0, 3], sizes = [8, 1], strides = [1, 1]} : vector<8x4xf32> to vector<8x1xf32>
    %309 = vector.extract_strided_slice %278 {offsets = [3, 0], sizes = [1, 144], strides = [1, 1]} : vector<4x144xf32> to vector<1x144xf32>
    %310 = vector.broadcast %308 : vector<8x1xf32> to vector<8x144xf32>
    %311 = vector.broadcast %309 : vector<1x144xf32> to vector<8x144xf32>
    %312 = arith.mulf %310, %311 : vector<8x144xf32>
    %313 = arith.addf %307, %312 : vector<8x144xf32>
    %c0_64 = arith.constant 0 : index
    %c128_65 = arith.constant 128 : index
    %314 = vector.load %arg3[%c0_64, %c128_65] : memref<8x512xf32, #tpu.memory_space<vmem>>, vector<4x8xf32>
    %c0_66 = arith.constant 0 : index
    %c136_67 = arith.constant 136 : index
    %315 = vector.load %arg3[%c0_66, %c136_67] : memref<8x512xf32, #tpu.memory_space<vmem>>, vector<4x1xf32>
    %316 = vector.extract_strided_slice %314 {offsets = [0, 0], sizes = [4, 1], strides = [1, 1]} : vector<4x8xf32> to vector<4x1xf32>
    %317 = vector.extract_strided_slice %313 {offsets = [0, 0], sizes = [1, 144], strides = [1, 1]} : vector<8x144xf32> to vector<1x144xf32>
    %318 = vector.broadcast %316 : vector<4x1xf32> to vector<4x144xf32>
    %319 = vector.broadcast %317 : vector<1x144xf32> to vector<4x144xf32>
    %320 = arith.mulf %318, %319 : vector<4x144xf32>
    %321 = vector.broadcast %315 : vector<4x1xf32> to vector<4x144xf32>
    %322 = arith.addf %321, %320 : vector<4x144xf32>
    %323 = vector.extract_strided_slice %314 {offsets = [0, 1], sizes = [4, 1], strides = [1, 1]} : vector<4x8xf32> to vector<4x1xf32>
    %324 = vector.extract_strided_slice %313 {offsets = [1, 0], sizes = [1, 144], strides = [1, 1]} : vector<8x144xf32> to vector<1x144xf32>
    %325 = vector.broadcast %323 : vector<4x1xf32> to vector<4x144xf32>
    %326 = vector.broadcast %324 : vector<1x144xf32> to vector<4x144xf32>
    %327 = arith.mulf %325, %326 : vector<4x144xf32>
    %328 = arith.addf %322, %327 : vector<4x144xf32>
    %329 = vector.extract_strided_slice %314 {offsets = [0, 2], sizes = [4, 1], strides = [1, 1]} : vector<4x8xf32> to vector<4x1xf32>
    %330 = vector.extract_strided_slice %313 {offsets = [2, 0], sizes = [1, 144], strides = [1, 1]} : vector<8x144xf32> to vector<1x144xf32>
    %331 = vector.broadcast %329 : vector<4x1xf32> to vector<4x144xf32>
    %332 = vector.broadcast %330 : vector<1x144xf32> to vector<4x144xf32>
    %333 = arith.mulf %331, %332 : vector<4x144xf32>
    %334 = arith.addf %328, %333 : vector<4x144xf32>
    %335 = vector.extract_strided_slice %314 {offsets = [0, 3], sizes = [4, 1], strides = [1, 1]} : vector<4x8xf32> to vector<4x1xf32>
    %336 = vector.extract_strided_slice %313 {offsets = [3, 0], sizes = [1, 144], strides = [1, 1]} : vector<8x144xf32> to vector<1x144xf32>
    %337 = vector.broadcast %335 : vector<4x1xf32> to vector<4x144xf32>
    %338 = vector.broadcast %336 : vector<1x144xf32> to vector<4x144xf32>
    %339 = arith.mulf %337, %338 : vector<4x144xf32>
    %340 = arith.addf %334, %339 : vector<4x144xf32>
    %341 = vector.extract_strided_slice %314 {offsets = [0, 4], sizes = [4, 1], strides = [1, 1]} : vector<4x8xf32> to vector<4x1xf32>
    %342 = vector.extract_strided_slice %313 {offsets = [4, 0], sizes = [1, 144], strides = [1, 1]} : vector<8x144xf32> to vector<1x144xf32>
    %343 = vector.broadcast %341 : vector<4x1xf32> to vector<4x144xf32>
    %344 = vector.broadcast %342 : vector<1x144xf32> to vector<4x144xf32>
    %345 = arith.mulf %343, %344 : vector<4x144xf32>
    %346 = arith.addf %340, %345 : vector<4x144xf32>
    %347 = vector.extract_strided_slice %314 {offsets = [0, 5], sizes = [4, 1], strides = [1, 1]} : vector<4x8xf32> to vector<4x1xf32>
    %348 = vector.extract_strided_slice %313 {offsets = [5, 0], sizes = [1, 144], strides = [1, 1]} : vector<8x144xf32> to vector<1x144xf32>
    %349 = vector.broadcast %347 : vector<4x1xf32> to vector<4x144xf32>
    %350 = vector.broadcast %348 : vector<1x144xf32> to vector<4x144xf32>
    %351 = arith.mulf %349, %350 : vector<4x144xf32>
    %352 = arith.addf %346, %351 : vector<4x144xf32>
    %353 = vector.extract_strided_slice %314 {offsets = [0, 6], sizes = [4, 1], strides = [1, 1]} : vector<4x8xf32> to vector<4x1xf32>
    %354 = vector.extract_strided_slice %313 {offsets = [6, 0], sizes = [1, 144], strides = [1, 1]} : vector<8x144xf32> to vector<1x144xf32>
    %355 = vector.broadcast %353 : vector<4x1xf32> to vector<4x144xf32>
    %356 = vector.broadcast %354 : vector<1x144xf32> to vector<4x144xf32>
    %357 = arith.mulf %355, %356 : vector<4x144xf32>
    %358 = arith.addf %352, %357 : vector<4x144xf32>
    %359 = vector.extract_strided_slice %314 {offsets = [0, 7], sizes = [4, 1], strides = [1, 1]} : vector<4x8xf32> to vector<4x1xf32>
    %360 = vector.extract_strided_slice %313 {offsets = [7, 0], sizes = [1, 144], strides = [1, 1]} : vector<8x144xf32> to vector<1x144xf32>
    %361 = vector.broadcast %359 : vector<4x1xf32> to vector<4x144xf32>
    %362 = vector.broadcast %360 : vector<1x144xf32> to vector<4x144xf32>
    %363 = arith.mulf %361, %362 : vector<4x144xf32>
    %364 = arith.addf %358, %363 : vector<4x144xf32>
    %c0_68 = arith.constant 0 : index
    %c256_69 = arith.constant 256 : index
    %365 = vector.load %arg3[%c0_68, %c256_69] : memref<8x512xf32, #tpu.memory_space<vmem>>, vector<4x4xf32>
    %c0_70 = arith.constant 0 : index
    %c260_71 = arith.constant 260 : index
    %366 = vector.load %arg3[%c0_70, %c260_71] : memref<8x512xf32, #tpu.memory_space<vmem>>, vector<4x1xf32>
    %367 = vector.extract_strided_slice %365 {offsets = [0, 0], sizes = [4, 1], strides = [1, 1]} : vector<4x4xf32> to vector<4x1xf32>
    %368 = vector.extract_strided_slice %364 {offsets = [0, 0], sizes = [1, 144], strides = [1, 1]} : vector<4x144xf32> to vector<1x144xf32>
    %369 = vector.broadcast %367 : vector<4x1xf32> to vector<4x144xf32>
    %370 = vector.broadcast %368 : vector<1x144xf32> to vector<4x144xf32>
    %371 = arith.mulf %369, %370 : vector<4x144xf32>
    %372 = vector.broadcast %366 : vector<4x1xf32> to vector<4x144xf32>
    %373 = arith.addf %372, %371 : vector<4x144xf32>
    %374 = vector.extract_strided_slice %365 {offsets = [0, 1], sizes = [4, 1], strides = [1, 1]} : vector<4x4xf32> to vector<4x1xf32>
    %375 = vector.extract_strided_slice %364 {offsets = [1, 0], sizes = [1, 144], strides = [1, 1]} : vector<4x144xf32> to vector<1x144xf32>
    %376 = vector.broadcast %374 : vector<4x1xf32> to vector<4x144xf32>
    %377 = vector.broadcast %375 : vector<1x144xf32> to vector<4x144xf32>
    %378 = arith.mulf %376, %377 : vector<4x144xf32>
    %379 = arith.addf %373, %378 : vector<4x144xf32>
    %380 = vector.extract_strided_slice %365 {offsets = [0, 2], sizes = [4, 1], strides = [1, 1]} : vector<4x4xf32> to vector<4x1xf32>
    %381 = vector.extract_strided_slice %364 {offsets = [2, 0], sizes = [1, 144], strides = [1, 1]} : vector<4x144xf32> to vector<1x144xf32>
    %382 = vector.broadcast %380 : vector<4x1xf32> to vector<4x144xf32>
    %383 = vector.broadcast %381 : vector<1x144xf32> to vector<4x144xf32>
    %384 = arith.mulf %382, %383 : vector<4x144xf32>
    %385 = arith.addf %379, %384 : vector<4x144xf32>
    %386 = vector.extract_strided_slice %365 {offsets = [0, 3], sizes = [4, 1], strides = [1, 1]} : vector<4x4xf32> to vector<4x1xf32>
    %387 = vector.extract_strided_slice %364 {offsets = [3, 0], sizes = [1, 144], strides = [1, 1]} : vector<4x144xf32> to vector<1x144xf32>
    %388 = vector.broadcast %386 : vector<4x1xf32> to vector<4x144xf32>
    %389 = vector.broadcast %387 : vector<1x144xf32> to vector<4x144xf32>
    %390 = arith.mulf %388, %389 : vector<4x144xf32>
    %391 = arith.addf %385, %390 : vector<4x144xf32>
    %c0_72 = arith.constant 0 : index
    %c384_73 = arith.constant 384 : index
    %392 = vector.load %arg3[%c0_72, %c384_73] : memref<8x512xf32, #tpu.memory_space<vmem>>, vector<4x4xf32>
    %c0_74 = arith.constant 0 : index
    %c388_75 = arith.constant 388 : index
    %393 = vector.load %arg3[%c0_74, %c388_75] : memref<8x512xf32, #tpu.memory_space<vmem>>, vector<4x1xf32>
    %394 = vector.extract_strided_slice %392 {offsets = [0, 0], sizes = [4, 1], strides = [1, 1]} : vector<4x4xf32> to vector<4x1xf32>
    %395 = vector.extract_strided_slice %391 {offsets = [0, 0], sizes = [1, 144], strides = [1, 1]} : vector<4x144xf32> to vector<1x144xf32>
    %396 = vector.broadcast %394 : vector<4x1xf32> to vector<4x144xf32>
    %397 = vector.broadcast %395 : vector<1x144xf32> to vector<4x144xf32>
    %398 = arith.mulf %396, %397 : vector<4x144xf32>
    %399 = vector.broadcast %393 : vector<4x1xf32> to vector<4x144xf32>
    %400 = arith.addf %399, %398 : vector<4x144xf32>
    %401 = vector.extract_strided_slice %392 {offsets = [0, 1], sizes = [4, 1], strides = [1, 1]} : vector<4x4xf32> to vector<4x1xf32>
    %402 = vector.extract_strided_slice %391 {offsets = [1, 0], sizes = [1, 144], strides = [1, 1]} : vector<4x144xf32> to vector<1x144xf32>
    %403 = vector.broadcast %401 : vector<4x1xf32> to vector<4x144xf32>
    %404 = vector.broadcast %402 : vector<1x144xf32> to vector<4x144xf32>
    %405 = arith.mulf %403, %404 : vector<4x144xf32>
    %406 = arith.addf %400, %405 : vector<4x144xf32>
    %407 = vector.extract_strided_slice %392 {offsets = [0, 2], sizes = [4, 1], strides = [1, 1]} : vector<4x4xf32> to vector<4x1xf32>
    %408 = vector.extract_strided_slice %391 {offsets = [2, 0], sizes = [1, 144], strides = [1, 1]} : vector<4x144xf32> to vector<1x144xf32>
    %409 = vector.broadcast %407 : vector<4x1xf32> to vector<4x144xf32>
    %410 = vector.broadcast %408 : vector<1x144xf32> to vector<4x144xf32>
    %411 = arith.mulf %409, %410 : vector<4x144xf32>
    %412 = arith.addf %406, %411 : vector<4x144xf32>
    %413 = vector.extract_strided_slice %392 {offsets = [0, 3], sizes = [4, 1], strides = [1, 1]} : vector<4x4xf32> to vector<4x1xf32>
    %414 = vector.extract_strided_slice %391 {offsets = [3, 0], sizes = [1, 144], strides = [1, 1]} : vector<4x144xf32> to vector<1x144xf32>
    %415 = vector.broadcast %413 : vector<4x1xf32> to vector<4x144xf32>
    %416 = vector.broadcast %414 : vector<1x144xf32> to vector<4x144xf32>
    %417 = arith.mulf %415, %416 : vector<4x144xf32>
    %418 = arith.addf %412, %417 : vector<4x144xf32>
    %c1_76 = arith.constant 1 : index
    %c0_77 = arith.constant 0 : index
    %c0_78 = arith.constant 0 : index
    %419 = vector.load %arg15[%c1_76, %c0_77, %c0_78] : memref<2x4x144xf32, #tpu.memory_space<vmem>>, vector<1x4x144xf32>
    %420 = vector.shape_cast %419 : vector<1x4x144xf32> to vector<4x144xf32>
    %421 = vector.shape_cast %418 : vector<4x144xf32> to vector<1x4x144xf32>
    tpu.vector_store %arg15[%c1_76, %c0_77, %c0_78], %421 {strides = array<i32>} : memref<2x4x144xf32, #tpu.memory_space<vmem>>, vector<1x4x144xf32>,
    %c0_79 = arith.constant 0 : index
    %c0_80 = arith.constant 0 : index
    %422 = vector.load %arg4[%c0_79, %c0_80] : memref<8x256xf32, #tpu.memory_space<vmem>>, vector<8x4xf32>
    %c0_81 = arith.constant 0 : index
    %c4_82 = arith.constant 4 : index
    %423 = vector.load %arg4[%c0_81, %c4_82] : memref<8x256xf32, #tpu.memory_space<vmem>>, vector<8x1xf32>
    %424 = vector.extract_strided_slice %422 {offsets = [0, 0], sizes = [8, 1], strides = [1, 1]} : vector<8x4xf32> to vector<8x1xf32>
    %425 = vector.extract_strided_slice %286 {offsets = [0, 0], sizes = [1, 144], strides = [1, 1]} : vector<4x144xf32> to vector<1x144xf32>
    %426 = vector.broadcast %424 : vector<8x1xf32> to vector<8x144xf32>
    %427 = vector.broadcast %425 : vector<1x144xf32> to vector<8x144xf32>
    %428 = arith.mulf %426, %427 : vector<8x144xf32>
    %429 = vector.broadcast %423 : vector<8x1xf32> to vector<8x144xf32>
    %430 = arith.addf %429, %428 : vector<8x144xf32>
    %431 = vector.extract_strided_slice %422 {offsets = [0, 1], sizes = [8, 1], strides = [1, 1]} : vector<8x4xf32> to vector<8x1xf32>
    %432 = vector.extract_strided_slice %286 {offsets = [1, 0], sizes = [1, 144], strides = [1, 1]} : vector<4x144xf32> to vector<1x144xf32>
    %433 = vector.broadcast %431 : vector<8x1xf32> to vector<8x144xf32>
    %434 = vector.broadcast %432 : vector<1x144xf32> to vector<8x144xf32>
    %435 = arith.mulf %433, %434 : vector<8x144xf32>
    %436 = arith.addf %430, %435 : vector<8x144xf32>
    %437 = vector.extract_strided_slice %422 {offsets = [0, 2], sizes = [8, 1], strides = [1, 1]} : vector<8x4xf32> to vector<8x1xf32>
    %438 = vector.extract_strided_slice %286 {offsets = [2, 0], sizes = [1, 144], strides = [1, 1]} : vector<4x144xf32> to vector<1x144xf32>
    %439 = vector.broadcast %437 : vector<8x1xf32> to vector<8x144xf32>
    %440 = vector.broadcast %438 : vector<1x144xf32> to vector<8x144xf32>
    %441 = arith.mulf %439, %440 : vector<8x144xf32>
    %442 = arith.addf %436, %441 : vector<8x144xf32>
    %443 = vector.extract_strided_slice %422 {offsets = [0, 3], sizes = [8, 1], strides = [1, 1]} : vector<8x4xf32> to vector<8x1xf32>
    %444 = vector.extract_strided_slice %286 {offsets = [3, 0], sizes = [1, 144], strides = [1, 1]} : vector<4x144xf32> to vector<1x144xf32>
    %445 = vector.broadcast %443 : vector<8x1xf32> to vector<8x144xf32>
    %446 = vector.broadcast %444 : vector<1x144xf32> to vector<8x144xf32>
    %447 = arith.mulf %445, %446 : vector<8x144xf32>
    %448 = arith.addf %442, %447 : vector<8x144xf32>
    %c0_83 = arith.constant 0 : index
    %c128_84 = arith.constant 128 : index
    %449 = vector.load %arg4[%c0_83, %c128_84] : memref<8x256xf32, #tpu.memory_space<vmem>>, vector<4x8xf32>
    %c0_85 = arith.constant 0 : index
    %c136_86 = arith.constant 136 : index
    %450 = vector.load %arg4[%c0_85, %c136_86] : memref<8x256xf32, #tpu.memory_space<vmem>>, vector<4x1xf32>
    %451 = vector.extract_strided_slice %449 {offsets = [0, 0], sizes = [4, 1], strides = [1, 1]} : vector<4x8xf32> to vector<4x1xf32>
    %452 = vector.extract_strided_slice %448 {offsets = [0, 0], sizes = [1, 144], strides = [1, 1]} : vector<8x144xf32> to vector<1x144xf32>
    %453 = vector.broadcast %451 : vector<4x1xf32> to vector<4x144xf32>
    %454 = vector.broadcast %452 : vector<1x144xf32> to vector<4x144xf32>
    %455 = arith.mulf %453, %454 : vector<4x144xf32>
    %456 = vector.broadcast %450 : vector<4x1xf32> to vector<4x144xf32>
    %457 = arith.addf %456, %455 : vector<4x144xf32>
    %458 = vector.extract_strided_slice %449 {offsets = [0, 1], sizes = [4, 1], strides = [1, 1]} : vector<4x8xf32> to vector<4x1xf32>
    %459 = vector.extract_strided_slice %448 {offsets = [1, 0], sizes = [1, 144], strides = [1, 1]} : vector<8x144xf32> to vector<1x144xf32>
    %460 = vector.broadcast %458 : vector<4x1xf32> to vector<4x144xf32>
    %461 = vector.broadcast %459 : vector<1x144xf32> to vector<4x144xf32>
    %462 = arith.mulf %460, %461 : vector<4x144xf32>
    %463 = arith.addf %457, %462 : vector<4x144xf32>
    %464 = vector.extract_strided_slice %449 {offsets = [0, 2], sizes = [4, 1], strides = [1, 1]} : vector<4x8xf32> to vector<4x1xf32>
    %465 = vector.extract_strided_slice %448 {offsets = [2, 0], sizes = [1, 144], strides = [1, 1]} : vector<8x144xf32> to vector<1x144xf32>
    %466 = vector.broadcast %464 : vector<4x1xf32> to vector<4x144xf32>
    %467 = vector.broadcast %465 : vector<1x144xf32> to vector<4x144xf32>
    %468 = arith.mulf %466, %467 : vector<4x144xf32>
    %469 = arith.addf %463, %468 : vector<4x144xf32>
    %470 = vector.extract_strided_slice %449 {offsets = [0, 3], sizes = [4, 1], strides = [1, 1]} : vector<4x8xf32> to vector<4x1xf32>
    %471 = vector.extract_strided_slice %448 {offsets = [3, 0], sizes = [1, 144], strides = [1, 1]} : vector<8x144xf32> to vector<1x144xf32>
    %472 = vector.broadcast %470 : vector<4x1xf32> to vector<4x144xf32>
    %473 = vector.broadcast %471 : vector<1x144xf32> to vector<4x144xf32>
    %474 = arith.mulf %472, %473 : vector<4x144xf32>
    %475 = arith.addf %469, %474 : vector<4x144xf32>
    %476 = vector.extract_strided_slice %449 {offsets = [0, 4], sizes = [4, 1], strides = [1, 1]} : vector<4x8xf32> to vector<4x1xf32>
    %477 = vector.extract_strided_slice %448 {offsets = [4, 0], sizes = [1, 144], strides = [1, 1]} : vector<8x144xf32> to vector<1x144xf32>
    %478 = vector.broadcast %476 : vector<4x1xf32> to vector<4x144xf32>
    %479 = vector.broadcast %477 : vector<1x144xf32> to vector<4x144xf32>
    %480 = arith.mulf %478, %479 : vector<4x144xf32>
    %481 = arith.addf %475, %480 : vector<4x144xf32>
    %482 = vector.extract_strided_slice %449 {offsets = [0, 5], sizes = [4, 1], strides = [1, 1]} : vector<4x8xf32> to vector<4x1xf32>
    %483 = vector.extract_strided_slice %448 {offsets = [5, 0], sizes = [1, 144], strides = [1, 1]} : vector<8x144xf32> to vector<1x144xf32>
    %484 = vector.broadcast %482 : vector<4x1xf32> to vector<4x144xf32>
    %485 = vector.broadcast %483 : vector<1x144xf32> to vector<4x144xf32>
    %486 = arith.mulf %484, %485 : vector<4x144xf32>
    %487 = arith.addf %481, %486 : vector<4x144xf32>
    %488 = vector.extract_strided_slice %449 {offsets = [0, 6], sizes = [4, 1], strides = [1, 1]} : vector<4x8xf32> to vector<4x1xf32>
    %489 = vector.extract_strided_slice %448 {offsets = [6, 0], sizes = [1, 144], strides = [1, 1]} : vector<8x144xf32> to vector<1x144xf32>
    %490 = vector.broadcast %488 : vector<4x1xf32> to vector<4x144xf32>
    %491 = vector.broadcast %489 : vector<1x144xf32> to vector<4x144xf32>
    %492 = arith.mulf %490, %491 : vector<4x144xf32>
    %493 = arith.addf %487, %492 : vector<4x144xf32>
    %494 = vector.extract_strided_slice %449 {offsets = [0, 7], sizes = [4, 1], strides = [1, 1]} : vector<4x8xf32> to vector<4x1xf32>
    %495 = vector.extract_strided_slice %448 {offsets = [7, 0], sizes = [1, 144], strides = [1, 1]} : vector<8x144xf32> to vector<1x144xf32>
    %496 = vector.broadcast %494 : vector<4x1xf32> to vector<4x144xf32>
    %497 = vector.broadcast %495 : vector<1x144xf32> to vector<4x144xf32>
    %498 = arith.mulf %496, %497 : vector<4x144xf32>
    %499 = arith.addf %493, %498 : vector<4x144xf32>
    %c1_87 = arith.constant 1 : index
    %c0_88 = arith.constant 0 : index
    %c0_89 = arith.constant 0 : index
    %500 = vector.load %arg16[%c1_87, %c0_88, %c0_89] : memref<2x4x144xf32, #tpu.memory_space<vmem>>, vector<1x4x144xf32>
    %501 = vector.shape_cast %500 : vector<1x4x144xf32> to vector<4x144xf32>
    %502 = vector.shape_cast %499 : vector<4x144xf32> to vector<1x4x144xf32>
    tpu.vector_store %arg16[%c1_87, %c0_88, %c0_89], %502 {strides = array<i32>} : memref<2x4x144xf32, #tpu.memory_space<vmem>>, vector<1x4x144xf32>,
    %cst_90 = arith.constant dense<0.000000e+00> : vector<4xf32>
    %503 = vector.multi_reduction <add>, %0, %cst_90 [1] : vector<4x256xf32> to vector<4xf32>
    %504 = vector.shape_cast %503 : vector<4xf32> to vector<4x1xf32>
    %cst_91 = arith.constant 2.560000e+02 : f32
    %505 = vector.broadcast %cst_91 : f32 to vector<4x1xf32>
    %506 = arith.divf %504, %505 : vector<4x1xf32>
    %507 = vector.extract_strided_slice %506 {offsets = [0, 0], sizes = [2, 1], strides = [1, 1]} : vector<4x1xf32> to vector<2x1xf32>
    %c0_92 = arith.constant 0 : index
    %c0_93 = arith.constant 0 : index
    %508 = vector.load %arg5[%c0_92, %c0_93] : memref<4x256xf32, #tpu.memory_space<vmem>>, vector<1x256xf32>
    %509 = vector.broadcast %507 : vector<2x1xf32> to vector<2x256xf32>
    %510 = vector.broadcast %508 : vector<1x256xf32> to vector<2x256xf32>
    %511 = arith.mulf %509, %510 : vector<2x256xf32>
    %c1_94 = arith.constant 1 : index
    %c0_95 = arith.constant 0 : index
    %512 = vector.load %arg5[%c1_94, %c0_95] : memref<4x256xf32, #tpu.memory_space<vmem>>, vector<1x256xf32>
    %513 = vector.broadcast %512 : vector<1x256xf32> to vector<2x256xf32>
    %514 = arith.addf %511, %513 : vector<2x256xf32>
    %515 = vector.extract_strided_slice %506 {offsets = [2, 0], sizes = [2, 1], strides = [1, 1]} : vector<4x1xf32> to vector<2x1xf32>
    %c2_96 = arith.constant 2 : index
    %c0_97 = arith.constant 0 : index
    %516 = vector.load %arg5[%c2_96, %c0_97] : memref<4x256xf32, #tpu.memory_space<vmem>>, vector<1x256xf32>
    %517 = vector.broadcast %515 : vector<2x1xf32> to vector<2x256xf32>
    %518 = vector.broadcast %516 : vector<1x256xf32> to vector<2x256xf32>
    %519 = arith.mulf %517, %518 : vector<2x256xf32>
    %c3_98 = arith.constant 3 : index
    %c0_99 = arith.constant 0 : index
    %520 = vector.load %arg5[%c3_98, %c0_99] : memref<4x256xf32, #tpu.memory_space<vmem>>, vector<1x256xf32>
    %521 = vector.broadcast %520 : vector<1x256xf32> to vector<2x256xf32>
    %522 = arith.addf %519, %521 : vector<2x256xf32>
    %c0_100 = arith.constant 0 : index
    %c0_101 = arith.constant 0 : index
    %523 = vector.load %arg6[%c0_100, %c0_101] : memref<256x256xf32, #tpu.memory_space<vmem>>, vector<256x256xf32>
    %cst_102 = arith.constant dense<0.000000e+00> : vector<2x256xf32>
    %524 = tpu.matmul %514, %523, %cst_102 {dimension_numbers = #tpu.dot_dimension_numbers<[1], [0], [0], [1], [0, 0, 1, 1], [], []>} : vector<2x256xf32>, vector<256x256xf32>, vector<2x256xf32> -> vector<2x256xf32>
    %c0_103 = arith.constant 0 : index
    %c0_104 = arith.constant 0 : index
    %525 = vector.load %arg12[%c0_103, %c0_104] : memref<1x1024xf32, #tpu.memory_space<vmem>>, vector<1x256xf32>
    %526 = vector.broadcast %525 : vector<1x256xf32> to vector<2x256xf32>
    %527 = arith.addf %524, %526 : vector<2x256xf32>
    %c0_105 = arith.constant 0 : index
    %c0_106 = arith.constant 0 : index
    %528 = vector.load %arg7[%c0_105, %c0_106] : memref<256x32xf32, #tpu.memory_space<vmem>>, vector<256x32xf32>
    %cst_107 = arith.constant dense<0.000000e+00> : vector<2x32xf32>
    %529 = tpu.matmul %527, %528, %cst_107 {dimension_numbers = #tpu.dot_dimension_numbers<[1], [0], [0], [1], [0, 0, 1, 1], [], []>} : vector<2x256xf32>, vector<256x32xf32>, vector<2x32xf32> -> vector<2x32xf32>
    %c0_108 = arith.constant 0 : index
    %c256_109 = arith.constant 256 : index
    %530 = vector.load %arg12[%c0_108, %c256_109] : memref<1x1024xf32, #tpu.memory_space<vmem>>, vector<1x32xf32>
    %531 = vector.broadcast %530 : vector<1x32xf32> to vector<2x32xf32>
    %532 = arith.addf %529, %531 : vector<2x32xf32>
    %c0_110 = arith.constant 0 : index
    %c0_111 = arith.constant 0 : index
    %533 = vector.load %arg10[%c0_110, %c0_111] : memref<32x32xf32, #tpu.memory_space<vmem>>, vector<32x32xf32>
    %cst_112 = arith.constant dense<0.000000e+00> : vector<2x32xf32>
    %534 = tpu.matmul %532, %533, %cst_112 {dimension_numbers = #tpu.dot_dimension_numbers<[1], [0], [0], [1], [0, 0, 1, 1], [], []>} : vector<2x32xf32>, vector<32x32xf32>, vector<2x32xf32> -> vector<2x32xf32>
    %c0_113 = arith.constant 0 : index
    %c768 = arith.constant 768 : index
    %535 = vector.load %arg12[%c0_113, %c768] : memref<1x1024xf32, #tpu.memory_space<vmem>>, vector<1x32xf32>
    %536 = vector.broadcast %535 : vector<1x32xf32> to vector<2x32xf32>
    %537 = arith.addf %534, %536 : vector<2x32xf32>
    %c0_114 = arith.constant 0 : index
    %c0_115 = arith.constant 0 : index
    %538 = vector.load %arg11[%c0_114, %c0_115] : memref<32x32xf32, #tpu.memory_space<vmem>>, vector<32x32xf32>
    %cst_116 = arith.constant dense<0.000000e+00> : vector<2x32xf32>
    %539 = tpu.matmul %537, %538, %cst_116 {dimension_numbers = #tpu.dot_dimension_numbers<[1], [0], [0], [1], [0, 0, 1, 1], [], []>} : vector<2x32xf32>, vector<32x32xf32>, vector<2x32xf32> -> vector<2x32xf32>
    %c0_117 = arith.constant 0 : index
    %c896 = arith.constant 896 : index
    %540 = vector.load %arg12[%c0_117, %c896] : memref<1x1024xf32, #tpu.memory_space<vmem>>, vector<1x32xf32>
    %541 = vector.broadcast %540 : vector<1x32xf32> to vector<2x32xf32>
    %542 = arith.addf %539, %541 : vector<2x32xf32>
    %c0_118 = arith.constant 0 : index
    %c0_119 = arith.constant 0 : index
    %543 = vector.load %arg8[%c0_118, %c0_119] : memref<256x256xf32, #tpu.memory_space<vmem>>, vector<256x256xf32>
    %cst_120 = arith.constant dense<0.000000e+00> : vector<2x256xf32>
    %544 = tpu.matmul %522, %543, %cst_120 {dimension_numbers = #tpu.dot_dimension_numbers<[1], [0], [0], [1], [0, 0, 1, 1], [], []>} : vector<2x256xf32>, vector<256x256xf32>, vector<2x256xf32> -> vector<2x256xf32>
    %c0_121 = arith.constant 0 : index
    %c384_122 = arith.constant 384 : index
    %545 = vector.load %arg12[%c0_121, %c384_122] : memref<1x1024xf32, #tpu.memory_space<vmem>>, vector<1x256xf32>
    %546 = vector.broadcast %545 : vector<1x256xf32> to vector<2x256xf32>
    %547 = arith.addf %544, %546 : vector<2x256xf32>
    %c0_123 = arith.constant 0 : index
    %c0_124 = arith.constant 0 : index
    %548 = vector.load %arg9[%c0_123, %c0_124] : memref<256x32xf32, #tpu.memory_space<vmem>>, vector<256x32xf32>
    %cst_125 = arith.constant dense<0.000000e+00> : vector<2x32xf32>
    %549 = tpu.matmul %547, %548, %cst_125 {dimension_numbers = #tpu.dot_dimension_numbers<[1], [0], [0], [1], [0, 0, 1, 1], [], []>} : vector<2x256xf32>, vector<256x32xf32>, vector<2x32xf32> -> vector<2x32xf32>
    %c0_126 = arith.constant 0 : index
    %c640 = arith.constant 640 : index
    %550 = vector.load %arg12[%c0_126, %c640] : memref<1x1024xf32, #tpu.memory_space<vmem>>, vector<1x32xf32>
    %551 = vector.broadcast %550 : vector<1x32xf32> to vector<2x32xf32>
    %552 = arith.addf %549, %551 : vector<2x32xf32>
    %c0_127 = arith.constant 0 : index
    %c0_128 = arith.constant 0 : index
    %553 = vector.load %arg13[%c0_127, %c0_128] : memref<16x32xf32, #tpu.memory_space<vmem>>, vector<16x32xf32>
    %554 = arith.mulf %553, %553 : vector<16x32xf32>
    %cst_129 = arith.constant dense<0.000000e+00> : vector<16xf32>
    %555 = vector.multi_reduction <add>, %554, %cst_129 [1] : vector<16x32xf32> to vector<16xf32>
    %556 = vector.shape_cast %555 : vector<16xf32> to vector<16x1xf32>
    %cst_130 = arith.constant 1.000000e-24 : f32
    %557 = vector.broadcast %cst_130 : f32 to vector<16x1xf32>
    %558 = arith.maximumf %556, %557 : vector<16x1xf32>
    %559 = math.rsqrt %558 : vector<16x1xf32>
    %560 = vector.broadcast %559 : vector<16x1xf32> to vector<16x32xf32>
    %561 = arith.mulf %553, %560 : vector<16x32xf32>
    %562 = arith.mulf %552, %552 : vector<2x32xf32>
    %cst_131 = arith.constant dense<0.000000e+00> : vector<2xf32>
    %563 = vector.multi_reduction <add>, %562, %cst_131 [1] : vector<2x32xf32> to vector<2xf32>
    %564 = vector.shape_cast %563 : vector<2xf32> to vector<2x1xf32>
    %cst_132 = arith.constant 1.000000e-24 : f32
    %565 = vector.broadcast %cst_132 : f32 to vector<2x1xf32>
    %566 = arith.maximumf %564, %565 : vector<2x1xf32>
    %567 = math.rsqrt %566 : vector<2x1xf32>
    %568 = vector.broadcast %567 : vector<2x1xf32> to vector<2x32xf32>
    %569 = arith.mulf %552, %568 : vector<2x32xf32>
    %cst_133 = arith.constant dense<0.000000e+00> : vector<2x16xf32>
    %570 = tpu.matmul %569, %561, %cst_133 {dimension_numbers = #tpu.dot_dimension_numbers<[1], [1], [0], [0], [0, 0, 1, 0], [], []>} : vector<2x32xf32>, vector<16x32xf32>, vector<2x16xf32> -> vector<2x16xf32>
    %cst_134 = arith.constant 1.000000e+02 : f32
    %571 = vector.broadcast %cst_134 : f32 to vector<2x16xf32>
    %572 = arith.mulf %570, %571 : vector<2x16xf32>
    %573 = arith.mulf %542, %542 : vector<2x32xf32>
    %cst_135 = arith.constant dense<0.000000e+00> : vector<2xf32>
    %574 = vector.multi_reduction <add>, %573, %cst_135 [1] : vector<2x32xf32> to vector<2xf32>
    %575 = vector.shape_cast %574 : vector<2xf32> to vector<2x1xf32>
    %cst_136 = arith.constant 1.000000e-24 : f32
    %576 = vector.broadcast %cst_136 : f32 to vector<2x1xf32>
    %577 = arith.maximumf %575, %576 : vector<2x1xf32>
    %578 = math.rsqrt %577 : vector<2x1xf32>
    %579 = vector.broadcast %578 : vector<2x1xf32> to vector<2x32xf32>
    %580 = arith.mulf %542, %579 : vector<2x32xf32>
    %cst_137 = arith.constant dense<0.000000e+00> : vector<2x16xf32>
    %581 = tpu.matmul %580, %561, %cst_137 {dimension_numbers = #tpu.dot_dimension_numbers<[1], [1], [0], [0], [0, 0, 1, 0], [], []>} : vector<2x32xf32>, vector<16x32xf32>, vector<2x16xf32> -> vector<2x16xf32>
    %cst_138 = arith.constant 1.000000e+01 : f32
    %582 = vector.broadcast %cst_138 : f32 to vector<2x16xf32>
    %583 = arith.mulf %581, %582 : vector<2x16xf32>
    %c0_139 = arith.constant 0 : index
    %c0_140 = arith.constant 0 : index
    %584 = vector.load %arg17[%c0_139, %c0_140] : memref<2x64xf32, #tpu.memory_space<vmem>>, vector<2x16xf32>
    tpu.vector_store %arg17[%c0_139, %c0_140], %572 {strides = array<i32>} : memref<2x64xf32, #tpu.memory_space<vmem>>, vector<2x16xf32>,
    %c0_141 = arith.constant 0 : index
    %c16 = arith.constant 16 : index
    %585 = vector.load %arg17[%c0_141, %c16] : memref<2x64xf32, #tpu.memory_space<vmem>>, vector<2x16xf32>
    tpu.vector_store %arg17[%c0_141, %c16], %583 {strides = array<i32>} : memref<2x64xf32, #tpu.memory_space<vmem>>, vector<2x16xf32>,
    %c0_142 = arith.constant 0 : index
    %c32 = arith.constant 32 : index
    %586 = vector.load %arg17[%c0_142, %c32] : memref<2x64xf32, #tpu.memory_space<vmem>>, vector<2x32xf32>
    tpu.vector_store %arg17[%c0_142, %c32], %552 {strides = array<i32>} : memref<2x64xf32, #tpu.memory_space<vmem>>, vector<2x32xf32>,
    return
  }
}

module attributes {stable_mosaic.version = 11 : i64} {
  func.func @_mask_logits_kernel(%arg0: memref<128x9xf32, #tpu.memory_space<vmem>>, %arg1: memref<128x9xf32, #tpu.memory_space<vmem>>, %arg2: memref<9x1024xf32, #tpu.memory_space<vmem>>, %arg3: memref<128x1024xf32, #tpu.memory_space<vmem>>, %arg4: memref<128x1024xf32, #tpu.memory_space<vmem>>) attributes {dimension_semantics = [], scalar_prefetch = 0 : i64, scratch_operands = 0 : i64, tpu.core_type = #tpu.core_type<tc>} {
    %c0 = arith.constant 0 : index
    %c0_0 = arith.constant 0 : index
    %0 = vector.load %arg2[%c0, %c0_0] : memref<9x1024xf32, #tpu.memory_space<vmem>>, vector<9x1024xf32>
    %1 = arith.mulf %0, %0 : vector<9x1024xf32>
    %cst = arith.constant dense<0.000000e+00> : vector<1024xf32>
    %2 = vector.multi_reduction <add>, %1, %cst [0] : vector<9x1024xf32> to vector<1024xf32>
    %3 = vector.shape_cast %2 : vector<1024xf32> to vector<1x1024xf32>
    %cst_1 = arith.constant 1.000000e-24 : f32
    %4 = vector.broadcast %cst_1 : f32 to vector<1x1024xf32>
    %5 = arith.maximumf %3, %4 : vector<1x1024xf32>
    %6 = math.rsqrt %5 : vector<1x1024xf32>
    %7 = vector.broadcast %6 : vector<1x1024xf32> to vector<9x1024xf32>
    %8 = arith.mulf %0, %7 : vector<9x1024xf32>
    %9 = arith.truncf %8 : vector<9x1024xf32> to vector<9x1024xbf16>
    %c0_2 = arith.constant 0 : index
    %c0_3 = arith.constant 0 : index
    %10 = vector.load %arg0[%c0_2, %c0_3] : memref<128x9xf32, #tpu.memory_space<vmem>>, vector<128x9xf32>
    %11 = arith.mulf %10, %10 : vector<128x9xf32>
    %cst_4 = arith.constant dense<0.000000e+00> : vector<128xf32>
    %12 = vector.multi_reduction <add>, %11, %cst_4 [1] : vector<128x9xf32> to vector<128xf32>
    %13 = vector.shape_cast %12 : vector<128xf32> to vector<128x1xf32>
    %cst_5 = arith.constant 1.000000e-24 : f32
    %14 = vector.broadcast %cst_5 : f32 to vector<128x1xf32>
    %15 = arith.maximumf %13, %14 : vector<128x1xf32>
    %16 = math.rsqrt %15 : vector<128x1xf32>
    %17 = vector.broadcast %16 : vector<128x1xf32> to vector<128x9xf32>
    %18 = arith.mulf %10, %17 : vector<128x9xf32>
    %19 = arith.truncf %18 : vector<128x9xf32> to vector<128x9xbf16>
    %c0_6 = arith.constant 0 : index
    %c0_7 = arith.constant 0 : index
    %20 = vector.load %arg1[%c0_6, %c0_7] : memref<128x9xf32, #tpu.memory_space<vmem>>, vector<128x9xf32>
    %21 = arith.mulf %20, %20 : vector<128x9xf32>
    %cst_8 = arith.constant dense<0.000000e+00> : vector<128xf32>
    %22 = vector.multi_reduction <add>, %21, %cst_8 [1] : vector<128x9xf32> to vector<128xf32>
    %23 = vector.shape_cast %22 : vector<128xf32> to vector<128x1xf32>
    %cst_9 = arith.constant 1.000000e-24 : f32
    %24 = vector.broadcast %cst_9 : f32 to vector<128x1xf32>
    %25 = arith.maximumf %23, %24 : vector<128x1xf32>
    %26 = math.rsqrt %25 : vector<128x1xf32>
    %27 = vector.broadcast %26 : vector<128x1xf32> to vector<128x9xf32>
    %28 = arith.mulf %20, %27 : vector<128x9xf32>
    %29 = arith.truncf %28 : vector<128x9xf32> to vector<128x9xbf16>
    %cst_10 = arith.constant dense<0.000000e+00> : vector<128x1024xf32>
    %30 = tpu.matmul %19, %9, %cst_10 {dimension_numbers = #tpu.dot_dimension_numbers<[1], [0], [0], [1], [0, 0, 1, 1], [], []>} : vector<128x9xbf16>, vector<9x1024xbf16>, vector<128x1024xf32> -> vector<128x1024xf32>
    %cst_11 = arith.constant 1.000000e+02 : f32
    %31 = vector.broadcast %cst_11 : f32 to vector<128x1024xf32>
    %32 = arith.mulf %30, %31 : vector<128x1024xf32>
    %c0_12 = arith.constant 0 : index
    %c0_13 = arith.constant 0 : index
    %33 = vector.load %arg3[%c0_12, %c0_13] : memref<128x1024xf32, #tpu.memory_space<vmem>>, vector<128x1024xf32>
    tpu.vector_store %arg3[%c0_12, %c0_13], %32 {strides = array<i32>} : memref<128x1024xf32, #tpu.memory_space<vmem>>, vector<128x1024xf32>,
    %cst_14 = arith.constant dense<0.000000e+00> : vector<128x1024xf32>
    %34 = tpu.matmul %29, %9, %cst_14 {dimension_numbers = #tpu.dot_dimension_numbers<[1], [0], [0], [1], [0, 0, 1, 1], [], []>} : vector<128x9xbf16>, vector<9x1024xbf16>, vector<128x1024xf32> -> vector<128x1024xf32>
    %cst_15 = arith.constant 1.000000e+01 : f32
    %35 = vector.broadcast %cst_15 : f32 to vector<128x1024xf32>
    %36 = arith.mulf %34, %35 : vector<128x1024xf32>
    %c0_16 = arith.constant 0 : index
    %c0_17 = arith.constant 0 : index
    %37 = vector.load %arg4[%c0_16, %c0_17] : memref<128x1024xf32, #tpu.memory_space<vmem>>, vector<128x1024xf32>
    tpu.vector_store %arg4[%c0_16, %c0_17], %36 {strides = array<i32>} : memref<128x1024xf32, #tpu.memory_space<vmem>>, vector<128x1024xf32>,
    return
  }
}

</mosaic_0001>

<bundles_post_ra>
// kernel: isd_forward.2
= control target key start
LH: loop header
LB: loop body
LE: loop exit
PB: predicated region body
PF: predicated region fallthrough
CT: control target
= control target key end

     0   :  { %v3690_v0 = vmov 3   ;;  %v3689_v1 = vmov 0   ;;  %v3688_v5 = vmov 1   ;;  %v3686_v6 = vmov 4   ;;  %s3660_s1 = inlined_call_operand.vmem [shape: f32[4,6], index: 1, kind: input, shape index: {}]   ;;  %s3661_s0 = inlined_call_operand.vmem [shape: f32[4,256], index: 0, kind: input, shape index: {}]   ;;  %s3662_s3 = inlined_call_operand.vmem [shape: f32[8,512], index: 3, kind: input, shape index: {}]   ;;  %s3663_s2 = inlined_call_operand.vmem [shape: f32[256,144], index: 2, kind: input, shape index: {}]   ;;  %s3664_s6 = inlined_call_operand.vmem [shape: f32[256,256], index: 6, kind: input, shape index: {}]   ;;  %s3665_s4 = inlined_call_operand.vmem [shape: f32[8,256], index: 4, kind: input, shape index: {}]   ;;  %s3666_s14 = inlined_call_operand.vmem [shape: f32[16,256], index: 14, kind: output, shape index: {0}]   ;;  %s3667_s5 = inlined_call_operand.vmem [shape: f32[4,256], index: 5, kind: input, shape index: {}]   ;;  %s3668_s12 = inlined_call_operand.vmem [shape: f32[1,1024], index: 12, kind: input, shape index: {}]   ;;  %s3669_s7 = inlined_call_operand.vmem [shape: f32[256,32], index: 7, kind: input, shape index: {}]   ;;  %s3670_s13 = inlined_call_operand.vmem [shape: f32[16,32], index: 13, kind: input, shape index: {}]   ;;  %s3671_s8 = inlined_call_operand.vmem [shape: f32[256,256], index: 8, kind: input, shape index: {}]   ;;  %s3672_s10 = inlined_call_operand.vmem [shape: f32[32,32], index: 10, kind: input, shape index: {}]   ;;  %s3673_s16 = inlined_call_operand.vmem [shape: f32[2,4,144], index: 16, kind: output, shape index: {2}]   ;;  %s3674_s11 = inlined_call_operand.vmem [shape: f32[32,32], index: 11, kind: input, shape index: {}]   ;;  %s3675_s9 = inlined_call_operand.vmem [shape: f32[256,32], index: 9, kind: input, shape index: {}]   ;;  %s3676_s15 = inlined_call_operand.vmem [shape: f32[2,4,144], index: 15, kind: output, shape index: {1}]   ;;  %s3677_s17 = inlined_call_operand.vmem [shape: f32[2,64], index: 17, kind: output, shape index: {3}]  }
   0x1   :  { %3703 = sst [smem:[#allocation10_spill]] %s3660_s1  ;;  %1854 = vset.pattern.permute.xlu2 %v3690_v0  ;;  %1853 = vset.pattern.permute.xlu1 %v3689_v1  ;;  %vm559_vm0 = vcmask 1043456   ;;  %v3679_v16 = vmov 5   ;;  %v2078_v17 = vld [vmem:[%s3662_s3] sm:$0xff]  ;;  %v2086_v18 = vld [vmem:[%s3662_s3 + $0x8] sm:$0xf] }
   0x2   :  { %3704 = sst [smem:[#allocation11_spill]] %s3661_s0  ;;  %v183_v19 = vld [vmem:[%s3663_s2 + $0xf0] sm:$0xff]  ;;  %v184_v21 = vld [vmem:[%s3663_s2 + $0xf8] sm:$0xff]  ;;  %v181_v23 = vld [vmem:[%s3663_s2 + $0xe0] sm:$0xff]  ;;  %v3685_v29 = vmov 6   ;;  %v3683_v43 = vmov 7  }
   0x3   :  { %s3705_s26 = sld [smem:[#allocation10_spill]]  ;;  %v215_v20 = vld [vmem:[%s3663_s2 + $0x1f0] sm:$0xff]  ;;  %222 = vmatpush.msra.mxu0 %v183_v19  ;;  %v216_v22 = vld [vmem:[%s3663_s2 + $0x1f8] sm:$0xff]  ;;  %262 = vmatpush.msra.mxu2 %v184_v21  ;;  %v213_v24 = vld [vmem:[%s3663_s2 + $0x1e0] sm:$0xff]  ;;  %v3694_v60 = vmov 2   ;;  %vm1390_vm2 = vcmask 261120  }
   0x4   :  { %s3706_s29 = sld [smem:[#allocation11_spill]]  ;;  %242 = vmatpush.msra.mxu1 %v215_v20  ;;  %282 = vmatpush.msra.mxu3 %v216_v22  ;;  %v182_v25 = vld [vmem:[%s3663_s2 + $0xe8] sm:$0xff]  ;;  %v179_v27 = vld [vmem:[%s3663_s2 + $0xd0] sm:$0xff]  ;;  %v180_v30 = vld [vmem:[%s3663_s2 + $0xd8] sm:$0xff]  ;;  %vm562_vm6 = vcmask 130052   ;;  %vm1712_vm8 = vcmask 254976  }
   0x5   :  { %223 = vmatpush.msra.mxu0 %v181_v23  ;;  %v214_v26 = vld [vmem:[%s3663_s2 + $0x1e8] sm:$0xff]  ;;  %263 = vmatpush.msra.mxu2 %v182_v25  ;;  %v211_v28 = vld [vmem:[%s3663_s2 + $0x1d0] sm:$0xff]  ;;  %v212_v31 = vld [vmem:[%s3663_s2 + $0x1d8] sm:$0xff] }
   0x6   :  { %243 = vmatpush.msra.mxu1 %v213_v24  ;;  %283 = vmatpush.msra.mxu3 %v214_v26  ;;  %v177_v32 = vld [vmem:[%s3663_s2 + $0xc0] sm:$0xff]  ;;  %v178_v34 = vld [vmem:[%s3663_s2 + $0xc8] sm:$0xff]  ;;  %v175_v36 = vld [vmem:[%s3663_s2 + $0xb0] sm:$0xff] }
   0x7   :  { %v209_v33 = vld [vmem:[%s3663_s2 + $0x1c0] sm:$0xff]  ;;  %224 = vmatpush.msra.mxu0 %v179_v27  ;;  %v210_v35 = vld [vmem:[%s3663_s2 + $0x1c8] sm:$0xff]  ;;  %264 = vmatpush.msra.mxu2 %v180_v30  ;;  %v207_v37 = vld [vmem:[%s3663_s2 + $0x1b0] sm:$0xff] }
   0x8   :  { %244 = vmatpush.msra.mxu1 %v211_v28  ;;  %284 = vmatpush.msra.mxu3 %v212_v31  ;;  %v176_v38 = vld [vmem:[%s3663_s2 + $0xb8] sm:$0xff]  ;;  %v173_v40 = vld [vmem:[%s3663_s2 + $0xa0] sm:$0xff]  ;;  %v2160_v41 = vld [vmem:[%s3662_s3 + $0x10] sm:$0xf] }
   0x9   :  { %v75_v2 = vld [vmem:[%s3705_s26] sm:$0xf]  ;;  %225 = vmatpush.msra.mxu0 %v177_v32  ;;  %v208_v39 = vld [vmem:[%s3663_s2 + $0x1b8] sm:$0xff]  ;;  %265 = vmatpush.msra.mxu2 %v178_v34  ;;  %v174_v44 = vld [vmem:[%s3663_s2 + $0xa8] sm:$0xff] }
   0xa   :  { %90 = vperm.xlu2 %1854, %v75_v2   ;;  %84 = vperm.xlu1 %1853, %v75_v2   ;;  %v2052_v3 = vld [vmem:[%s3706_s29] sm:$0xff]  ;;  %v206_v45 = vld [vmem:[%s3663_s2 + $0x1a8] sm:$0xff]  ;;  %v171_v46 = vld [vmem:[%s3663_s2 + $0x90] sm:$0xff] }
   0xb   :  { %217 = vst [vmem:[#allocation1] ss:$2 sm:$0xff] %v2052_v3  ;;  %v103_v4 = vld [vmem:[%s3705_s26] sm:$0xf]  ;;  %245 = vmatpush.msra.mxu1 %v209_v33  ;;  %285 = vmatpush.msra.mxu3 %v210_v35  ;;  %v203_v47 = vld [vmem:[%s3663_s2 + $0x190] sm:$0xff]  ;;  %v172_v48 = vld [vmem:[%s3663_s2 + $0x98] sm:$0xff] }
   0xc   :  { %v125_v9 = vld [vmem:[%s3705_s26] sm:$0xf]  ;;  %226 = vmatpush.msra.mxu0 %v175_v36  ;;  %266 = vmatpush.msra.mxu2 %v176_v38  ;;  %v204_v49 = vld [vmem:[%s3663_s2 + $0x198] sm:$0xff]  ;;  %v170_v52 = vld [vmem:[%s3663_s2 + $0x88] sm:$0xff] }
   0xd   :  { %v302_v15 = vld [vmem:[%s3705_s26] sm:$0xf]  ;;  %246 = vmatpush.msra.mxu1 %v207_v37  ;;  %286 = vmatpush.msra.mxu3 %v208_v39  ;;  %v202_v53 = vld [vmem:[%s3663_s2 + $0x188] sm:$0xff]  ;;  %v167_v54 = vld [vmem:[%s3663_s2 + $0x70] sm:$0xff] }
   0xe   :  { %v205_v42 = vld [vmem:[%s3663_s2 + $0x1a0] sm:$0xff]  ;;  %227 = vmatpush.msra.mxu0 %v173_v40  ;;  %267 = vmatpush.msra.mxu2 %v174_v44  ;;  %v199_v55 = vld [vmem:[%s3663_s2 + $0x170] sm:$0xff]  ;;  %v168_v56 = vld [vmem:[%s3663_s2 + $0x78] sm:$0xff] }
   0xf   :  { %247 = vmatpush.msra.mxu1 %v205_v42  ;;  %287 = vmatpush.msra.mxu3 %v206_v45  ;;  %v169_v50 = vld [vmem:[%s3663_s2 + $0x80] sm:$0xff]  ;;  %v200_v57 = vld [vmem:[%s3663_s2 + $0x178] sm:$0xff]  ;;  %v166_v61 = vld [vmem:[%s3663_s2 + $0x68] sm:$0xff] }
  0x10   :  { %v201_v51 = vld [vmem:[%s3663_s2 + $0x180] sm:$0xff]  ;;  %228 = vmatpush.msra.mxu0 %v171_v46  ;;  %268 = vmatpush.msra.mxu2 %v172_v48  ;;  %v198_v62 = vld [vmem:[%s3663_s2 + $0x168] sm:$0xff]  ;;  %v163_v63 = vld [vmem:[%s3663_s2 + $0x50] sm:$0xff] }
  0x11   :  { %248 = vmatpush.msra.mxu1 %v203_v47  ;;  %288 = vmatpush.msra.mxu3 %v204_v49  ;;  %v165_v58 = vld [vmem:[%s3663_s2 + $0x60] sm:$0xff]  ;;  %v195_v2 = vld [vmem:[%s3663_s2 + $0x150] sm:$0xff]  ;;  %v160_v20 = vld [vmem:[%s3663_s2 + $0x38] sm:$0xff] }
  0x12   :  { %1855 = vset.pattern.permute.xlu2 %v3688_v5  ;;  %1856 = vset.pattern.permute.xlu1 %v3686_v6  ;;  %v2060_v7 = vld.sshfl [vmem:[#allocation1] sm:$0xff pattern:$0x75316420]  ;;  %v2062_v8 = vld.sshfl [vmem:[#allocation1 + $0x8] sm:$0xff pattern:$0x75316420]  ;;  %vm3159_vm7 = vmor %vm562_vm6, %vm559_vm0 }
  0x13   :  { %112 = vperm.xlu2 %1855, %v103_v4   ;;  %118 = vperm.xlu1 %1856, %v103_v4   ;;  %1103 = vst [vmem:[#allocation1] ss:$2 sm:$0xff] %v2052_v3  ;;  %v197_v59 = vld [vmem:[%s3663_s2 + $0x160] sm:$0xff]  ;;  %v164_v4 = vld [vmem:[%s3663_s2 + $0x58] sm:$0xff]  ;;  %v191_v19 = vld [vmem:[%s3663_s2 + $0x130] sm:$0xff] }
  0x14   :  { %229 = vmatpush.msra.mxu0 %v169_v50  ;;  %249 = vmatpush.msra.mxu1 %v201_v51  ;;  %v192_v21 = vld [vmem:[%s3663_s2 + $0x138] sm:$0xff]  ;;  %v157_v22 = vld [vmem:[%s3663_s2 + $0x20] sm:$0xff]  ;;  %v158_v24 = vld [vmem:[%s3663_s2 + $0x28] sm:$0xff] }
  0x15   :  { %269 = vmatpush.msra.mxu2 %v170_v52  ;;  %289 = vmatpush.msra.mxu3 %v202_v53  ;;  %v189_v23 = vld [vmem:[%s3663_s2 + $0x120] sm:$0xff]  ;;  %v190_v25 = vld [vmem:[%s3663_s2 + $0x128] sm:$0xff]  ;;  %v155_v26 = vld [vmem:[%s3663_s2 + $0x10] sm:$0xff] }
  0x16   :  { %230 = vmatpush.msra.mxu0 %v167_v54  ;;  %250 = vmatpush.msra.mxu1 %v199_v55  ;;  %v187_v27 = vld [vmem:[%s3663_s2 + $0x110] sm:$0xff]  ;;  %v156_v28 = vld [vmem:[%s3663_s2 + $0x18] sm:$0xff]  ;;  %v153_v31 = vld [vmem:[%s3663_s2] sm:$0xff] }
  0x17   :  { %270 = vmatpush.msra.mxu2 %v168_v56  ;;  %290 = vmatpush.msra.mxu3 %v200_v57  ;;  %v188_v30 = vld [vmem:[%s3663_s2 + $0x118] sm:$0xff]  ;;  %v185_v32 = vld [vmem:[%s3663_s2 + $0x100] sm:$0xff]  ;;  %v154_v33 = vld [vmem:[%s3663_s2 + $0x8] sm:$0xff] }
  0x18   :  { %231 = vmatpush.msra.mxu0 %v165_v58  ;;  %251 = vmatpush.msra.mxu1 %v197_v59  ;;  %v186_v34 = vld [vmem:[%s3663_s2 + $0x108] sm:$0xff]  ;;  %v1186_v35 = vld [vmem:[%s3664_s6 + $0xf0] sm:$0xff]  ;;  %v1187_v37 = vld [vmem:[%s3664_s6 + $0xf8] sm:$0xff] }
  0x19   :  { %271 = vmatpush.msra.mxu2 %v166_v61  ;;  %291 = vmatpush.msra.mxu3 %v198_v62  ;;  %v1218_v36 = vld [vmem:[%s3664_s6 + $0x1f0] sm:$0xff]  ;;  %v1219_v38 = vld [vmem:[%s3664_s6 + $0x1f8] sm:$0xff]  ;;  %v1184_v39 = vld [vmem:[%s3664_s6 + $0xe0] sm:$0xff] }
  0x1a   :  { %v1104_v10 = vld.sshfl [vmem:[#allocation1] sm:$0xff pattern:$0x75316420]  ;;  %v1105_v11 = vld.sshfl [vmem:[#allocation1 + $0x8] sm:$0xff pattern:$0x75316420]  ;;  %232 = vmatpush.msra.mxu0 %v163_v63  ;;  %252 = vmatpush.msra.mxu1 %v195_v2 }
  0x1b   :  { %134 = vperm.xlu2 %1855, %v125_v9   ;;  %140 = vperm.xlu1 %1856, %v125_v9   ;;  %v1108_v12 = vsel %vm559_vm0, %v1104_v10, 0.0  ;;  %v1109_v13 = vsel %vm559_vm0, %v1105_v11, 0.0  ;;  %v196_v9 = vld [vmem:[%s3663_s2 + $0x158] sm:$0xff]  ;;  %v161_v10 = vld [vmem:[%s3663_s2 + $0x40] sm:$0xff]  ;;  %v1185_v42 = vld [vmem:[%s3664_s6 + $0xe8] sm:$0xff] }
  0x1c   :  { %v1110_v14 = vadd.f32 %v1109_v13, %v1108_v12  ;;  %v193_v11 = vld [vmem:[%s3663_s2 + $0x140] sm:$0xff]  ;;  %v162_v12 = vld [vmem:[%s3663_s2 + $0x48] sm:$0xff]  ;;  %272 = vmatpush.msra.mxu2 %v164_v4  ;;  %292 = vmatpush.msra.mxu3 %v196_v9  ;;  %v1182_v45 = vld [vmem:[%s3664_s6 + $0xd0] sm:$0xff] }
  0x1d   :  { %v194_v13 = vld [vmem:[%s3663_s2 + $0x148] sm:$0xff]  ;;  %233 = vmatpush.msra.mxu0 %v161_v10  ;;  %253 = vmatpush.msra.mxu1 %v193_v11  ;;  %v1216_v40 = vld [vmem:[%s3664_s6 + $0x1e0] sm:$0xff]  ;;  %v1214_v46 = vld [vmem:[%s3664_s6 + $0x1d0] sm:$0xff] }
  0x1e   :  { %1111 = vadd.xlane.f32.xlu0 %v1110_v14  ;;  %v159_v14 = vld [vmem:[%s3663_s2 + $0x30] sm:$0xff]  ;;  %273 = vmatpush.msra.mxu2 %v162_v12  ;;  %v1217_v44 = vld [vmem:[%s3664_s6 + $0x1e8] sm:$0xff]  ;;  %v1183_v48 = vld [vmem:[%s3664_s6 + $0xd8] sm:$0xff] }
  0x1f   :  { %293 = vmatpush.msra.mxu3 %v194_v13  ;;  %234 = vmatpush.msra.mxu0 %v159_v14  ;;  %v1215_v49 = vld [vmem:[%s3664_s6 + $0x1d8] sm:$0xff]  ;;  %v1180_v50 = vld [vmem:[%s3664_s6 + $0xc0] sm:$0xff]  ;;  %v1181_v53 = vld [vmem:[%s3664_s6 + $0xc8] sm:$0xff] }
  0x20   :  { %254 = vmatpush.msra.mxu1 %v191_v19  ;;  %274 = vmatpush.msra.mxu2 %v160_v20  ;;  %v2356_v51 = vld [vmem:[%s3665_s4] sm:$0xff]  ;;  %v1213_v54 = vld [vmem:[%s3664_s6 + $0x1c8] sm:$0xff]  ;;  %v1178_v55 = vld [vmem:[%s3664_s6 + $0xb0] sm:$0xff] }
  0x21   :  { %294 = vmatpush.msra.mxu3 %v192_v21  ;;  %235 = vmatpush.msra.mxu0 %v157_v22  ;;  %v1212_v52 = vld [vmem:[%s3664_s6 + $0x1c0] sm:$0xff]  ;;  %v1210_v56 = vld [vmem:[%s3664_s6 + $0x1b0] sm:$0xff]  ;;  %v1179_v57 = vld [vmem:[%s3664_s6 + $0xb8] sm:$0xff] }
  0x22   :  { %255 = vmatpush.msra.mxu1 %v189_v23  ;;  %275 = vmatpush.msra.mxu2 %v158_v24  ;;  %v1211_v58 = vld [vmem:[%s3664_s6 + $0x1b8] sm:$0xff]  ;;  %v1176_v59 = vld [vmem:[%s3664_s6 + $0xa0] sm:$0xff]  ;;  %v1177_v62 = vld [vmem:[%s3664_s6 + $0xa8] sm:$0xff] }
  0x23   :  { %1857 = vset.pattern.permute.xlu2 %v3689_v1  ;;  %1858 = vset.pattern.permute.xlu1 %v3679_v16  ;;  %v1208_v61 = vld [vmem:[%s3664_s6 + $0x1a0] sm:$0xff]  ;;  %v1209_v63 = vld [vmem:[%s3664_s6 + $0x1a8] sm:$0xff]  ;;  %v1174_v4 = vld [vmem:[%s3664_s6 + $0x90] sm:$0xff] }
  0x24   :  { %307 = vperm.xlu2 %1857, %v302_v15   ;;  %327 = vperm.xlu1 %1858, %v302_v15   ;;  %v2257_v15 = vld [vmem:[%s3662_s3 + $0x18] sm:$0xf]  ;;  %v1206_v9 = vld [vmem:[%s3664_s6 + $0x190] sm:$0xff]  ;;  %v1172_v12 = vld [vmem:[%s3664_s6 + $0x80] sm:$0xff] }
  0x25   :  { %295 = vmatpush.msra.mxu3 %v190_v25  ;;  %236 = vmatpush.msra.mxu0 %v155_v26  ;;  %v1175_v10 = vld [vmem:[%s3664_s6 + $0x98] sm:$0xff]  ;;  %v1204_v13 = vld [vmem:[%s3664_s6 + $0x180] sm:$0xff]  ;;  %v1173_v14 = vld [vmem:[%s3664_s6 + $0x88] sm:$0xff]  ;;  %v76_v25 = vperm.slane %v2052_v3, 1  ;;  %v77_v26 = vperm.slane %v2052_v3, 5 }
  0x26   :  { %256 = vmatpush.msra.mxu1 %v187_v27  ;;  %276 = vmatpush.msra.mxu2 %v156_v28  ;;  %v1207_v11 = vld [vmem:[%s3664_s6 + $0x198] sm:$0xff]  ;;  %v1205_v19 = vld [vmem:[%s3664_s6 + $0x188] sm:$0xff]  ;;  %v1170_v20 = vld [vmem:[%s3664_s6 + $0x70] sm:$0xff] }
  0x27   :  { %296 = vmatpush.msra.mxu3 %v188_v30  ;;  %237 = vmatpush.msra.mxu0 %v153_v31  ;;  %v1202_v21 = vld [vmem:[%s3664_s6 + $0x170] sm:$0xff]  ;;  %v1171_v22 = vld [vmem:[%s3664_s6 + $0x78] sm:$0xff]  ;;  %v1168_v27 = vld [vmem:[%s3664_s6 + $0x60] sm:$0xff]  ;;  %v1950_v30 = vmov 256.0  }
  0x28   :  { %257 = vmatpush.msra.mxu1 %v185_v32  ;;  %277 = vmatpush.msra.mxu2 %v154_v33  ;;  %v1203_v23 = vld [vmem:[%s3664_s6 + $0x178] sm:$0xff]  ;;  %v1200_v28 = vld [vmem:[%s3664_s6 + $0x160] sm:$0xff]  ;;  %1928 = vrcp.f32 %v1950_v30  ;;  %v1169_v31 = vld [vmem:[%s3664_s6 + $0x68] sm:$0xff] }
  0x29   :  { %297 = vmatpush.msra.mxu3 %v186_v34  ;;  %1226 = vmatpush.msrb.mxu0 %v1186_v35  ;;  %v1201_v32 = vld [vmem:[%s3664_s6 + $0x168] sm:$0xff]  ;;  %v1166_v33 = vld [vmem:[%s3664_s6 + $0x50] sm:$0xff]  ;;  %v80_v34 = vperm.slane %v76_v25, 1  ;;  %v81_v35 = vperm.slane %v77_v26, 1 }
  0x2a   :  { %1246 = vmatpush.msrb.mxu1 %v1218_v36  ;;  %1266 = vmatpush.msrb.mxu2 %v1187_v37  ;;  %v2459_v36 = vld [vmem:[%s3665_s4 + $0x8] sm:$0xf]  ;;  %v104_v37 = vperm.slane %v2052_v3, 2  ;;  %v1158_v25 = vld [vmem:[%s3664_s6 + $0x10] sm:$0xff] }
  0x2b   :  { %1286 = vmatpush.msrb.mxu3 %v1219_v38  ;;  %1227 = vmatpush.msrb.mxu0 %v1184_v39  ;;  %v105_v38 = vperm.slane %v2052_v3, 6  ;;  %v1198_v39 = vld [vmem:[%s3664_s6 + $0x150] sm:$0xff] }
  0x2c   :  { %335 = vperm.xlu2 %1857, %v2078_v17   ;;  %1859 = vset.pattern.permute.xlu1 %v3688_v5  ;;  %v1190_v26 = vld [vmem:[%s3664_s6 + $0x110] sm:$0xff] }
  0x2d   :  { %349 = vperm.xlu1 %1859, %v2078_v17   ;;  %1247 = vmatpush.msrb.mxu1 %v1216_v40  ;;  %v1167_v40 = vld [vmem:[%s3664_s6 + $0x58] sm:$0xff] }
  0x2e   :  { %1267 = vmatpush.msrb.mxu2 %v1185_v42  ;;  %1287 = vmatpush.msrb.mxu3 %v1217_v44  ;;  %v1199_v42 = vld [vmem:[%s3664_s6 + $0x158] sm:$0xff]  ;;  %v2473_v44 = vpop.eup %1928 }
  0x2f   :  { %1228 = vmatpush.msrb.mxu0 %v1182_v45  ;;  %1248 = vmatpush.msrb.mxu1 %v1214_v46  ;;  %v3680_v45 = vmov 8   ;;  %v1164_v46 = vld [vmem:[%s3664_s6 + $0x40] sm:$0xff]  ;;  %vm1118_vm1 = vweird.f32 %v2473_v44 }
  0x30   :  { %1268 = vmatpush.msrb.mxu2 %v1183_v48  ;;  %1288 = vmatpush.msrb.mxu3 %v1215_v49  ;;  %v1196_v48 = vld [vmem:[%s3664_s6 + $0x140] sm:$0xff] }
  0x31   :  { %1229 = vmatpush.msrb.mxu0 %v1180_v50  ;;  %1249 = vmatpush.msrb.mxu1 %v1212_v52  ;;  %v1165_v50 = vld [vmem:[%s3664_s6 + $0x48] sm:$0xff] }
  0x32   :  { %1269 = vmatpush.msrb.mxu2 %v1181_v53  ;;  %1289 = vmatpush.msrb.mxu3 %v1213_v54  ;;  %v1197_v52 = vld [vmem:[%s3664_s6 + $0x148] sm:$0xff] }
  0x33   :  { %1230 = vmatpush.msrb.mxu0 %v1178_v55  ;;  %1250 = vmatpush.msrb.mxu1 %v1210_v56  ;;  %v108_v55 = vperm.slane %v104_v37, 2  ;;  %v109_v56 = vperm.slane %v105_v38, 2  ;;  %v1157_v37 = vld [vmem:[%s3664_s6 + $0x8] sm:$0xff] }
  0x34   :  { %381 = vperm.xlu2 %1857, %v2086_v18   ;;  %1270 = vmatpush.msrb.mxu2 %v1179_v57  ;;  %v1189_v38 = vld [vmem:[%s3664_s6 + $0x108] sm:$0xff] }
  0x35   :  { %395 = vperm.xlu1 %1859, %v2086_v18   ;;  %1290 = vmatpush.msrb.mxu3 %v1211_v58  ;;  %v1114_v58 = vmul.f32 256.0, %v2473_v44 }
  0x36   :  { %1231 = vmatpush.msrb.mxu0 %v1176_v59  ;;  %1251 = vmatpush.msrb.mxu1 %v1208_v61 }
  0x37   :  { %1271 = vmatpush.msrb.mxu2 %v1177_v62  ;;  %1291 = vmatpush.msrb.mxu3 %v1209_v63  ;;  %v1162_v62 = vld [vmem:[%s3664_s6 + $0x30] sm:$0xff] }
  0x38   :  { %1232 = vmatpush.msrb.mxu0 %v1174_v4  ;;  %1252 = vmatpush.msrb.mxu1 %v1206_v9  ;;  %v1194_v63 = vld [vmem:[%s3664_s6 + $0x130] sm:$0xff]  ;;  %v1163_v4 = vld [vmem:[%s3664_s6 + $0x38] sm:$0xff] }
  0x39   :  { %1272 = vmatpush.msrb.mxu2 %v1175_v10  ;;  %1292 = vmatpush.msrb.mxu3 %v1207_v11 }
  0x3a   :  { %1233 = vmatpush.msrb.mxu0 %v1172_v12  ;;  %1253 = vmatpush.msrb.mxu1 %v1204_v13  ;;  %v126_v12 = vperm.slane %v2052_v3, 3  ;;  %v127_v13 = vperm.slane %v2052_v3, 7 }
  0x3b   :  { %1273 = vmatpush.msrb.mxu2 %v1173_v14  ;;  %1293 = vmatpush.msrb.mxu3 %v1205_v19  ;;  %v1195_v14 = vld [vmem:[%s3664_s6 + $0x138] sm:$0xff]  ;;  %v1115_v19 = vsub.f32 1.0, %v1114_v58 }
  0x3c   :  { %1861 = vset.pattern.permute.xlu2 %v3686_v6  ;;  %1234 = vmatpush.msrb.mxu0 %v1170_v20  ;;  %v1193_v20 = vld [vmem:[%s3664_s6 + $0x128] sm:$0xff] }
  0x3d   :  { %425 = vperm.xlu2 %1861, %v2086_v18   ;;  %1863 = vset.pattern.permute.xlu1 %v3685_v29 }
  0x3e   :  { %445 = vperm.xlu1 %1863, %v2086_v18   ;;  %1254 = vmatpush.msrb.mxu1 %v1202_v21 }
  0x3f   :  { %1274 = vmatpush.msrb.mxu2 %v1171_v22  ;;  %1294 = vmatpush.msrb.mxu3 %v1203_v23  ;;  %v130_v22 = vperm.slane %v126_v12, 3  ;;  %v131_v23 = vperm.slane %v127_v13, 3 }
  0x40   :  { %1235 = vmatpush.msrb.mxu0 %v1168_v27  ;;  %1255 = vmatpush.msrb.mxu1 %v1200_v28 }
  0x41   :  { %1275 = vmatpush.msrb.mxu2 %v1169_v31  ;;  %1295 = vmatpush.msrb.mxu3 %v1201_v32  ;;  %v1116_v31 = vmul.f32 %v2473_v44, %v1115_v19  ;;  %v1159_v32 = vld [vmem:[%s3664_s6 + $0x18] sm:$0xff] }
  0x42   :  { %1236 = vmatpush.msrb.mxu0 %v1166_v33  ;;  %1256 = vmatpush.msrb.mxu1 %v1198_v39  ;;  %v1191_v33 = vld [vmem:[%s3664_s6 + $0x118] sm:$0xff] }
  0x43   :  { %1276 = vmatpush.msrb.mxu2 %v1167_v40  ;;  %1296 = vmatpush.msrb.mxu3 %v1199_v42  ;;  %v1117_v42 = vadd.f32 %v2473_v44, %v1116_v31 }
  0x44   :  { %1237 = vmatpush.msrb.mxu0 %v1164_v46  ;;  %1257 = vmatpush.msrb.mxu1 %v1196_v48  ;;  %v2576_v46 = vld [vmem:[%s3705_s26] sm:$0xf] }
  0x45   :  { %1864 = vset.pattern.permute.xlu2 %v3683_v43  ;;  %1277 = vmatpush.msrb.mxu2 %v1165_v50  ;;  %v1831_v48 = vld [vmem:[%s3667_s5 + $0x2] ss:$4 sm:$0x3]  ;;  %v1830_v50 = vld [vmem:[%s3667_s5 + $0x1] ss:$4 sm:$0x3] }
  0x46   :  { %455 = vperm.xlu2 %1864, %v2086_v18   ;;  %1865 = vset.pattern.permute.xlu1 %v3689_v1  ;;  %v1142_v58 = vperm.slane %v1831_v48, 1 }
  0x47   :  { %467 = vperm.xlu1 %1865, %v2160_v41   ;;  %1297 = vmatpush.msrb.mxu3 %v1197_v52 }
  0x48   :  { %238 = vmatmul.f32.vlgmr.msra.gmra.mxu0 %v2060_v7  ;;  %258 = vmatmul.f32.vlgmr.msra.gmra.mxu1 %v2062_v8 }
  0x49   :  { %278 = vmatmul.f32.vlgmr.msra.gmra.mxu2 %v2060_v7  ;;  %298 = vmatmul.f32.vlgmr.msra.gmra.mxu3 %v2062_v8  ;;  %v1160_v7 = vld [vmem:[%s3664_s6 + $0x20] sm:$0xff] }
  0x4a   :  { %1238 = vmatpush.msrb.mxu0 %v1162_v62  ;;  %1258 = vmatpush.msrb.mxu1 %v1194_v63  ;;  %v1192_v8 = vld [vmem:[%s3664_s6 + $0x120] sm:$0xff] }
  0x4b   :  { %1278 = vmatpush.msrb.mxu2 %v1163_v4  ;;  %1298 = vmatpush.msrb.mxu3 %v1195_v14 }
  0x4c   :  { %1239 = vmatpush.msrb.mxu0 %v1160_v7  ;;  %1259 = vmatpush.msrb.mxu1 %v1192_v8 }
  0x4d   :  { %1299 = vmatpush.msrb.mxu3 %v1193_v20  ;;  %1860 = vset.pattern.permute.xlu0 %v3680_v45 }
  0x4e   :  { %1866 = vset.pattern.permute.xlu2 %v3686_v6  ;;  %1240 = vmatpush.msrb.mxu0 %v1158_v25 }
  0x4f   :  { %475 = vperm.xlu2 %1866, %v2160_v41   ;;  %1868 = vset.pattern.permute.xlu1 %v3694_v60 }
  0x50   :  { %491 = vperm.xlu1 %1868, %v2160_v41   ;;  %1260 = vmatpush.msrb.mxu1 %v1190_v26 }
  0x51   :  { %1300 = vmatpush.msrb.mxu3 %v1191_v33  ;;  %389 = vperm.xlu0 %1860, %v2086_v18   ;;  %v2661_v33 = vld [vmem:[%s3670_s13 + $0x8] sm:$0xff] }
  0x53   :  { %1301 = vmatpush.msrb.mxu3 %v1189_v38  ;;  %v1319_v38 = vld [vmem:[%s3669_s7 + $0x68] sm:$0xff] }
  0x57   :  { %1869 = vset.pattern.permute.xlu2 %v3690_v0 }
  0x58   :  { %501 = vperm.xlu2 %1869, %v2160_v41   ;;  %1870 = vset.pattern.permute.xlu1 %v3689_v1 }
  0x59   :  { %513 = vperm.xlu1 %1870, %v2257_v15   ;;  %1862 = vset.pattern.permute.xlu0 %v3679_v16 }
  0x5a   :  { %435 = vperm.xlu0 %1862, %v2086_v18  }
  0x60   :  { %1871 = vset.pattern.permute.xlu2 %v3686_v6 }
  0x61   :  { %521 = vperm.xlu2 %1871, %v2257_v15   ;;  %1872 = vset.pattern.permute.xlu1 %v3694_v60 }
  0x62   :  { %537 = vperm.xlu1 %1872, %v2257_v15   ;;  %1867 = vset.pattern.permute.xlu0 %v3688_v5 }
  0x63   :  { %481 = vperm.xlu0 %1867, %v2160_v41  }
  0x64   :  { %v2342_v47 = vpop.permute.xlu2 %90 }
  0x69   :  { %1873 = vset.pattern.permute.xlu2 %v3690_v0 }
  0x6a   :  { %547 = vperm.xlu2 %1873, %v2257_v15   ;;  %1874 = vset.pattern.permute.xlu1 %v3686_v6 }
  0x6b   :  { %576 = vperm.xlu1 %1874, %v2356_v51   ;;  %527 = vperm.xlu0 %1867, %v2257_v15   ;;  %v1321_v15 = vld [vmem:[%s3669_s7 + $0x78] sm:$0xff] }
  0x6d   :  { %v2395_v2 = vpop.permute.xlu2 %112 }
  0x6e   :  { %v115_v10 = vmul.f32 %v2395_v2, %v108_v55  ;;  %v116_v11 = vmul.f32 %v2395_v2, %v109_v56  ;;  %v1161_v2 = vld [vmem:[%s3664_s6 + $0x28] sm:$0xff]  ;;  %v1119_v55 = vsel %vm1118_vm1, %v2473_v44, %v1117_v42  ;;  %v1141_v56 = vperm.slane %v1831_v48, 0 }
  0x6f   :  { %1279 = vmatpush.msrb.mxu2 %v1161_v2 }
  0x71   :  { %1280 = vmatpush.msrb.mxu2 %v1159_v32 }
  0x72   :  { %1875 = vset.pattern.permute.xlu2 %v3688_v5 }
  0x73   :  { %582 = vperm.xlu2 %1875, %v2356_v51   ;;  %1876 = vset.pattern.permute.xlu1 %v3694_v60 }
  0x74   :  { %592 = vperm.xlu1 %1876, %v2356_v51   ;;  %1281 = vmatpush.msrb.mxu2 %v1157_v37  ;;  %v1320_v37 = vld [vmem:[%s3669_s7 + $0x70] sm:$0xff] }
  0x75   :  { %v2437_v24 = vpop.permute.xlu2 %134  ;;  %1880 = vset.pattern.permute.xlu0 %v3694_v60 }
  0x76   :  { %v137_v39 = vmul.f32 %v2437_v24, %v130_v22  ;;  %v138_v40 = vmul.f32 %v2437_v24, %v131_v23  ;;  %v1121_v24 = vld [vmem:[%s3667_s5] ss:$4 sm:$0x3]  ;;  %638 = vperm.xlu0 %1880, %v2459_v36  }
  0x77   :  { %v1124_v62 = vperm.slane %v1121_v24, 1 }
  0x7b   :  { %1877 = vset.pattern.permute.xlu2 %v3690_v0 }
  0x7c   :  { %602 = vperm.xlu2 %1877, %v2356_v51   ;;  %1878 = vset.pattern.permute.xlu1 %v3680_v45  ;;  %v85_v49 = vpop.permute.xlu1 %84 }
  0x7d   :  { %622 = vperm.xlu1 %1878, %v2459_v36   ;;  %v87_v53 = vmul.f32 %v85_v49, %v80_v34  ;;  %v88_v54 = vmul.f32 %v85_v49, %v81_v35  ;;  %v1156_v34 = vld [vmem:[%s3664_s6] sm:$0xff] }
  0x7e   :  { %v2490_v57 = vpop.permute.xlu2 %307  ;;  %v1188_v35 = vld [vmem:[%s3664_s6 + $0x100] sm:$0xff]  ;;  %1241 = vmatpush.msrb.mxu0 %v1156_v34  ;;  %1884 = vset.pattern.permute.xlu0 %v3683_v43 }
  0x7f   :  { %v93_v59 = vadd.f32 %v2342_v47, %v87_v53  ;;  %v94_v61 = vadd.f32 %v2342_v47, %v88_v54  ;;  %1261 = vmatpush.msrb.mxu1 %v1188_v35  ;;  %688 = vperm.xlu0 %1884, %v2459_v36   ;;  %v2666_v34 = vld [vmem:[%s3705_s26] sm:$0xf]  ;;  %v1680_v35 = vmul.f32 %v2661_v33, %v2661_v33 }
  0x80   :  { %1342 = vmatpush.msra.mxu0 %v1321_v15  ;;  %v1327_v15 = vld [vmem:[%s3669_s7 + $0xa8] sm:$0xff] }
  0x81   :  { %v97_v9 = vrot.slane %v93_v59, 4  ;;  %v98_v47 = vrot.slane %v94_v61, 4  ;;  %v1832_v59 = vld [vmem:[%s3667_s5 + $0x3] ss:$4 sm:$0x3]  ;;  %v1123_v61 = vperm.slane %v1121_v24, 0 }
  0x82   :  { %v1150_v44 = vperm.slane %v1832_v59, 0  ;;  %v1151_v12 = vperm.slane %v1832_v59, 1  ;;  %1343 = vmatpush.msra.mxu0 %v1320_v37  ;;  %v1684_v48 = vsel %vm1390_vm2, %v1680_v35, 0.0  ;;  %v1317_v24 = vld [vmem:[%s3669_s7 + $0x58] sm:$0xff]  ;;  %v1307_v35 = vld [vmem:[%s3669_s7 + $0x8] sm:$0xff]  ;;  %v1326_v37 = vld [vmem:[%s3669_s7 + $0xa0] sm:$0xff] }
  0x83   :  { %101 = vst [vmem:[%s3666_s14] sm:$0xf0] %v97_v9  ;;  %v1333_v59 = vld [vmem:[%s3669_s7 + $0xd8] sm:$0xff] }
  0x84   :  { %1879 = vset.pattern.permute.xlu2 %v3688_v5  ;;  %102 = vst [vmem:[%s3666_s14 + $0x8] sm:$0xf0] %v98_v47  ;;  %v1132_v47 = vperm.slane %v1830_v50, 0  ;;  %1344 = vmatpush.msra.mxu0 %v1319_v38  ;;  %v1306_v38 = vld [vmem:[%s3669_s7] sm:$0xff] }
  0x85   :  { %628 = vperm.xlu2 %1879, %v2459_v36   ;;  %1882 = vset.pattern.permute.xlu1 %v3679_v16  ;;  %v119_v21 = vpop.permute.xlu1 %118 }
  0x86   :  { %668 = vperm.xlu1 %1882, %v2459_v36   ;;  %v121_v27 = vadd.f32 %v119_v21, %v115_v10  ;;  %v122_v28 = vadd.f32 %v119_v21, %v116_v11  ;;  %v2543_v30 = vpop.permute.xlu2 %335  ;;  %v1133_v11 = vperm.slane %v1830_v50, 1  ;;  %v1316_v50 = vld [vmem:[%s3669_s7 + $0x50] sm:$0xff] }
  0x87   :  { %1885 = vset.pattern.permute.xlu0 %v3689_v1 }
  0x88   :  { %123 = vst [vmem:[%s3666_s14 + $0x10] sm:$0xf] %v121_v27  ;;  %62 = vperm.xlu0 %1885, %v2666_v34  }
  0x89   :  { %124 = vst [vmem:[%s3666_s14 + $0x18] sm:$0xf] %v122_v28 }
  0x8d   :  { %1881 = vset.pattern.permute.xlu2 %v3686_v6  ;;  %v141_v49 = vpop.permute.xlu1 %140 }
  0x8e   :  { %658 = vperm.xlu2 %1881, %v2459_v36   ;;  %1886 = vset.pattern.permute.xlu1 %v3689_v1  ;;  %v143_v52 = vadd.f32 %v141_v49, %v137_v39  ;;  %v144_v53 = vadd.f32 %v141_v49, %v138_v40  ;;  %v2592_v54 = vpop.permute.xlu2 %381  ;;  %v1337_v39 = vld [vmem:[%s3669_s7 + $0xf8] sm:$0xff]  ;;  %v1336_v40 = vld [vmem:[%s3669_s7 + $0xf0] sm:$0xff] }
  0x8f   :  { %708 = vperm.xlu1 %1886, %v2576_v46   ;;  %1362 = vmatpush.msra.mxu1 %v1337_v39  ;;  %v1325_v39 = vld [vmem:[%s3669_s7 + $0x98] sm:$0xff] }
  0x90   :  { %v147_v63 = vrot.slane %v143_v52, 4  ;;  %v148_v4 = vrot.slane %v144_v53, 4  ;;  %v1335_v52 = vld [vmem:[%s3669_s7 + $0xe8] sm:$0xff]  ;;  %568 = vperm.xlu0 %1885, %v2356_v51  }
  0x91   :  { %v1112_v9 = vpop.xlane.xlu0 %1111  ;;  %1363 = vmatpush.msra.mxu1 %v1336_v40  ;;  %v1315_v53 = vld [vmem:[%s3669_s7 + $0x48] sm:$0xff]  ;;  %v1476_v40 = vld [vmem:[%s3671_s8 + $0xf8] sm:$0xff] }
  0x92   :  { %v1120_v10 = vmul.f32 %v1119_v55, %v1112_v9  ;;  %151 = vst [vmem:[%s3666_s14 + $0x10] sm:$0xf0] %v147_v63  ;;  %v1334_v55 = vld [vmem:[%s3669_s7 + $0xe0] sm:$0xff]  ;;  %v1312_v9 = vld [vmem:[%s3669_s7 + $0x30] sm:$0xff] }
  0x93   :  { %152 = vst [vmem:[%s3666_s14 + $0x18] sm:$0xf0] %v148_v4  ;;  %1364 = vmatpush.msra.mxu1 %v1335_v52  ;;  %v1323_v52 = vld [vmem:[%s3669_s7 + $0x88] sm:$0xff] }
  0x94   :  { %v1145_v13 = vmul.f32 %v1141_v56, %v1120_v10  ;;  %v1146_v14 = vmul.f32 %v1142_v58, %v1120_v10  ;;  %v1127_v19 = vmul.f32 %v1123_v61, %v1120_v10  ;;  %v1128_v7 = vmul.f32 %v1124_v62, %v1120_v10  ;;  %v1314_v56 = vld [vmem:[%s3669_s7 + $0x40] sm:$0xff]  ;;  %v1313_v61 = vld [vmem:[%s3669_s7 + $0x38] sm:$0xff]  ;;  %v1332_v62 = vld [vmem:[%s3669_s7 + $0xd0] sm:$0xff] }
  0x95   :  { %v1677_v58 = vld [vmem:[%s3670_s13] sm:$0xff]  ;;  %1365 = vmatpush.msra.mxu1 %v1334_v55  ;;  %v1311_v10 = vld [vmem:[%s3669_s7 + $0x28] sm:$0xff] }
  0x96   :  { %1883 = vset.pattern.permute.xlu2 %v3685_v29  ;;  %v1136_v8 = vadd.f32 %v1132_v47, %v1127_v19  ;;  %v1137_v2 = vadd.f32 %v1133_v11, %v1128_v7  ;;  %v2607_v20 = vpop.permute.xlu1 %327  ;;  %v2609_v21 = vadd.f32 %v1150_v44, %v1145_v13  ;;  %v2611_v22 = vadd.f32 %v1151_v12, %v1146_v14  ;;  %v1331_v47 = vld [vmem:[%s3669_s7 + $0xc8] sm:$0xff]  ;;  %v1330_v11 = vld [vmem:[%s3669_s7 + $0xc0] sm:$0xff]  ;;  %v1329_v13 = vld [vmem:[%s3669_s7 + $0xb8] sm:$0xff] }
  0x97   :  { %678 = vperm.xlu2 %1883, %v2459_v36   ;;  %1888 = vset.pattern.permute.xlu1 %v3694_v60  ;;  %v2615_v23 = vpop.permute.xlu2 %425  ;;  %v1679_v63 = vmul.f32 %v1677_v58, %v1677_v58  ;;  %v1310_v12 = vld [vmem:[%s3669_s7 + $0x20] sm:$0xff]  ;;  %v1309_v14 = vld [vmem:[%s3669_s7 + $0x18] sm:$0xff]  ;;  %v1328_v19 = vld [vmem:[%s3669_s7 + $0xb0] sm:$0xff] }
  0x98   :  { %1242 = vmatmul.f32.vlgmr.msrb.gmra.mxu0 %v1136_v8  ;;  %1262 = vmatmul.f32.vlgmr.msrb.gmra.mxu1 %v1137_v2  ;;  %v1322_v55 = vld [vmem:[%s3669_s7 + $0x80] sm:$0xff]  ;;  %v1468_v58 = vld [vmem:[%s3671_s8 + $0xb8] sm:$0xff] }
  0x99   :  { %1282 = vmatmul.f32.vlgmr.msrb.gmra.mxu2 %v1136_v8  ;;  %1302 = vmatmul.f32.vlgmr.msrb.gmra.mxu3 %v1137_v2  ;;  %v1681_v44 = vsel %vm1390_vm2, %v1679_v63, 0.0  ;;  %v1308_v2 = vld [vmem:[%s3669_s7 + $0x10] sm:$0xff]  ;;  %v1938_v63 = vld [vmem:[%s3705_s26] sm:$0xf] }
  0x9a   :  { %722 = vperm.xlu1 %1888, %v2576_v46   ;;  %1366 = vmatpush.msra.mxu1 %v1333_v59  ;;  %v1506_v59 = vld [vmem:[%s3671_s8 + $0x1e8] sm:$0xff] }
  0x9b   :  { %614 = vperm.xlu0 %1885, %v2459_v36  }
  0x9c   :  { %1367 = vmatpush.msra.mxu1 %v1332_v62  ;;  %v1504_v62 = vld [vmem:[%s3671_s8 + $0x1d8] sm:$0xff] }
  0x9e   :  { %1368 = vmatpush.msra.mxu1 %v1331_v47  ;;  %v1502_v47 = vld [vmem:[%s3671_s8 + $0x1c8] sm:$0xff] }
  0x9f   :  { %1887 = vset.pattern.permute.xlu2 %v3690_v0  ;;  %v2621_v25 = vpop.permute.xlu1 %349 }
  0xa0   :  { %714 = vperm.xlu2 %1887, %v2576_v46   ;;  %v2624_v26 = vpop.permute.xlu2 %455  ;;  %1369 = vmatpush.msra.mxu1 %v1330_v11 }
  0xa2   :  { %1890 = vset.pattern.permute.xlu1 %v3686_v6  ;;  %1370 = vmatpush.msra.mxu1 %v1329_v13  ;;  %v1460_v13 = vld [vmem:[%s3671_s8 + $0x78] sm:$0xff] }
  0xa3   :  { %744 = vperm.xlu1 %1890, %v2078_v17  }
  0xa4   :  { %1371 = vmatpush.msra.mxu1 %v1328_v19  ;;  %v1458_v19 = vld [vmem:[%s3671_s8 + $0x68] sm:$0xff] }
  0xa6   :  { %1372 = vmatpush.msra.mxu1 %v1327_v15  ;;  %v2850_v15 = vld [vmem:[%s3662_s3] sm:$0xff] }
  0xa7   :  { %v2630_v27 = vpop.permute.xlu1 %395 }
  0xa8   :  { %1889 = vset.pattern.permute.xlu2 %v3679_v16  ;;  %1373 = vmatpush.msra.mxu1 %v1326_v37  ;;  %v1494_v37 = vld [vmem:[%s3671_s8 + $0x188] sm:$0xff] }
  0xa9   :  { %728 = vperm.xlu2 %1889, %v2576_v46   ;;  %v2634_v18 = vpop.permute.xlu2 %475  ;;  %v1318_v46 = vld [vmem:[%s3669_s7 + $0x60] sm:$0xff] }
  0xaa   :  { %3707 = vst [vmem:[#allocation2_spill] sm:$0xff] %v2634_v18  ;;  %1345 = vmatpush.msra.mxu0 %v1318_v46  ;;  %v1324_v46 = vld [vmem:[%s3669_s7 + $0x90] sm:$0xff]  ;;  %1374 = vmatpush.msra.mxu1 %v1325_v39  ;;  %v1454_v39 = vld [vmem:[%s3671_s8 + $0x48] sm:$0xff] }
  0xab   :  { %1892 = vset.pattern.permute.xlu1 %v3690_v0 }
  0xac   :  { %1346 = vmatpush.msra.mxu0 %v1317_v24  ;;  %1375 = vmatpush.msra.mxu1 %v1324_v46 }
  0xae   :  { %1347 = vmatpush.msra.mxu0 %v1316_v50  ;;  %1376 = vmatpush.msra.mxu1 %v1323_v52  ;;  %v1490_v52 = vld [vmem:[%s3671_s8 + $0x168] sm:$0xff] }
  0xb0   :  { %v2638_v28 = vpop.permute.xlu1 %445  ;;  %1348 = vmatpush.msra.mxu0 %v1315_v53  ;;  %v1472_v53 = vld [vmem:[%s3671_s8 + $0xd8] sm:$0xff]  ;;  %1377 = vmatpush.msra.mxu1 %v1322_v55 }
  0xb1   :  { %1891 = vset.pattern.permute.xlu2 %v3688_v5  ;;  %v1488_v55 = vld [vmem:[%s3671_s8 + $0x158] sm:$0xff] }
  0xb2   :  { %750 = vperm.xlu2 %1891, %v2078_v17   ;;  %v2642_v31 = vpop.permute.xlu2 %501  ;;  %1349 = vmatpush.msra.mxu0 %v1314_v56  ;;  %v1508_v56 = vld [vmem:[%s3671_s8 + $0x1f8] sm:$0xff] }
  0xb3   :  { %3708 = vst [vmem:[#allocation3_spill] sm:$0xff] %v2642_v31  ;;  %1581 = vmatpush.msrb.mxu1 %v1508_v56 }
  0xb4   :  { %1350 = vmatpush.msra.mxu0 %v1313_v61  ;;  %v1466_v61 = vld [vmem:[%s3671_s8 + $0xa8] sm:$0xff] }
  0xb5   :  { %1582 = vmatpush.msrb.mxu1 %v1506_v59 }
  0xb6   :  { %1351 = vmatpush.msra.mxu0 %v1312_v9  ;;  %v1464_v9 = vld [vmem:[%s3671_s8 + $0x98] sm:$0xff] }
  0xb7   :  { %1583 = vmatpush.msrb.mxu1 %v1504_v62  ;;  %v1486_v62 = vld [vmem:[%s3671_s8 + $0x148] sm:$0xff] }
  0xb8   :  { %1352 = vmatpush.msra.mxu0 %v1311_v10 }
  0xb9   :  { %v2646_v41 = vpop.permute.xlu1 %467  ;;  %1584 = vmatpush.msrb.mxu1 %v1502_v47  ;;  %v1484_v47 = vld [vmem:[%s3671_s8 + $0x138] sm:$0xff] }
  0xba   :  { %1893 = vset.pattern.permute.xlu2 %v3694_v60  ;;  %1353 = vmatpush.msra.mxu0 %v1310_v12  ;;  %v1500_v12 = vld [vmem:[%s3671_s8 + $0x1b8] sm:$0xff] }
  0xbb   :  { %v2653_v32 = vpop.permute.xlu2 %521  ;;  %1585 = vmatpush.msrb.mxu1 %v1500_v12 }
  0xbc   :  { %3709 = vst [vmem:[#allocation4_spill] sm:$0xff] %v2653_v32  ;;  %1354 = vmatpush.msra.mxu0 %v1309_v14  ;;  %v1498_v14 = vld [vmem:[%s3671_s8 + $0x1a8] sm:$0xff] }
  0xbd   :  { %1586 = vmatpush.msrb.mxu1 %v1498_v14 }
  0xbe   :  { %1355 = vmatpush.msra.mxu0 %v1308_v2  ;;  %v1496_v2 = vld [vmem:[%s3671_s8 + $0x198] sm:$0xff] }
  0xbf   :  { %1587 = vmatpush.msrb.mxu1 %v1496_v2 }
  0xc0   :  { %1356 = vmatpush.msra.mxu0 %v1307_v35  ;;  %v1456_v35 = vld [vmem:[%s3671_s8 + $0x58] sm:$0xff] }
  0xc1   :  { %1588 = vmatpush.msrb.mxu1 %v1494_v37  ;;  %v1480_v37 = vld [vmem:[%s3671_s8 + $0x118] sm:$0xff] }
  0xc2   :  { %v2656_v17 = vpop.permute.xlu1 %491  ;;  %1357 = vmatpush.msra.mxu0 %v1306_v38 }
  0xc4   :  { %v2684_v42 = vpop.permute.xlu2 %547  ;;  %1561 = vmatpush.msrb.mxu0 %v1476_v40  ;;  %v1492_v40 = vld [vmem:[%s3671_s8 + $0x178] sm:$0xff] }
  0xc5   :  { %3710 = vst [vmem:[#allocation5_spill] sm:$0xff] %v2684_v42  ;;  %1589 = vmatpush.msrb.mxu1 %v1492_v40  ;;  %v239_v56 = vpop.f32.mrf.mxu0  ;;  %v1478_v40 = vld [vmem:[%s3671_s8 + $0x108] sm:$0xff] }
  0xc7   :  { %1590 = vmatpush.msrb.mxu1 %v1490_v52 }
  0xc9   :  { %1591 = vmatpush.msrb.mxu1 %v1488_v55 }
  0xcb   :  { %v2693_v49 = vpop.permute.xlu1 %513  ;;  %1592 = vmatpush.msrb.mxu1 %v1486_v62 }
  0xcc   :  { %3711 = vst [vmem:[#allocation6_spill] sm:$0xff] %v2693_v49  ;;  %v299_v2 = vpop.f32.mrf.mxu3 }
  0xcd   :  { %1685 = vadd.xlane.f32.xlu1 %v1684_v48  ;;  %v2717_v51 = vpop.permute.xlu2 %582  ;;  %v1474_v48 = vld [vmem:[%s3671_s8 + $0xe8] sm:$0xff]  ;;  %1593 = vmatpush.msrb.mxu1 %v1484_v47 }
  0xce   :  { %1562 = vmatpush.msrb.mxu0 %v1474_v48  ;;  %v1452_v48 = vld [vmem:[%s3671_s8 + $0x38] sm:$0xff]  ;;  %v2931_v47 = vld [vmem:[%s3662_s3 + $0x8] sm:$0xf] }
  0xd0   :  { %1563 = vmatpush.msrb.mxu0 %v1472_v53  ;;  %v1450_v53 = vld [vmem:[%s3671_s8 + $0x28] sm:$0xff] }
  0xd4   :  { %v2725_v4 = vpop.permute.xlu1 %537 }
  0xd5   :  { %3712 = vst [vmem:[#allocation7_spill] sm:$0xff] %v2725_v4 }
  0xd6   :  { %v2753_v7 = vpop.permute.xlu2 %602 }
  0xdb   :  { %1682 = vadd.xlane.f32.xlu2 %v1681_v44  ;;  %v1462_v44 = vld [vmem:[%s3671_s8 + $0x88] sm:$0xff] }
  0xdd   :  { %v2755_v8 = vpop.permute.xlu1 %576 }
  0xdf   :  { %v2785_v24 = vpop.permute.xlu2 %628 }
  0xe6   :  { %68 = vperm.xlu1 %1892, %v2666_v34   ;;  %v2787_v50 = vpop.permute.xlu1 %592  ;;  %v1470_v34 = vld [vmem:[%s3671_s8 + $0xc8] sm:$0xff] }
  0xe7   :  { %1564 = vmatpush.msrb.mxu0 %v1470_v34  ;;  %v1940_v34 = vld [vmem:[%s3662_s3 + $0x8] sm:$0xf] }
  0xe8   :  { %v2827_v11 = vpop.permute.xlu2 %658 }
  0xe9   :  { %1565 = vmatpush.msrb.mxu0 %v1468_v58  ;;  %v259_v58 = vpop.f32.mrf.mxu1 }
  0xea   :  { %v2885_v59 = vadd.f32 %v259_v58, %v239_v56 }
  0xeb   :  { %1566 = vmatpush.msrb.mxu0 %v1466_v61  ;;  %v1448_v61 = vld [vmem:[%s3671_s8 + $0x18] sm:$0xff] }
  0xec   :  { %v719_v52 = vperm.slane %v2885_v59, 3 }
  0xed   :  { %1567 = vmatpush.msrb.mxu0 %v1464_v9  ;;  %v1446_v9 = vld [vmem:[%s3671_s8 + $0x8] sm:$0xff] }
  0xee   :  { %313 = vperm.xlu1 %1892, %v1938_v63  }
  0xef   :  { %v2825_v10 = vpop.permute.xlu1 %622  ;;  %1568 = vmatpush.msrb.mxu0 %v1462_v44 }
  0xf1   :  { %1569 = vmatpush.msrb.mxu0 %v1460_v13  ;;  %v2867_v46 = vpop.permute.xlu2 %678  ;;  %v1482_v13 = vld [vmem:[%s3671_s8 + $0x128] sm:$0xff] }
  0xf2   :  { %1594 = vmatpush.msrb.mxu1 %v1482_v13 }
  0xf3   :  { %321 = vperm.xlu2 %1893, %v1938_v63   ;;  %1570 = vmatpush.msrb.mxu0 %v1458_v19  ;;  %v704_v63 = vperm.slane %v2885_v59, 1  ;;  %v279_v19 = vpop.f32.mrf.mxu2 }
  0xf4   :  { %1595 = vmatpush.msrb.mxu1 %v1480_v37 }
  0xf5   :  { %1571 = vmatpush.msrb.mxu0 %v1456_v35 }
  0xf6   :  { %369 = vperm.xlu1 %1892, %v2850_v15   ;;  %1596 = vmatpush.msrb.mxu1 %v1478_v40 }
  0xf7   :  { %1572 = vmatpush.msrb.mxu0 %v1454_v39  ;;  %v2909_v39 = vadd.f32 %v299_v2, %v279_v19 }
  0xf8   :  { %v2859_v38 = vpop.permute.xlu1 %668 }
  0xf9   :  { %1573 = vmatpush.msrb.mxu0 %v1452_v48  ;;  %v705_v48 = vperm.slane %v2909_v39, 1  ;;  %v319_v4 = vperm.slane %v2909_v39, 2 }
  0xfa   :  { %v715_v14 = vpop.permute.xlu2 %714 }
  0xfb   :  { %359 = vperm.xlu2 %1893, %v2850_v15   ;;  %1574 = vmatpush.msrb.mxu0 %v1450_v53  ;;  %v720_v53 = vperm.slane %v2909_v39, 3 }
  0xfd   :  { %1575 = vmatpush.msrb.mxu0 %v1448_v61 }
  0xfe   :  { %415 = vperm.xlu1 %1892, %v1940_v34  }
  0xff   :  { %1576 = vmatpush.msrb.mxu0 %v1446_v9  ;;  %v1220_v9 = vld [vmem:[%s3668_s12] sm:$0x3] }
 0x100   :  { %v1223_v37 = vperm.slane %v1220_v9, 1 }
 0x101   :  { %v709_v44 = vpop.permute.xlu1 %708 }
 0x102   :  { %v711_v12 = vmul.f32 %v709_v44, %v704_v63  ;;  %v712_v55 = vmul.f32 %v709_v44, %v705_v48  ;;  %v1222_v44 = vperm.slane %v1220_v9, 0 }
 0x103   :  { %405 = vperm.xlu2 %1893, %v1940_v34   ;;  %v729_v61 = vpop.permute.xlu2 %728 }
 0x104   :  { %v2903_v35 = vadd.f32 %v715_v14, %v711_v12  ;;  %v2935_v12 = vpop.permute.xlu0 %389 }
 0x106   :  { %648 = vperm.xlu1 %1892, %v2459_v36   ;;  %v2918_v36 = vadd.f32 %v715_v14, %v712_v55 }
 0x10b   :  { %760 = vperm.xlu2 %1893, %v2850_v15  }
 0x10c   :  { %v723_v34 = vpop.permute.xlu1 %722 }
 0x10d   :  { %v725_v56 = vmul.f32 %v723_v34, %v719_v52  ;;  %v726_v58 = vmul.f32 %v723_v34, %v720_v53  ;;  %v2941_v53 = vpop.permute.xlu0 %435  ;;  %v3682_v34 = vrot.slane %v2609_v21, 2 }
 0x10e   :  { %770 = vperm.xlu1 %1892, %v2850_v15  }
 0x10f   :  { %v2921_v62 = vadd.f32 %v729_v61, %v725_v56  ;;  %v2923_v63 = vadd.f32 %v729_v61, %v726_v58  ;;  %v3681_v56 = vrot.slane %v2611_v22, 2  ;;  %v2962_v61 = vld [vmem:[%s3662_s3 + $0x10] sm:$0xf] }
 0x113   :  { %1894 = vset.pattern.permute.xlu2 %v3680_v45  ;;  %v55_v45 = vperm.slane %v2052_v3, 4 }
 0x114   :  { %790 = vperm.xlu2 %1894, %v2931_v47  }
 0x115   :  { %v1243_v13 = vpop.f32.mrf.mxu0  ;;  %v1263_v19 = vpop.f32.mrf.mxu1 }
 0x116   :  { %1895 = vset.pattern.permute.xlu1 %v3688_v5  ;;  %v1244_v14 = vadd.f32 %v1243_v13, %v1222_v44  ;;  %v2952_v58 = vpop.permute.xlu0 %481  ;;  %v2969_v44 = vpop.permute.xlu1 %744 }
 0x117   :  { %796 = vperm.xlu1 %1895, %v2931_v47  }
 0x118   :  { %v1264_v2 = vadd.f32 %v1263_v19, %v1244_v14  ;;  %v2979_v14 = vld [vmem:[%s3662_s3 + $0x18] sm:$0xf] }
 0x11a   :  { %1358 = vmatmul.f32.vlgmr.msra.gmra.mxu0 %v1264_v2 }
 0x11c   :  { %v1283_v40 = vpop.f32.mrf.mxu2  ;;  %1896 = vset.pattern.permute.xlu2 %v3694_v60  ;;  %v1303_v52 = vpop.f32.mrf.mxu3 }
 0x11d   :  { %v1284_v48 = vadd.f32 %v1283_v40, %v1223_v37  ;;  %806 = vperm.xlu2 %1896, %v2931_v47   ;;  %v2985_v37 = vpop.permute.xlu2 %750 }
 0x11e   :  { %v2966_v9 = vpop.permute.xlu0 %527 }
 0x11f   :  { %v1304_v55 = vadd.f32 %v1303_v52, %v1284_v48  ;;  %1897 = vset.pattern.permute.xlu1 %v3690_v0  ;;  %3713 = vst [vmem:[#allocation8_spill] sm:$0xff] %v2966_v9  ;;  %v2994_v52 = vld [vmem:[%s3665_s4] sm:$0xff]  ;;  %v318_v0 = vperm.slane %v2885_v59, 2 }
 0x120   :  { %816 = vperm.xlu1 %1897, %v2931_v47  }
 0x121   :  { %1378 = vmatmul.f32.vlgmr.msra.gmra.mxu1 %v1304_v55 }
 0x122   :  { %1577 = vmatmul.f32.vlgmr.msrb.gmra.mxu0 %v3682_v34 }
 0x125   :  { %1898 = vset.pattern.permute.xlu2 %v3679_v16  ;;  %v54_v16 = vperm.slane %v2052_v3, 0 }
 0x126   :  { %836 = vperm.xlu2 %1898, %v2931_v47   ;;  %v2974_v13 = vpop.permute.xlu0 %638 }
 0x128   :  { %1899 = vset.pattern.permute.xlu1 %v3685_v29 }
 0x129   :  { %846 = vperm.xlu1 %1899, %v2931_v47   ;;  %1597 = vmatmul.f32.vlgmr.msrb.gmra.mxu1 %v3681_v56 }
 0x12e   :  { %1900 = vset.pattern.permute.xlu2 %v3683_v43  ;;  %v2987_v40 = vpop.permute.xlu0 %688 }
 0x12f   :  { %856 = vperm.xlu2 %1900, %v2931_v47  }
 0x131   :  { %1901 = vset.pattern.permute.xlu1 %v3689_v1 }
 0x132   :  { %868 = vperm.xlu1 %1901, %v2962_v61  }
 0x136   :  { %v63_v43 = vpop.permute.xlu0 %62 }
 0x137   :  { %1902 = vset.pattern.permute.xlu2 %v3688_v5 }
 0x138   :  { %882 = vperm.xlu2 %1902, %v2962_v61  }
 0x13a   :  { %1903 = vset.pattern.permute.xlu1 %v3694_v60 }
 0x13b   :  { %892 = vperm.xlu1 %1903, %v2962_v61  }
 0x140   :  { %1906 = vset.pattern.permute.xlu2 %v3689_v1  ;;  %v1686_v19 = vpop.xlane.xlu1 %1685 }
 0x141   :  { %914 = vperm.xlu2 %1906, %v2979_v14   ;;  %v1688_v2 = vmax.f32 %v1686_v19, 1e-24 }
 0x143   :  { %1907 = vset.pattern.permute.xlu1 %v3686_v6  ;;  %1930 = vrsqrt.f32 %v1688_v2  ;;  %vm1705_vm3 = vweird.f32 %v1688_v2  ;;  %v58_v6 = vperm.slane %v54_v16, 0 }
 0x144   :  { %922 = vperm.xlu1 %1907, %v2979_v14  }
 0x145   :  { %v65_v42 = vmul.f32 %v63_v43, %v58_v6 }
 0x149   :  { %1908 = vset.pattern.permute.xlu2 %v3688_v5  ;;  %v1931_v48 = vpop.eup %1930  ;;  %v59_v5 = vperm.slane %v55_v45, 0 }
 0x14a   :  { %928 = vperm.xlu2 %1908, %v2979_v14   ;;  %v1700_v55 = vmul.f32 %v1931_v48, %v1688_v2  ;;  %vm1706_vm4 = vweird.f32 %v1931_v48 }
 0x14b   :  { %vm1707_vm5 = vmor %vm1705_vm3, %vm1706_vm4  ;;  %v66_v3 = vmul.f32 %v63_v43, %v59_v5  ;;  %v3714_v43 = vmov 3   ;;  %vm1804_vm4 = vcmask 255104  }
 0x14c   :  { %1909 = vset.pattern.permute.xlu1 %v3689_v1  ;;  %v1701_v19 = vmul.f32 %v1931_v48, %v1700_v55 }
 0x14d   :  { %967 = vperm.xlu1 %1909, %v2994_v52  }
 0x14e   :  { %v3000_v56 = vpop.xlane.xlu2 %1682  ;;  %v1702_v34 = vmul.f32 0.5, %v1701_v19 }
 0x150   :  { %v1703_v29 = vsub.f32 1.5, %v1702_v34 }
 0x152   :  { %981 = vperm.xlu2 %1908, %v2994_v52   ;;  %v1704_v1 = vmul.f32 %v1931_v48, %v1703_v29 }
 0x154   :  { %v1708_v55 = vsel %vm1707_vm5, %v1931_v48, %v1704_v1  ;;  %v569_v48 = vpop.permute.xlu0 %568  ;;  %vm1810_vm5 = vcmask 517376  }
 0x155   :  { %1910 = vset.pattern.permute.xlu1 %v3694_v60  ;;  %v1710_v2 = vmul.f32 %v1708_v55, %v2661_v33  ;;  %v303_v33 = vperm.slane %v2885_v59, 0  ;;  %v304_v55 = vperm.slane %v2909_v39, 0  ;;  %v3025_v39 = vld [vmem:[%s3665_s4 + $0x8] sm:$0xf]  ;;  %v3715_v60 = vmov 0  }
 0x156   :  { %991 = vperm.xlu1 %1910, %v2994_v52   ;;  %v322_v34 = vpop.permute.xlu2 %321 }
 0x157   :  { %v324_v16 = vmul.f32 %v322_v34, %v318_v0  ;;  %v325_v45 = vmul.f32 %v322_v34, %v319_v4  ;;  %1838 = vmatpush.xpose.msk.msra.mxu1 %vm1390_vm2, %v1710_v2  ;;  %1835 = vmatpush.xpose.msk.msra.mxu0 %vm1390_vm2, %v1710_v2 }
 0x158   :  { %v69_v19 = vpop.permute.xlu1 %68 }
 0x159   :  { %v330_v1 = vadd.f32 %v2607_v20, %v324_v16  ;;  %v331_v29 = vadd.f32 %v2607_v20, %v325_v45  ;;  %v71_v6 = vadd.f32 %v69_v19, %v65_v42  ;;  %v72_v5 = vadd.f32 %v69_v19, %v66_v3 }
 0x15a   :  { %1911 = vset.pattern.permute.xlu2 %v3714_v43  ;;  %v310_v19 = vmul.f32 %v2490_v57, %v303_v33 }
 0x15b   :  { %73 = vst [vmem:[%s3666_s14] sm:$0xf] %v71_v6  ;;  %1001 = vperm.xlu2 %1911, %v2994_v52   ;;  %v571_v0 = vperm.slane %v330_v1, 0  ;;  %v572_v4 = vperm.slane %v331_v29, 0  ;;  %v585_v20 = vperm.slane %v330_v1, 1  ;;  %v586_v42 = vperm.slane %v331_v29, 1 }
 0x15c   :  { %74 = vst [vmem:[%s3666_s14 + $0x8] sm:$0xf] %v72_v5  ;;  %v595_v3 = vperm.slane %v330_v1, 2  ;;  %v596_v59 = vperm.slane %v331_v29, 2  ;;  %v605_v16 = vperm.slane %v330_v1, 3  ;;  %v606_v45 = vperm.slane %v331_v29, 3 }
 0x15d   :  { %v573_v2 = vmul.f32 %v571_v0, %v569_v48  ;;  %v574_v34 = vmul.f32 %v572_v4, %v569_v48  ;;  %v311_v6 = vmul.f32 %v2490_v57, %v304_v55  ;;  %v587_v48 = vmul.f32 %v585_v20, %v2717_v51 }
 0x15e   :  { %1912 = vset.pattern.permute.xlu1 %v3715_v60  ;;  %v588_v0 = vmul.f32 %v586_v42, %v2717_v51  ;;  %v597_v4 = vmul.f32 %v595_v3, %v2787_v50  ;;  %v598_v1 = vmul.f32 %v596_v59, %v2787_v50  ;;  %v608_v20 = vmul.f32 %v606_v45, %v2753_v7 }
 0x15f   :  { %v579_v5 = vadd.f32 %v2755_v8, %v573_v2  ;;  %v580_v9 = vadd.f32 %v2755_v8, %v574_v34  ;;  %1013 = vperm.xlu1 %1912, %v3025_v39   ;;  %v607_v8 = vmul.f32 %v605_v16, %v2753_v7  ;;  %v3716_v51 = vmov 1   ;;  %v1385_v7 = vld [vmem:[%s3672_s10 + $0x18] sm:$0xff]  ;;  %v1384_v16 = vld [vmem:[%s3672_s10 + $0x10] sm:$0xff] }
 0x160   :  { %v314_v29 = vpop.permute.xlu1 %313  ;;  %v3717_v45 = vmov 2   ;;  %1406 = vmatpush.msra.mxu2 %v1385_v7  ;;  %v1471_v7 = vld [vmem:[%s3671_s8 + $0xd0] sm:$0xff] }
 0x161   :  { %v589_v33 = vadd.f32 %v587_v48, %v579_v5  ;;  %v590_v32 = vadd.f32 %v588_v0, %v580_v9  ;;  %v3037_v57 = vadd.f32 %v314_v29, %v310_v19  ;;  %v3039_v60 = vadd.f32 %v314_v29, %v311_v6  ;;  %v360_v9 = vpop.permute.xlu2 %359  ;;  %v615_v0 = vpop.permute.xlu0 %614  ;;  %v1382_v29 = vld [vmem:[%s3672_s10] sm:$0xff] }
 0x162   :  { %1407 = vmatpush.msra.mxu2 %v1384_v16  ;;  %v3718_v16 = vmov 4  }
 0x163   :  { %v599_v55 = vadd.f32 %v597_v4, %v589_v33  ;;  %v600_v2 = vadd.f32 %v598_v1, %v590_v32  ;;  %1914 = vset.pattern.permute.xlu2 %v3716_v51  ;;  %v363_v42 = vperm.slane %v3039_v60, 2  ;;  %v372_v59 = vperm.slane %v3037_v57, 3  ;;  %v1383_v1 = vld [vmem:[%s3672_s10 + $0x8] sm:$0xff]  ;;  %v1473_v51 = vld [vmem:[%s3671_s8 + $0xe0] sm:$0xff] }
 0x164   :  { %1027 = vperm.xlu2 %1914, %v3025_v39   ;;  %v373_v32 = vperm.slane %v3039_v60, 3  ;;  %1408 = vmatpush.msra.mxu2 %v1383_v1  ;;  %v1469_v1 = vld [vmem:[%s3671_s8 + $0xc0] sm:$0xff] }
 0x165   :  { %v3046_v50 = vadd.f32 %v607_v8, %v599_v55  ;;  %v3048_v3 = vadd.f32 %v608_v20, %v600_v2  ;;  %v3050_v34 = vmul.f32 %v363_v42, %v360_v9  ;;  %v1475_v55 = vld [vmem:[%s3671_s8 + $0xf0] sm:$0xff]  ;;  %v362_v2 = vperm.slane %v3037_v57, 2 }
 0x166   :  { %1409 = vmatpush.msra.mxu2 %v1382_v29 }
 0x167   :  { %1915 = vset.pattern.permute.xlu1 %v3717_v45  ;;  %v617_v6 = vperm.slane %v3046_v50, 0  ;;  %v618_v4 = vperm.slane %v3048_v3, 0  ;;  %v631_v20 = vperm.slane %v3046_v50, 1  ;;  %v632_v42 = vperm.slane %v3048_v3, 1 }
 0x168   :  { %v370_v19 = vpop.permute.xlu1 %369  ;;  %1037 = vperm.xlu1 %1915, %v3025_v39   ;;  %1521 = vmatpush.msrb.mxu2 %v1475_v55  ;;  %v681_v49 = vperm.slane %v3046_v50, 6  ;;  %v692_v31 = vperm.slane %v3048_v3, 7 }
 0x169   :  { %v3063_v5 = vmul.f32 %v372_v59, %v370_v19  ;;  %v3065_v48 = vmul.f32 %v373_v32, %v370_v19  ;;  %v619_v33 = vmul.f32 %v617_v6, %v615_v0  ;;  %v620_v8 = vmul.f32 %v618_v4, %v615_v0 }
 0x16a   :  { %v3092_v19 = vmul.f32 %v362_v2, %v360_v9  ;;  %1522 = vmatpush.msrb.mxu2 %v1473_v51  ;;  %v633_v0 = vmul.f32 %v631_v20, %v2785_v24  ;;  %v641_v4 = vperm.slane %v3046_v50, 2  ;;  %v634_v29 = vmul.f32 %v632_v42, %v2785_v24  ;;  %v1465_v24 = vld [vmem:[%s3671_s8 + $0xa0] sm:$0xff] }
 0x16b   :  { %v625_v59 = vadd.f32 %v2825_v10, %v619_v33  ;;  %v626_v6 = vadd.f32 %v2825_v10, %v620_v8  ;;  %v642_v33 = vperm.slane %v3048_v3, 2  ;;  %v1467_v10 = vld [vmem:[%s3671_s8 + $0xb0] sm:$0xff]  ;;  %v651_v8 = vperm.slane %v3046_v50, 3 }
 0x16c   :  { %1916 = vset.pattern.permute.xlu2 %v3714_v43  ;;  %1523 = vmatpush.msrb.mxu2 %v1471_v7  ;;  %v643_v2 = vmul.f32 %v641_v4, %v2974_v13  ;;  %v652_v51 = vperm.slane %v3048_v3, 3  ;;  %v661_v42 = vperm.slane %v3046_v50, 4 }
 0x16d   :  { %1047 = vperm.xlu2 %1916, %v3025_v39   ;;  %v635_v9 = vadd.f32 %v633_v0, %v625_v59  ;;  %v636_v55 = vadd.f32 %v634_v29, %v626_v6  ;;  %v644_v20 = vmul.f32 %v642_v33, %v2974_v13  ;;  %v662_v59 = vperm.slane %v3048_v3, 4  ;;  %v1463_v0 = vld [vmem:[%s3671_s8 + $0x90] sm:$0xff] }
 0x16e   :  { %1524 = vmatpush.msrb.mxu2 %v1469_v1  ;;  %v671_v6 = vperm.slane %v3046_v50, 5  ;;  %v672_v13 = vperm.slane %v3048_v3, 5  ;;  %v3719_v33 = vmov 6  }
 0x16f   :  { %v645_v7 = vadd.f32 %v643_v2, %v635_v9  ;;  %v646_v4 = vadd.f32 %v644_v20, %v636_v55  ;;  %v1461_v9 = vld [vmem:[%s3671_s8 + $0x80] sm:$0xff]  ;;  %v663_v55 = vmul.f32 %v661_v42, %v2827_v11  ;;  %v1459_v20 = vld [vmem:[%s3671_s8 + $0x70] sm:$0xff] }
 0x170   :  { %v3086_v32 = vpop.permute.xlu1 %415  ;;  %1917 = vset.pattern.permute.xlu1 %v3718_v16  ;;  %1525 = vmatpush.msrb.mxu2 %v1467_v10  ;;  %v682_v10 = vperm.slane %v3048_v3, 6  ;;  %v694_v3 = vmul.f32 %v692_v31, %v2987_v40 }
 0x171   :  { %1057 = vperm.xlu1 %1917, %v3025_v39  }
 0x172   :  { %1526 = vmatpush.msrb.mxu2 %v1465_v24  ;;  %v673_v24 = vmul.f32 %v671_v6, %v2859_v38  ;;  %v684_v6 = vmul.f32 %v682_v10, %v2867_v46 }
 0x174   :  { %1527 = vmatpush.msrb.mxu2 %v1463_v0  ;;  %v691_v0 = vperm.slane %v3046_v50, 7 }
 0x175   :  { %1919 = vset.pattern.permute.xlu2 %v3717_v45 }
 0x176   :  { %938 = vperm.xlu2 %1919, %v2979_v14   ;;  %1528 = vmatpush.msrb.mxu2 %v1461_v9  ;;  %v1447_v9 = vld [vmem:[%s3671_s8 + $0x10] sm:$0xff] }
 0x178   :  { %v649_v45 = vpop.permute.xlu1 %648  ;;  %1529 = vmatpush.msrb.mxu2 %v1459_v20 }
 0x179   :  { %v653_v1 = vmul.f32 %v651_v8, %v649_v45  ;;  %v654_v29 = vmul.f32 %v652_v51, %v649_v45  ;;  %1920 = vset.pattern.permute.xlu1 %v3719_v33  ;;  %v664_v8 = vmul.f32 %v662_v59, %v2827_v11  ;;  %v674_v33 = vmul.f32 %v672_v13, %v2859_v38  ;;  %v1457_v11 = vld [vmem:[%s3671_s8 + $0x60] sm:$0xff] }
 0x17a   :  { %1077 = vperm.xlu1 %1920, %v3025_v39   ;;  %1530 = vmatpush.msrb.mxu2 %v1457_v11  ;;  %v3721_v13 = vmov 0  ;;  %v1415_v11 = vld [vmem:[%s3674_s11 + $0x8] sm:$0xff] }
 0x17b   :  { %v655_v2 = vadd.f32 %v653_v1, %v645_v7  ;;  %v656_v18 = vadd.f32 %v654_v29, %v646_v4  ;;  %v683_v7 = vmul.f32 %v681_v49, %v2867_v46  ;;  %v1453_v4 = vld [vmem:[%s3671_s8 + $0x40] sm:$0xff]  ;;  %v3720_v1 = vmov 7  }
 0x17c   :  { %v693_v46 = vmul.f32 %v691_v0, %v2987_v40  ;;  %v3722_v13 = vsel %vm3159_vm7, 4294967295, %v3721_v13  ;;  %v1449_v40 = vld [vmem:[%s3671_s8 + $0x20] sm:$0xff] }
 0x17d   :  { %v665_v51 = vadd.f32 %v663_v55, %v655_v2  ;;  %v666_v45 = vadd.f32 %v664_v8, %v656_v18  ;;  %v1455_v18 = vld [vmem:[%s3671_s8 + $0x50] sm:$0xff]  ;;  %3723 = vst [vmem:[#allocation9_spill] sm:$0xff] %v3722_v13  ;;  %v1445_v2 = vld [vmem:[%s3671_s8] sm:$0xff] }
 0x17e   :  { %1921 = vset.pattern.permute.xlu2 %v3714_v43  ;;  %1531 = vmatpush.msrb.mxu2 %v1455_v18  ;;  %v1924_v55 = vld [vmem:[%s3668_s12 + $0x2] ss:$0 sm:$0xff]  ;;  %v1499_v18 = vld [vmem:[%s3671_s8 + $0x1b0] sm:$0xff] }
 0x17f   :  { %v675_v42 = vadd.f32 %v673_v24, %v665_v51  ;;  %v676_v59 = vadd.f32 %v674_v33, %v666_v45  ;;  %948 = vperm.xlu2 %1921, %v2979_v14   ;;  %v1451_v14 = vld [vmem:[%s3671_s8 + $0x30] sm:$0xff]  ;;  %v3724_v45 = vrot.slane %v2609_v21, 2  ;;  %v1417_v33 = vld [vmem:[%s3674_s11 + $0x18] sm:$0xff]  ;;  %v1501_v0 = vld [vmem:[%s3671_s8 + $0x1c0] sm:$0xff] }
 0x180   :  { %1532 = vmatpush.msrb.mxu2 %v1453_v4  ;;  %1437 = vmatpush.msra.mxu3 %v1417_v33  ;;  %v1507_v21 = vld [vmem:[%s3671_s8 + $0x1f0] sm:$0xff]  ;;  %v1614_v33 = vld [vmem:[%s3675_s9 + $0x68] sm:$0xff] }
 0x181   :  { %v685_v49 = vadd.f32 %v683_v7, %v675_v42  ;;  %v686_v38 = vadd.f32 %v684_v6, %v676_v59  ;;  %v1416_v7 = vld [vmem:[%s3674_s11 + $0x10] sm:$0xff]  ;;  %v1414_v42 = vld [vmem:[%s3674_s11] sm:$0xff] }
 0x182   :  { %1922 = vset.pattern.permute.xlu1 %v3720_v1  ;;  %1533 = vmatpush.msrb.mxu2 %v1451_v14  ;;  %v1505_v59 = vld [vmem:[%s3671_s8 + $0x1e0] sm:$0xff]  ;;  %v1503_v6 = vld [vmem:[%s3671_s8 + $0x1d0] sm:$0xff] }
 0x183   :  { %v696_v50 = vadd.f32 %v694_v3, %v686_v38  ;;  %1087 = vperm.xlu1 %1922, %v3025_v39   ;;  %v695_v29 = vadd.f32 %v693_v46, %v685_v49  ;;  %1438 = vmatpush.msra.mxu3 %v1416_v7  ;;  %v1497_v49 = vld [vmem:[%s3671_s8 + $0x1a0] sm:$0xff]  ;;  %v1495_v38 = vld [vmem:[%s3671_s8 + $0x190] sm:$0xff] }
 0x184   :  { %1534 = vmatpush.msrb.mxu2 %v1449_v40  ;;  %v1493_v3 = vld [vmem:[%s3671_s8 + $0x180] sm:$0xff]  ;;  %v1491_v4 = vld [vmem:[%s3671_s8 + $0x170] sm:$0xff] }
 0x185   :  { %v699_v31 = vrot.slane %v696_v50, 4  ;;  %1439 = vmatpush.msra.mxu3 %v1415_v11  ;;  %v1489_v46 = vld [vmem:[%s3671_s8 + $0x160] sm:$0xff]  ;;  %v1487_v50 = vld [vmem:[%s3671_s8 + $0x150] sm:$0xff] }
 0x186   :  { %1535 = vmatpush.msrb.mxu2 %v1447_v9  ;;  %v1485_v14 = vld [vmem:[%s3671_s8 + $0x140] sm:$0xff]  ;;  %v1479_v40 = vld [vmem:[%s3671_s8 + $0x110] sm:$0xff] }
 0x187   :  { %v700_v10 = vsel %vm559_vm0, %v695_v29, %v699_v31  ;;  %1440 = vmatpush.msra.mxu3 %v1414_v42  ;;  %v1483_v29 = vld [vmem:[%s3671_s8 + $0x130] sm:$0xff]  ;;  %v1481_v31 = vld [vmem:[%s3671_s8 + $0x120] sm:$0xff]  ;;  %v1628_v42 = vld [vmem:[%s3675_s9 + $0xd8] sm:$0xff] }
 0x188   :  { %702 = vst.msk [vmem:[%s3673_s16] sm:$0xff] %vm3159_vm7, %v700_v10  ;;  %1536 = vmatpush.msrb.mxu2 %v1445_v2  ;;  %v1477_v10 = vld [vmem:[%s3671_s8 + $0x100] sm:$0xff] }
 0x189   :  { %1541 = vmatpush.msrb.mxu3 %v1507_v21  ;;  %v1925_v9 = vld [vmem:[%s3668_s12 + $0x6] ss:$0 sm:$0xff]  ;;  %v1612_v21 = vld [vmem:[%s3675_s9 + $0x58] sm:$0xff] }
 0x18a   :  { %v1629_v7 = vld [vmem:[%s3675_s9 + $0xe0] sm:$0xff] }
 0x18b   :  { %1542 = vmatpush.msrb.mxu3 %v1505_v59  ;;  %v1613_v11 = vld [vmem:[%s3675_s9 + $0x60] sm:$0xff]  ;;  %v3725_v59 = vrot.slane %v2611_v22, 2 }
 0x18c   :  { %v1625_v22 = vld [vmem:[%s3675_s9 + $0xc0] sm:$0xff] }
 0x18d   :  { %1543 = vmatpush.msrb.mxu3 %v1503_v6  ;;  %v1627_v6 = vld [vmem:[%s3675_s9 + $0xd0] sm:$0xff] }
 0x18f   :  { %1544 = vmatpush.msrb.mxu3 %v1501_v0  ;;  %v1611_v0 = vld [vmem:[%s3675_s9 + $0x50] sm:$0xff] }
 0x191   :  { %1545 = vmatpush.msrb.mxu3 %v1499_v18  ;;  %v1626_v18 = vld [vmem:[%s3675_s9 + $0xc8] sm:$0xff] }
 0x193   :  { %1546 = vmatpush.msrb.mxu3 %v1497_v49  ;;  %v1610_v49 = vld [vmem:[%s3675_s9 + $0x48] sm:$0xff] }
 0x195   :  { %1547 = vmatpush.msrb.mxu3 %v1495_v38  ;;  %v1609_v38 = vld [vmem:[%s3675_s9 + $0x40] sm:$0xff] }
 0x197   :  { %v1359_v8 = vpop.f32.mrf.mxu0  ;;  %1548 = vmatpush.msrb.mxu3 %v1493_v3  ;;  %v1624_v3 = vld [vmem:[%s3675_s9 + $0xb8] sm:$0xff] }
 0x198   :  { %v1360_v24 = vadd.f32 %v1924_v55, %v1359_v8  ;;  %v1632_v8 = vld [vmem:[%s3675_s9 + $0xf8] sm:$0xff] }
 0x199   :  { %1549 = vmatpush.msrb.mxu3 %v1491_v4  ;;  %v1608_v4 = vld [vmem:[%s3675_s9 + $0x38] sm:$0xff] }
 0x19b   :  { %1550 = vmatpush.msrb.mxu3 %v1489_v46  ;;  %v1623_v46 = vld [vmem:[%s3675_s9 + $0xb0] sm:$0xff] }
 0x19d   :  { %1551 = vmatpush.msrb.mxu3 %v1487_v50  ;;  %v1607_v50 = vld [vmem:[%s3675_s9 + $0x30] sm:$0xff] }
 0x19e   :  { %v1379_v20 = vpop.f32.mrf.mxu1 }
 0x19f   :  { %v1380_v51 = vadd.f32 %v1379_v20, %v1360_v24  ;;  %1552 = vmatpush.msrb.mxu3 %v1485_v14  ;;  %v1631_v24 = vld [vmem:[%s3675_s9 + $0xf0] sm:$0xff]  ;;  %v1616_v20 = vld [vmem:[%s3675_s9 + $0x78] sm:$0xff]  ;;  %v1622_v14 = vld [vmem:[%s3675_s9 + $0xa8] sm:$0xff] }
 0x1a1   :  { %1833 = vmatmul.msk.f32.vlgmr.msra.gmra.mxu2 %vm1390_vm2, %v1380_v51  ;;  %1553 = vmatpush.msrb.mxu3 %v1483_v29  ;;  %v1615_v51 = vld [vmem:[%s3675_s9 + $0x70] sm:$0xff]  ;;  %v1621_v29 = vld [vmem:[%s3675_s9 + $0xa0] sm:$0xff] }
 0x1a2   :  { %1637 = vmatpush.msra.mxu2 %v1616_v20  ;;  %v1617_v20 = vld [vmem:[%s3675_s9 + $0x80] sm:$0xff] }
 0x1a3   :  { %1554 = vmatpush.msrb.mxu3 %v1481_v31  ;;  %v1509_v31 = vld [vmem:[%s3668_s12 + $0x3] sm:$0x3] }
 0x1a4   :  { %1638 = vmatpush.msra.mxu2 %v1615_v51 }
 0x1a5   :  { %1555 = vmatpush.msrb.mxu3 %v1479_v40  ;;  %v1620_v40 = vld [vmem:[%s3675_s9 + $0x98] sm:$0xff] }
 0x1a6   :  { %1639 = vmatpush.msra.mxu2 %v1614_v33  ;;  %v1605_v33 = vld [vmem:[%s3675_s9 + $0x20] sm:$0xff] }
 0x1a7   :  { %1556 = vmatpush.msrb.mxu3 %v1477_v10  ;;  %v1512_v10 = vperm.slane %v1509_v31, 1 }
 0x1a8   :  { %1640 = vmatpush.msra.mxu2 %v1613_v11  ;;  %v1603_v11 = vld [vmem:[%s3675_s9 + $0x10] sm:$0xff] }
 0x1a9   :  { %1537 = vmatmul.f32.vlgmr.msrb.gmra.mxu2 %v3724_v45  ;;  %v1630_v45 = vld [vmem:[%s3675_s9 + $0xe8] sm:$0xff] }
 0x1aa   :  { %1641 = vmatpush.msra.mxu2 %v1612_v21  ;;  %v1601_v21 = vld [vmem:[%s3675_s9] sm:$0xff] }
 0x1ac   :  { %1642 = vmatpush.msra.mxu2 %v1611_v0 }
 0x1ae   :  { %1643 = vmatpush.msra.mxu2 %v1610_v49 }
 0x1b0   :  { %1644 = vmatpush.msra.mxu2 %v1609_v38 }
 0x1b2   :  { %1645 = vmatpush.msra.mxu2 %v1608_v4 }
 0x1b4   :  { %1646 = vmatpush.msra.mxu2 %v1607_v50  ;;  %v1687_v50 = vmax.f32 %v3000_v56, 1e-24 }
 0x1b6   :  { %1932 = vrsqrt.f32 %v1687_v50  ;;  %vm1695_vm9 = vweird.f32 %v1687_v50 }
 0x224   :  { %v1411_v2 = vpop.f32.mrf.mxu2 }
 0x225   :  { %v1412_v55 = vadd.f32 %v1925_v9, %v1411_v2  ;;  %v1619_v9 = vld [vmem:[%s3675_s9 + $0x90] sm:$0xff]  ;;  %v1578_v2 = vpop.f32.mrf.mxu0 }
 0x227   :  { %1834 = vmatmul.msk.f32.vlgmr.msra.gmra.mxu3 %vm1390_vm2, %v1412_v55  ;;  %v1618_v55 = vld [vmem:[%s3675_s9 + $0x88] sm:$0xff] }
 0x228   :  { %1657 = vmatpush.msra.mxu3 %v1632_v8  ;;  %v1598_v8 = vpop.f32.mrf.mxu1 }
 0x22a   :  { %1658 = vmatpush.msra.mxu3 %v1631_v24  ;;  %v1579_v24 = vadd.f32 %v1578_v2, %v1512_v10 }
 0x22c   :  { %1659 = vmatpush.msra.mxu3 %v1630_v45  ;;  %v1599_v51 = vadd.f32 %v1598_v8, %v1579_v24  ;;  %v1606_v45 = vld [vmem:[%s3675_s9 + $0x28] sm:$0xff] }
 0x22d   :  { %1647 = vmatpush.msra.mxu2 %v1606_v45 }
 0x22e   :  { %1660 = vmatpush.msra.mxu3 %v1629_v7  ;;  %v1604_v7 = vld [vmem:[%s3675_s9 + $0x18] sm:$0xff] }
 0x22f   :  { %1557 = vmatmul.f32.vlgmr.msrb.gmra.mxu3 %v3725_v59  ;;  %1648 = vmatpush.msra.mxu2 %v1605_v33  ;;  %v1926_v59 = vld [vmem:[%s3668_s12 + $0x7] ss:$0 sm:$0xff] }
 0x230   :  { %1661 = vmatpush.msra.mxu3 %v1628_v42  ;;  %v1602_v42 = vld [vmem:[%s3675_s9 + $0x8] sm:$0xff] }
 0x231   :  { %1649 = vmatpush.msra.mxu2 %v1604_v7 }
 0x232   :  { %1662 = vmatpush.msra.mxu3 %v1627_v6 }
 0x233   :  { %1650 = vmatpush.msra.mxu2 %v1603_v11 }
 0x234   :  { %1663 = vmatpush.msra.mxu3 %v1626_v18  ;;  %v1511_v18 = vperm.slane %v1509_v31, 0 }
 0x235   :  { %1651 = vmatpush.msra.mxu2 %v1602_v42  ;;  %v1927_v42 = vld [vmem:[%s3668_s12 + $0x5] ss:$0 sm:$0xff]  ;;  %s1953_s12 = smov 16  }
 0x236   :  { %1664 = vmatpush.msra.mxu3 %v1625_v22  ;;  %v1538_v22 = vpop.f32.mrf.mxu2 }
 0x237   :  { %1652 = vmatpush.msra.mxu2 %v1601_v21 }
 0x238   :  { %1665 = vmatpush.msra.mxu3 %v1624_v3  ;;  %v1539_v3 = vadd.f32 %v1538_v22, %v1511_v18 }
 0x23a   :  { %1666 = vmatpush.msra.mxu3 %v1623_v46 }
 0x23c   :  { %1667 = vmatpush.msra.mxu3 %v1622_v14  ;;  %v1933_v14 = vpop.eup %1932 }
 0x23d   :  { %vm1696_vm10 = vweird.f32 %v1933_v14 }
 0x23e   :  { %1668 = vmatpush.msra.mxu3 %v1621_v29  ;;  %v1690_v29 = vmul.f32 %v1933_v14, %v1687_v50  ;;  %vm1697_vm11 = vmor %vm1695_vm9, %vm1696_vm10  ;;  %v3727_v50 = vmov 5  }
 0x240   :  { %1669 = vmatpush.msra.mxu3 %v1620_v40  ;;  %v1691_v40 = vmul.f32 %v1933_v14, %v1690_v29 }
 0x242   :  { %1670 = vmatpush.msra.mxu3 %v1619_v9  ;;  %v1692_v10 = vmul.f32 0.5, %v1691_v40 }
 0x244   :  { %1671 = vmatpush.msra.mxu3 %v1618_v55  ;;  %v1693_v9 = vsub.f32 1.5, %v1692_v10  ;;  %v1941_v55 = vld [vmem:[%s3670_s13] sm:$0xff]  ;;  %s1952_s13 = smov 32  }
 0x246   :  { %1672 = vmatpush.msra.mxu3 %v1617_v20  ;;  %v1694_v31 = vmul.f32 %v1933_v14, %v1693_v9 }
 0x247   :  { %1673 = vmatmul.f32.vlgmr.msra.gmra.mxu3 %v1599_v51 }
 0x248   :  { %v1698_v2 = vsel %vm1697_vm11, %v1933_v14, %v1694_v31 }
 0x249   :  { %v1709_v8 = vmul.f32 %v1941_v55, %v1698_v2 }
 0x24b   :  { %1839 = vmatpush.xpose.msk.msra.mxu1 %vm1390_vm2, %v1709_v8  ;;  %1836 = vmatpush.xpose.msk.msra.mxu0 %vm1390_vm2, %v1709_v8 }
 0x2aa   :  { %v1442_v6 = vpop.f32.mrf.mxu3 }
 0x2ab   :  { %v1443_v0 = vadd.f32 %v1926_v59, %v1442_v6 }
 0x2ad   :  { %v1758_v49 = vmul.f32 %v1443_v0, %v1443_v0 }
 0x2af   :  { %v1759_v38 = vsel %vm1712_vm8, %v1758_v49, 0.0 }
 0x2b0   :  { %1760 = vadd.xlane.f32.xlu0 %v1759_v38 }
 0x2b2   :  { %v1558_v4 = vpop.f32.mrf.mxu3 }
 0x2b3   :  { %v1559_v46 = vadd.f32 %v1558_v4, %v1539_v3 }
 0x2b5   :  { %1653 = vmatmul.f32.vlgmr.msra.gmra.mxu2 %v1559_v46  ;;  %v3726_v46 = vmov 8  }
 0x2ca   :  { %v1674_v49 = vpop.f32.mrf.mxu3 }
 0x323   :  { %v1761_v56 = vpop.xlane.xlu0 %1760 }
 0x324   :  { %v1762_v24 = vmax.f32 %v1761_v56, 1e-24 }
 0x326   :  { %1934 = vrsqrt.f32 %v1762_v24  ;;  %vm1769_vm13 = vweird.f32 %v1762_v24 }
 0x32c   :  { %v1935_v20 = vpop.eup %1934 }
 0x32d   :  { %v1764_v51 = vmul.f32 %v1935_v20, %v1762_v24  ;;  %vm1770_vm12 = vweird.f32 %v1935_v20 }
 0x32e   :  { %vm1771_vm14 = vmor %vm1769_vm13, %vm1770_vm12 }
 0x32f   :  { %v1765_v45 = vmul.f32 %v1935_v20, %v1764_v51 }
 0x331   :  { %v1766_v33 = vmul.f32 0.5, %v1765_v45 }
 0x333   :  { %v1767_v7 = vsub.f32 1.5, %v1766_v33 }
 0x335   :  { %v1768_v11 = vmul.f32 %v1935_v20, %v1767_v7 }
 0x337   :  { %v1772_v21 = vsel %vm1771_vm14, %v1935_v20, %v1768_v11  ;;  %v740_v11 = vperm.slane %v2918_v36, 0 }
 0x338   :  { %v1773_v59 = vmul.f32 %v1772_v21, %v1443_v0  ;;  %v1654_v6 = vpop.f32.mrf.mxu2  ;;  %v3372_v0 = vpop.permute.xlu2 %405 }
 0x339   :  { %v1655_v18 = vadd.f32 %v1927_v42, %v1654_v6  ;;  %v739_v42 = vperm.slane %v2903_v35, 0  ;;  %v753_v6 = vperm.slane %v2903_v35, 1 }
 0x33a   :  { %1840 = vmatmul.msk.f32.vlgmr.msra.gmra.mxu1 %vm1390_vm2, %v1773_v59 }
 0x33b   :  { %v1675_v22 = vadd.f32 %v1674_v49, %v1655_v18  ;;  %v754_v18 = vperm.slane %v2918_v36, 1 }
 0x33d   :  { %1807 = vrot.lane.b32.xlu2 %v1675_v22, %s1952_s13  ;;  %v1711_v38 = vmul.f32 %v1675_v22, %v1675_v22 }
 0x33f   :  { %v1713_v3 = vsel %vm1712_vm8, %v1711_v38, 0.0 }
 0x340   :  { %1714 = vadd.xlane.f32.xlu0 %v1713_v3  ;;  %v761_v4 = vpop.permute.xlu2 %760 }
 0x354   :  { %736 = vperm.xlu0 %1885, %v2850_v15  }
 0x35c   :  { %782 = vperm.xlu0 %1885, %v2931_v47  }
 0x364   :  { %1904 = vset.pattern.permute.xlu0 %v3714_v43  ;;  %v3377_v43 = vpop.permute.xlu2 %790 }
 0x365   :  { %902 = vperm.xlu0 %1904, %v2962_v61  }
 0x36d   :  { %1905 = vset.pattern.permute.xlu0 %v3718_v16  ;;  %v3381_v16 = vpop.permute.xlu2 %806 }
 0x36e   :  { %343 = vperm.xlu0 %1905, %v2850_v15   ;;  %v771_v15 = vpop.permute.xlu1 %770 }
 0x376   :  { %826 = vperm.xlu0 %1905, %v2931_v47   ;;  %v3384_v47 = vpop.permute.xlu1 %796 }
 0x37e   :  { %876 = vperm.xlu0 %1905, %v2962_v61   ;;  %v3386_v61 = vpop.permute.xlu2 %836 }
 0x386   :  { %975 = vperm.xlu0 %1905, %v2994_v52   ;;  %v3388_v52 = vpop.permute.xlu1 %816  ;;  %v3390_v14 = vpop.permute.xlu2 %856 }
 0x38e   :  { %1913 = vset.pattern.permute.xlu0 %v3726_v46  ;;  %v3392_v9 = vpop.permute.xlu1 %846  ;;  %v3394_v2 = vpop.permute.xlu2 %882 }
 0x38f   :  { %1021 = vperm.xlu0 %1913, %v3025_v39  }
 0x396   :  { %v3396_v56 = vpop.permute.xlu1 %868  ;;  %v3398_v51 = vpop.permute.xlu2 %914 }
 0x397   :  { %1918 = vset.pattern.permute.xlu0 %v3727_v50  ;;  %v756_v50 = vmul.f32 %v754_v18, %v2985_v37 }
 0x398   :  { %1067 = vperm.xlu0 %1918, %v3025_v39  }
 0x39e   :  { %v3405_v49 = vpop.permute.xlu1 %892 }
 0x3a0   :  { %1923 = vset.pattern.permute.xlu0 %v3720_v1 }
 0x3b3   :  { %v1715_v29 = vpop.xlane.xlu0 %1714 }
 0x3b4   :  { %v1716_v40 = vmax.f32 %v1715_v29, 1e-24  ;;  %v3411_v29 = vpop.permute.xlu2 %928 }
 0x3b6   :  { %1936 = vrsqrt.f32 %v1716_v40  ;;  %vm1723_vm1 = vweird.f32 %v1716_v40 }
 0x3b7   :  { %v1794_v10 = vpop.f32.mrf.mxu1 }
 0x3b8   :  { %v1797_v39 = vmul.f32 10.0, %v1794_v10  ;;  %v764_v10 = vperm.slane %v2918_v36, 2 }
 0x3ba   :  { %1801 = vrot.lane.b32.xlu0 %v1797_v39, %s1953_s12 }
 0x3bc   :  { %v1937_v31 = vpop.eup %1936 }
 0x3bd   :  { %v1718_v1 = vmul.f32 %v1937_v31, %v1716_v40  ;;  %vm1724_vm15 = vweird.f32 %v1937_v31  ;;  %v763_v40 = vperm.slane %v2903_v35, 2 }
 0x3be   :  { %vm1725_vm3 = vmor %vm1723_vm1, %vm1724_vm15 }
 0x3bf   :  { %v1719_v55 = vmul.f32 %v1937_v31, %v1718_v1  ;;  %v765_v1 = vmul.f32 %v763_v40, %v761_v4 }
 0x3c1   :  { %v1720_v8 = vmul.f32 0.5, %v1719_v55  ;;  %v766_v55 = vmul.f32 %v764_v10, %v761_v4  ;;  %v338_v4 = vperm.slane %v3037_v57, 0 }
 0x3c3   :  { %v1721_v24 = vsub.f32 1.5, %v1720_v8  ;;  %v773_v8 = vperm.slane %v2903_v35, 3  ;;  %v353_v35 = vperm.slane %v3039_v60, 1 }
 0x3c5   :  { %v1722_v20 = vmul.f32 %v1937_v31, %v1721_v24  ;;  %v774_v24 = vperm.slane %v2918_v36, 3  ;;  %v352_v36 = vperm.slane %v3037_v57, 1 }
 0x3c6   :  { %v737_v45 = vpop.permute.xlu0 %736 }
 0x3c7   :  { %v1726_v33 = vsel %vm1725_vm3, %v1937_v31, %v1722_v20  ;;  %v741_v21 = vmul.f32 %v739_v42, %v737_v45  ;;  %v742_v59 = vmul.f32 %v740_v11, %v737_v45  ;;  %v982_v11 = vpop.permute.xlu2 %981 }
 0x3c8   :  { %v1727_v7 = vmul.f32 %v1726_v33, %v1675_v22  ;;  %v755_v22 = vmul.f32 %v753_v6, %v2985_v37  ;;  %v775_v37 = vmul.f32 %v773_v8, %v771_v15  ;;  %v971_v8 = vperm.slane %v2923_v63, 0 }
 0x3c9   :  { %v747_v38 = vadd.f32 %v2969_v44, %v741_v21  ;;  %v748_v3 = vadd.f32 %v2969_v44, %v742_v59  ;;  %v3417_v44 = vpop.permute.xlu1 %922  ;;  %v339_v59 = vperm.slane %v3039_v60, 0  ;;  %v970_v60 = vperm.slane %v2921_v62, 0 }
 0x3ca   :  { %1837 = vmatmul.msk.f32.vlgmr.msra.gmra.mxu0 %vm1390_vm2, %v1727_v7  ;;  %v776_v7 = vmul.f32 %v774_v24, %v771_v15  ;;  %vm1798_vm2 = vcmask 123904  }
 0x3cb   :  { %v757_v39 = vadd.f32 %v755_v22, %v747_v38  ;;  %v758_v31 = vadd.f32 %v756_v50, %v748_v3  ;;  %v984_v38 = vperm.slane %v2921_v62, 1  ;;  %v341_v15 = vmul.f32 %v339_v59, %v2543_v30 }
 0x3cc   :  { %v340_v3 = vmul.f32 %v338_v4, %v2543_v30  ;;  %v985_v22 = vperm.slane %v2923_v63, 1 }
 0x3cd   :  { %v767_v20 = vadd.f32 %v765_v1, %v757_v39  ;;  %v768_v45 = vadd.f32 %v766_v55, %v758_v31  ;;  %v355_v39 = vmul.f32 %v353_v35, %v2621_v25  ;;  %v354_v55 = vmul.f32 %v352_v36, %v2621_v25 }
 0x3ce   :  { %v783_v46 = vpop.permute.xlu0 %782  ;;  %v3444_v4 = vmul.f32 %v984_v38, %v982_v11 }
 0x3cf   :  { %v3421_v42 = vadd.f32 %v775_v37, %v767_v20  ;;  %v3423_v21 = vadd.f32 %v776_v7, %v768_v45  ;;  %v3446_v50 = vpop.permute.xlu2 %1001 }
 0x3d1   :  { %v786_v6 = vperm.slane %v3423_v21, 0  ;;  %v785_v18 = vperm.slane %v3421_v42, 0  ;;  %v968_v10 = vpop.permute.xlu1 %967  ;;  %v800_v37 = vperm.slane %v3423_v21, 1  ;;  %v799_v35 = vperm.slane %v3421_v42, 1 }
 0x3d2   :  { %v810_v25 = vperm.slane %v3423_v21, 2  ;;  %v820_v36 = vperm.slane %v3423_v21, 3  ;;  %v860_v45 = vperm.slane %v3423_v21, 7 }
 0x3d3   :  { %v787_v24 = vmul.f32 %v785_v18, %v783_v46  ;;  %v788_v20 = vmul.f32 %v786_v6, %v783_v46  ;;  %v3453_v18 = vmul.f32 %v970_v60, %v968_v10 }
 0x3d5   :  { %v793_v38 = vadd.f32 %v3377_v43, %v787_v24 }
 0x3d7   :  { %v3419_v33 = vpop.permute.xlu0 %902 }
 0x3d9   :  { %v3478_v24 = vpop.permute.xlu1 %991 }
 0x3e0   :  { %v344_v57 = vpop.permute.xlu0 %343 }
 0x3e1   :  { %v346_v31 = vadd.f32 %v344_v57, %v340_v3  ;;  %v347_v1 = vadd.f32 %v344_v57, %v341_v15  ;;  %v3451_v15 = vmul.f32 %v985_v22, %v982_v11  ;;  %v3457_v3 = vmul.f32 %v971_v8, %v968_v10 }
 0x3e2   :  { %v794_v57 = vadd.f32 %v3377_v43, %v788_v20  ;;  %v812_v22 = vmul.f32 %v810_v25, %v3381_v16  ;;  %v822_v10 = vmul.f32 %v820_v36, %v3388_v52  ;;  %v809_v43 = vperm.slane %v3421_v42, 2 }
 0x3e3   :  { %v356_v7 = vadd.f32 %v354_v55, %v346_v31  ;;  %v357_v59 = vadd.f32 %v355_v39, %v347_v1  ;;  %v840_v39 = vperm.slane %v3423_v21, 5  ;;  %v802_v31 = vmul.f32 %v800_v37, %v3384_v47 }
 0x3e4   :  { %v850_v36 = vperm.slane %v3423_v21, 6 }
 0x3e5   :  { %v366_v46 = vadd.f32 %v3092_v19, %v356_v7  ;;  %v367_v6 = vadd.f32 %v3050_v34, %v357_v59  ;;  %v830_v19 = vperm.slane %v3423_v21, 4  ;;  %v801_v34 = vmul.f32 %v799_v35, %v3384_v47 }
 0x3e6   :  { %v804_v37 = vadd.f32 %v802_v31, %v794_v57  ;;  %v842_v7 = vmul.f32 %v840_v39, %v3386_v61  ;;  %v819_v57 = vperm.slane %v3421_v42, 3 }
 0x3e7   :  { %v3464_v1 = vadd.f32 %v3063_v5, %v366_v46  ;;  %v3467_v11 = vadd.f32 %v3065_v48, %v367_v6  ;;  %v803_v20 = vadd.f32 %v801_v34, %v793_v38  ;;  %v3486_v46 = vpop.permute.xlu2 %1027  ;;  %v811_v38 = vmul.f32 %v809_v43, %v3381_v16 }
 0x3e8   :  { %v827_v60 = vpop.permute.xlu0 %826  ;;  %v814_v30 = vadd.f32 %v812_v22, %v804_v37  ;;  %v3508_v37 = vpop.permute.xlu1 %1013 }
 0x3e9   :  { %v384_v55 = vperm.slane %v3464_v1, 0  ;;  %v385_v8 = vperm.slane %v3467_v11, 0  ;;  %v398_v5 = vperm.slane %v3464_v1, 1  ;;  %v399_v48 = vperm.slane %v3467_v11, 1 }
 0x3ea   :  { %v408_v47 = vperm.slane %v3464_v1, 2  ;;  %v409_v25 = vperm.slane %v3467_v11, 2  ;;  %v419_v6 = vperm.slane %v3467_v11, 3  ;;  %v813_v40 = vadd.f32 %v811_v38, %v803_v20 }
 0x3eb   :  { %v386_v59 = vmul.f32 %v384_v55, %v2592_v54  ;;  %v387_v35 = vmul.f32 %v385_v8, %v2592_v54  ;;  %v400_v54 = vmul.f32 %v398_v5, %v2630_v27  ;;  %v401_v34 = vmul.f32 %v399_v48, %v2630_v27 }
 0x3ec   :  { %v410_v55 = vmul.f32 %v408_v47, %v3372_v0  ;;  %v418_v8 = vperm.slane %v3464_v1, 3  ;;  %v411_v16 = vmul.f32 %v409_v25, %v3372_v0  ;;  %v429_v43 = vperm.slane %v3467_v11, 4 }
 0x3ed   :  { %v392_v39 = vadd.f32 %v2935_v12, %v386_v59  ;;  %v393_v31 = vadd.f32 %v2935_v12, %v387_v35  ;;  %v821_v59 = vmul.f32 %v819_v57, %v3388_v52  ;;  %v829_v12 = vperm.slane %v3421_v42, 4 }
 0x3ee   :  { %v839_v5 = vperm.slane %v3421_v42, 5  ;;  %v849_v27 = vperm.slane %v3421_v42, 6  ;;  %v421_v22 = vmul.f32 %v419_v6, %v3086_v32  ;;  %v439_v20 = vperm.slane %v3467_v11, 5 }
 0x3ef   :  { %v402_v13 = vadd.f32 %v400_v54, %v392_v39  ;;  %v403_v21 = vadd.f32 %v401_v34, %v393_v31  ;;  %v824_v0 = vadd.f32 %v822_v10, %v814_v30  ;;  %v823_v25 = vadd.f32 %v821_v59, %v813_v40 }
 0x3f0   :  { %v3504_v48 = vpop.permute.xlu0 %876  ;;  %v831_v38 = vmul.f32 %v829_v12, %v827_v60  ;;  %v832_v52 = vmul.f32 %v830_v19, %v827_v60  ;;  %v420_v57 = vmul.f32 %v418_v8, %v3086_v32  ;;  %v428_v31 = vperm.slane %v3464_v1, 4  ;;  %v3517_v19 = vpop.permute.xlu2 %1047 }
 0x3f1   :  { %v412_v47 = vadd.f32 %v410_v55, %v402_v13  ;;  %v413_v35 = vadd.f32 %v411_v16, %v403_v21  ;;  %v431_v54 = vmul.f32 %v429_v43, %v2615_v23  ;;  %v841_v55 = vmul.f32 %v839_v5, %v3386_v61 }
 0x3f2   :  { %v833_v34 = vadd.f32 %v831_v38, %v823_v25  ;;  %v834_v13 = vadd.f32 %v832_v52, %v824_v0  ;;  %v859_v6 = vperm.slane %v3421_v42, 7  ;;  %v441_v30 = vmul.f32 %v439_v20, %v2941_v53 }
 0x3f3   :  { %v423_v39 = vadd.f32 %v421_v22, %v413_v35  ;;  %v422_v21 = vadd.f32 %v420_v57, %v412_v47  ;;  %v449_v40 = vperm.slane %v3467_v11, 6  ;;  %v852_v32 = vmul.f32 %v850_v36, %v3392_v9 }
 0x3f4   :  { %v843_v10 = vadd.f32 %v841_v55, %v833_v34  ;;  %v844_v60 = vadd.f32 %v842_v7, %v834_v13  ;;  %v851_v8 = vmul.f32 %v849_v27, %v3392_v9  ;;  %v430_v43 = vmul.f32 %v428_v31, %v2615_v23  ;;  %v3541_v31 = vpop.permute.xlu1 %1037 }
 0x3f5   :  { %v433_v16 = vadd.f32 %v431_v54, %v423_v39  ;;  %v438_v61 = vperm.slane %v3464_v1, 5  ;;  %v862_v42 = vmul.f32 %v860_v45, %v3390_v14  ;;  %v448_v12 = vperm.slane %v3464_v1, 6 }
 0x3f6   :  { %v853_v5 = vadd.f32 %v851_v8, %v843_v10  ;;  %v854_v47 = vadd.f32 %v852_v32, %v844_v60  ;;  %v861_v35 = vmul.f32 %v859_v6, %v3390_v14  ;;  %v432_v20 = vadd.f32 %v430_v43, %v422_v21 }
 0x3f7   :  { %v443_v59 = vadd.f32 %v441_v30, %v433_v16  ;;  %v451_v36 = vmul.f32 %v449_v40, %v2638_v28  ;;  %v459_v7 = vperm.slane %v3467_v11, 7  ;;  %v3728_v23 = vperm.slane %v2923_v63, 3 }
 0x3f8   :  { %v976_v22 = vpop.permute.xlu0 %975  ;;  %v863_v0 = vadd.f32 %v861_v35, %v853_v5  ;;  %v864_v45 = vadd.f32 %v862_v42, %v854_v47  ;;  %v3729_v38 = vperm.slane %v2921_v62, 2  ;;  %v3730_v52 = vperm.slane %v2923_v63, 2  ;;  %v3549_v10 = vpop.permute.xlu2 %938 }
 0x3f9   :  { %v979_v9 = vadd.f32 %v976_v22, %v3457_v3  ;;  %v1007_v27 = vmul.f32 %v3728_v23, %v3446_v50  ;;  %v978_v25 = vadd.f32 %v976_v22, %v3453_v18  ;;  %v440_v11 = vmul.f32 %v438_v61, %v2941_v53 }
 0x3fa   :  { %v996_v14 = vmul.f32 %v3729_v38, %v3478_v24  ;;  %v997_v57 = vmul.f32 %v3730_v52, %v3478_v24  ;;  %v453_v39 = vadd.f32 %v451_v36, %v443_v59  ;;  %v450_v3 = vmul.f32 %v448_v12, %v2638_v28 }
 0x3fb   :  { %v872_v54 = vperm.slane %v864_v45, 0  ;;  %v886_v34 = vperm.slane %v864_v45, 1  ;;  %v989_v13 = vadd.f32 %v3451_v15, %v979_v9  ;;  %v442_v18 = vadd.f32 %v440_v11, %v432_v20 }
 0x3fc   :  { %v461_v55 = vmul.f32 %v459_v7, %v2624_v26  ;;  %v871_v6 = vperm.slane %v863_v0, 0  ;;  %v885_v21 = vperm.slane %v863_v0, 1  ;;  %v458_v16 = vperm.slane %v3464_v1, 7 }
 0x3fd   :  { %v874_v63 = vmul.f32 %v872_v54, %v3396_v56  ;;  %v896_v24 = vperm.slane %v864_v45, 2  ;;  %v988_v53 = vadd.f32 %v3444_v4, %v978_v25  ;;  %v906_v28 = vperm.slane %v864_v45, 3  ;;  %v3568_v25 = vpop.permute.xlu1 %1057 }
 0x3fe   :  { %v463_v30 = vadd.f32 %v461_v55, %v453_v39  ;;  %v873_v40 = vmul.f32 %v871_v6, %v3396_v56  ;;  %v895_v32 = vperm.slane %v863_v0, 2  ;;  %v888_v15 = vmul.f32 %v886_v34, %v3394_v2 }
 0x3ff   :  { %v880_v60 = vadd.f32 %v3504_v48, %v874_v63  ;;  %v905_v8 = vperm.slane %v863_v0, 3  ;;  %v999_v43 = vadd.f32 %v997_v57, %v989_v13  ;;  %v3731_v1 = vperm.slane %v2921_v62, 3 }
 0x400   :  { %v452_v59 = vadd.f32 %v450_v3, %v442_v18  ;;  %v879_v4 = vadd.f32 %v3504_v48, %v873_v40  ;;  %v887_v42 = vmul.f32 %v885_v21, %v3394_v2  ;;  %v898_v56 = vmul.f32 %v896_v24, %v3405_v49  ;;  %v3732_v18 = vld [vmem:[#allocation3_spill] sm:$0xff]  ;;  %v949_v6 = vpop.permute.xlu2 %948 }
 0x401   :  { %v1006_v61 = vmul.f32 %v3731_v1, %v3446_v50  ;;  %v890_v12 = vadd.f32 %v888_v15, %v880_v60  ;;  %v998_v5 = vadd.f32 %v996_v14, %v988_v53  ;;  %v3559_v47 = vadd.f32 %v1007_v27, %v999_v43 }
 0x402   :  { %v889_v35 = vadd.f32 %v887_v42, %v879_v4  ;;  %v897_v22 = vmul.f32 %v895_v32, %v3405_v49  ;;  %v471_v20 = vperm.slane %v463_v30, 0  ;;  %v485_v36 = vperm.slane %v463_v30, 1  ;;  %v1022_v32 = vpop.permute.xlu0 %1021 }
 0x403   :  { %v460_v7 = vmul.f32 %v458_v16, %v2624_v26  ;;  %v908_v62 = vmul.f32 %v906_v28, %v3419_v33  ;;  %v900_v50 = vadd.f32 %v898_v56, %v890_v12  ;;  %v907_v48 = vmul.f32 %v905_v8, %v3419_v33 }
 0x404   :  { %v899_v9 = vadd.f32 %v897_v22, %v889_v35  ;;  %v1017_v2 = vperm.slane %v3559_v47, 0  ;;  %v495_v23 = vperm.slane %v463_v30, 2  ;;  %v505_v0 = vperm.slane %v463_v30, 3 }
 0x405   :  { %v3566_v45 = vadd.f32 %v460_v7, %v452_v59  ;;  %v910_v27 = vadd.f32 %v908_v62, %v900_v50  ;;  %v3570_v49 = vadd.f32 %v1006_v61, %v998_v5  ;;  %v1031_v38 = vperm.slane %v3559_v47, 1 }
 0x406   :  { %v909_v26 = vadd.f32 %v907_v48, %v899_v9  ;;  %v1019_v14 = vmul.f32 %v1017_v2, %v3508_v37  ;;  %v473_v52 = vmul.f32 %v471_v20, %v2646_v41  ;;  %v487_v33 = vmul.f32 %v485_v36, %v2952_v58 }
 0x407   :  { %v918_v57 = vperm.slane %v910_v27, 0  ;;  %v932_v11 = vperm.slane %v910_v27, 1  ;;  %v942_v39 = vperm.slane %v910_v27, 2  ;;  %v952_v3 = vperm.slane %v910_v27, 3 }
 0x408   :  { %v917_v54 = vperm.slane %v909_v26, 0  ;;  %v931_v34 = vperm.slane %v909_v26, 1  ;;  %v497_v13 = vmul.f32 %v495_v23, %v2656_v17  ;;  %v507_v55 = vmul.f32 %v505_v0, %v3732_v18 }
 0x409   :  { %v920_v21 = vmul.f32 %v918_v57, %v3398_v51  ;;  %v941_v16 = vperm.slane %v909_v26, 2  ;;  %v951_v63 = vperm.slane %v909_v26, 3  ;;  %v1033_v24 = vmul.f32 %v1031_v38, %v3486_v46 }
 0x40a   :  { %v919_v53 = vmul.f32 %v917_v54, %v3398_v51  ;;  %v934_v30 = vmul.f32 %v932_v11, %v3411_v29  ;;  %v944_v28 = vmul.f32 %v942_v39, %v3549_v10  ;;  %v954_v40 = vmul.f32 %v952_v3, %v949_v6  ;;  %v3733_v51 = vld [vmem:[#allocation2_spill] sm:$0xff] }
 0x40b   :  { %v926_v15 = vadd.f32 %v3417_v44, %v920_v21  ;;  %v1041_v60 = vperm.slane %v3559_v47, 2  ;;  %v1016_v8 = vperm.slane %v3570_v49, 0  ;;  %v1025_v43 = vadd.f32 %v1022_v32, %v1019_v14 }
 0x40c   :  { %v925_v1 = vadd.f32 %v3417_v44, %v919_v53  ;;  %v933_v61 = vmul.f32 %v931_v34, %v3411_v29  ;;  %v1030_v59 = vperm.slane %v3570_v49, 1  ;;  %v479_v4 = vadd.f32 %v3733_v51, %v473_v52  ;;  %v3594_v44 = vpop.permute.xlu1 %1077 }
 0x40d   :  { %v936_v42 = vadd.f32 %v934_v30, %v926_v15  ;;  %v1043_v56 = vmul.f32 %v1041_v60, %v3541_v31  ;;  %v1018_v12 = vmul.f32 %v1016_v8, %v3508_v37  ;;  %v1035_v5 = vadd.f32 %v1033_v24, %v1025_v43  ;;  %v3736_v15 = vld [vmem:[#allocation4_spill] sm:$0xff] }
 0x40e   :  { %v935_v35 = vadd.f32 %v933_v61, %v925_v1  ;;  %v943_v22 = vmul.f32 %v941_v16, %v3549_v10  ;;  %v1040_v20 = vperm.slane %v3570_v49, 2  ;;  %v489_v36 = vadd.f32 %v487_v33, %v479_v4  ;;  %v3737_v61 = vld [vmem:[#allocation8_spill] sm:$0xff] }
 0x40f   :  { %v946_v7 = vadd.f32 %v944_v28, %v936_v42  ;;  %v1024_v29 = vadd.f32 %v1022_v32, %v1018_v12  ;;  %v1045_v62 = vadd.f32 %v1043_v56, %v1035_v5  ;;  %v1051_v50 = vperm.slane %v3559_v47, 3 }
 0x410   :  { %v945_v48 = vadd.f32 %v943_v22, %v935_v35  ;;  %v1032_v9 = vmul.f32 %v1030_v59, %v3486_v46  ;;  %v499_v2 = vadd.f32 %v497_v13, %v489_v36  ;;  %v1061_v37 = vperm.slane %v3559_v47, 4 }
 0x411   :  { %v953_v23 = vmul.f32 %v951_v63, %v949_v6  ;;  %v956_v0 = vadd.f32 %v954_v40, %v946_v7  ;;  %v1053_v10 = vmul.f32 %v1051_v50, %v3517_v19  ;;  %v470_v27 = vperm.slane %v3566_v45, 0  ;;  %v1068_v6 = vpop.permute.xlu0 %1067  ;;  %v3734_v63 = vld [vmem:[#allocation6_spill] sm:$0xff] }
 0x412   :  { %v1034_v38 = vadd.f32 %v1032_v9, %v1024_v29  ;;  %v509_v26 = vadd.f32 %v507_v55, %v499_v2  ;;  %v484_v14 = vperm.slane %v3566_v45, 1  ;;  %v1081_v46 = vperm.slane %v3559_v47, 6 }
 0x413   :  { %v955_v52 = vadd.f32 %v953_v23, %v945_v48  ;;  %v959_v33 = vrot.slane %v956_v0, 4  ;;  %v1055_v57 = vadd.f32 %v1053_v10, %v1045_v62  ;;  %v472_v11 = vmul.f32 %v470_v27, %v2646_v41  ;;  %v3738_v62 = vld [vmem:[#allocation7_spill] sm:$0xff]  ;;  %v3739_v27 = vld [vmem:[#allocation5_spill] sm:$0xff] }
 0x414   :  { %v1042_v39 = vmul.f32 %v1040_v20, %v3541_v31  ;;  %v517_v3 = vperm.slane %v509_v26, 0  ;;  %v1063_v54 = vmul.f32 %v1061_v37, %v3568_v25  ;;  %v531_v13 = vperm.slane %v509_v26, 1  ;;  %v1088_v1 = vpop.permute.xlu1 %1087 }
 0x415   :  { %v960_v34 = vsel %vm559_vm0, %v955_v52, %v959_v33  ;;  %v478_v55 = vadd.f32 %v3733_v51, %v472_v11  ;;  %v486_v21 = vmul.f32 %v484_v14, %v2952_v58  ;;  %v1071_v41 = vperm.slane %v3559_v47, 5 }
 0x416   :  { %v1044_v16 = vadd.f32 %v1042_v39, %v1034_v38  ;;  %v519_v24 = vmul.f32 %v517_v3, %v3734_v63  ;;  %v1065_v53 = vadd.f32 %v1063_v54, %v1055_v57  ;;  %1828 = vst.msk [vmem:[%s3676_s15 + $0x8] sm:$0xff] %vm3159_vm7, %v960_v34  ;;  %v494_v28 = vperm.slane %v3566_v45, 2 }
 0x417   :  { %v488_v31 = vadd.f32 %v486_v21, %v478_v55  ;;  %v504_v40 = vperm.slane %v3566_v45, 3  ;;  %v1050_v32 = vperm.slane %v3570_v49, 3  ;;  %v1091_v58 = vperm.slane %v3559_v47, 7 }
 0x418   :  { %v525_v60 = vadd.f32 %v3736_v15, %v519_v24  ;;  %v1060_v8 = vperm.slane %v3570_v49, 4  ;;  %v1073_v43 = vmul.f32 %v1071_v41, %v1068_v6  ;;  %v533_v59 = vmul.f32 %v531_v13, %v3737_v61  ;;  %v1808_v41 = vpop.permute.xlu2 %1807 }
 0x419   :  { %v541_v51 = vperm.slane %v509_v26, 2  ;;  %v496_v4 = vmul.f32 %v494_v28, %v2656_v17  ;;  %v1052_v42 = vmul.f32 %v1050_v32, %v3517_v19  ;;  %v1083_v56 = vmul.f32 %v1081_v46, %v3594_v44 }
 0x41a   :  { %v506_v45 = vmul.f32 %v504_v40, %v3732_v18  ;;  %v1075_v12 = vadd.f32 %v1073_v43, %v1065_v53  ;;  %v535_v5 = vadd.f32 %v533_v59, %v525_v60  ;;  %v1062_v22 = vmul.f32 %v1060_v8, %v3568_v25 }
 0x41b   :  { %v498_v47 = vadd.f32 %v496_v4, %v488_v31  ;;  %v1054_v35 = vadd.f32 %v1052_v42, %v1044_v16  ;;  %v1080_v20 = vperm.slane %v3570_v49, 6  ;;  %v1093_v36 = vmul.f32 %v1091_v58, %v1088_v1 }
 0x41c   :  { %v1070_v7 = vperm.slane %v3570_v49, 5  ;;  %v1085_v29 = vadd.f32 %v1083_v56, %v1075_v12  ;;  %v543_v17 = vmul.f32 %v541_v51, %v3738_v62  ;;  %v551_v50 = vperm.slane %v509_v26, 3 }
 0x41d   :  { %v508_v19 = vadd.f32 %v506_v45, %v498_v47  ;;  %v1064_v48 = vadd.f32 %v1062_v22, %v1054_v35  ;;  %v1090_v9 = vperm.slane %v3570_v49, 7  ;;  %v1082_v25 = vmul.f32 %v1080_v20, %v3594_v44 }
 0x41e   :  { %v1072_v18 = vmul.f32 %v1070_v7, %v1068_v6  ;;  %v1095_v2 = vadd.f32 %v1093_v36, %v1085_v29  ;;  %v545_v37 = vadd.f32 %v543_v17, %v535_v5  ;;  %v553_v38 = vmul.f32 %v551_v50, %v3739_v27 }
 0x41f   :  { %v516_v23 = vperm.slane %v508_v19, 0  ;;  %v530_v0 = vperm.slane %v508_v19, 1  ;;  %v540_v52 = vperm.slane %v508_v19, 2  ;;  %v1092_v33 = vmul.f32 %v1090_v9, %v1088_v1 }
 0x420   :  { %v1074_v10 = vadd.f32 %v1072_v18, %v1064_v48  ;;  %v1098_v26 = vrot.slane %v1095_v2, 4  ;;  %v555_v11 = vadd.f32 %v553_v38, %v545_v37  ;;  %v550_v39 = vperm.slane %v508_v19, 3 }
 0x421   :  { %v518_v14 = vmul.f32 %v516_v23, %v3734_v63  ;;  %v532_v49 = vmul.f32 %v530_v0, %v3737_v61  ;;  %v542_v34 = vmul.f32 %v540_v52, %v3738_v62 }
 0x422   :  { %v1084_v57 = vadd.f32 %v1082_v25, %v1074_v10  ;;  %v558_v13 = vrot.slane %v555_v11, 4  ;;  %v552_v55 = vmul.f32 %v550_v39, %v3739_v27 }
 0x423   :  { %v524_v46 = vadd.f32 %v3736_v15, %v518_v14 }
 0x424   :  { %v1094_v3 = vadd.f32 %v1092_v33, %v1084_v57 }
 0x425   :  { %v534_v54 = vadd.f32 %v532_v49, %v524_v46 }
 0x426   :  { %v1099_v44 = vsel %vm559_vm0, %v1094_v3, %v1098_v26 }
 0x427   :  { %v544_v6 = vadd.f32 %v542_v34, %v534_v54  ;;  %1829 = vst.msk [vmem:[%s3673_s16 + $0x8] sm:$0xff] %vm3159_vm7, %v1099_v44 }
 0x429   :  { %v554_v21 = vadd.f32 %v552_v55, %v544_v6 }
 0x42b   :  { %v560_v16 = vsel %vm559_vm0, %v554_v21, %v558_v13 }
 0x42c   :  { %564 = vst.msk [vmem:[%s3676_s15] sm:$0xff] %vm3159_vm7, %v560_v16  ;;  %v1802_v53 = vpop.permute.xlu0 %1801 }
 0x447   :  { %v1754_v63 = vpop.f32.mrf.mxu0 }
 0x448   :  { %v1757_v24 = vmul.f32 100.0, %v1754_v63 }
 0x44a   :  { %1799 = vst.msk [vmem:[%s3677_s17] sm:$0x3] %vm1798_vm2, %v1757_v24 }
 0x44b   :  { %1805 = vst.msk [vmem:[%s3677_s17] sm:$0x3] %vm1804_vm4, %v1802_v53 }
 0x44c   :  { %1811 = vst.msk [vmem:[%s3677_s17] sm:$0x3] %vm1810_vm5, %v1808_v41 }

// kernel: isd_forward.3
= control target key start
LH: loop header
LB: loop body
LE: loop exit
PB: predicated region body
PF: predicated region fallthrough
CT: control target
= control target key end

     0   :  { %10 = vsyncpa [#allocation3], 0  ;;  %vm260_vm0 = vcmask 72704   ;;  %s3784_s0 = inlined_call_operand.vmem [shape: f32[128,9], index: 0, kind: input, shape index: {}]   ;;  %s3785_s1 = inlined_call_operand.vmem [shape: f32[128,9], index: 1, kind: input, shape index: {}]   ;;  %s3786_s2 = inlined_call_operand.vmem [shape: f32[9,1024], index: 2, kind: input, shape index: {}]   ;;  %s3787_s3 = inlined_call_operand.hbm [shape: f32[128,1024], index: 3, kind: output, shape index: {0}]   ;;  %s3788_s4 = inlined_call_operand.hbm [shape: f32[128,1024], index: 4, kind: output, shape index: {1}]  }
   0x1   :  { %v2507_v0 = vld [vmem:[%s3784_s0 + $0x10] sm:$0xff]  ;;  %v2512_v1 = vld [vmem:[%s3784_s0] sm:$0xff]  ;;  %v2526_v5 = vld [vmem:[%s3784_s0 + $0x18] sm:$0xff] }
   0x2   :  { %v246_v2 = vmul.f32 %v2507_v0, %v2507_v0  ;;  %v244_v3 = vmul.f32 %v2512_v1, %v2512_v1  ;;  %v2521_v4 = vld [vmem:[%s3784_s0 + $0x20] sm:$0xff]  ;;  %v2531_v6 = vld [vmem:[%s3784_s0 + $0x8] sm:$0xff]  ;;  %v247_v12 = vmul.f32 %v2526_v5, %v2526_v5 }
   0x3   :  { %v248_v7 = vmul.f32 %v2521_v4, %v2521_v4  ;;  %v2540_v10 = vld [vmem:[%s3784_s0 + $0x28] sm:$0xff]  ;;  %v245_v13 = vmul.f32 %v2531_v6, %v2531_v6 }
   0x4   :  { %v267_v8 = vsel %vm260_vm0, %v246_v2, 0.0  ;;  %v261_v9 = vsel %vm260_vm0, %v244_v3, 0.0 }
   0x5   :  { %268 = vadd.xlane.f32.xlu1 %v267_v8  ;;  %262 = vadd.xlane.f32.xlu0 %v261_v9  ;;  %v273_v11 = vsel %vm260_vm0, %v248_v7, 0.0 }
   0x6   :  { %274 = vadd.xlane.f32.xlu2 %v273_v11 }
   0x7   :  { %11 = vsyncpa [#allocation5], 0  ;;  %v249_v14 = vmul.f32 %v2540_v10, %v2540_v10  ;;  %v270_v15 = vsel %vm260_vm0, %v247_v12, 0.0  ;;  %v264_v16 = vsel %vm260_vm0, %v245_v13, 0.0  ;;  %v2555_v18 = vld [vmem:[%s3784_s0 + $0x38] sm:$0xff]  ;;  %v2560_v19 = vld [vmem:[%s3784_s0 + $0x30] sm:$0xff] }
   0x8   :  { %v2565_v20 = vld [vmem:[%s3784_s0 + $0x40] sm:$0xff]  ;;  %v251_v21 = vmul.f32 %v2555_v18, %v2555_v18  ;;  %v250_v22 = vmul.f32 %v2560_v19, %v2560_v19  ;;  %v2579_v27 = vld [vmem:[%s3784_s0 + $0x48] sm:$0xff]  ;;  %v2584_v28 = vld [vmem:[%s3784_s0 + $0x50] sm:$0xff]  ;;  %vm51_vm1 = vcmask 1040384   ;;  %vm813_vm12 = vcmask 1043456   ;;  %s2167_s29 = sshll.u32 %s3787_s3, 4  ;;  %s2168_s29 = int_to_ptr.hbm [resolvable:$true] %s2167_s29 }
   0x9   :  { %v276_v17 = vsel %vm260_vm0, %v249_v14, 0.0  ;;  %v252_v23 = vmul.f32 %v2565_v20, %v2565_v20  ;;  %v2589_v29 = vld [vmem:[%s3784_s0 + $0x58] sm:$0xff]  ;;  %v253_v30 = vmul.f32 %v2579_v27, %v2579_v27  ;;  %v254_v31 = vmul.f32 %v2584_v28, %v2584_v28  ;;  %v241_v36 = vld [vmem:[%s3784_s0 + $0x68] sm:$0xff]  ;;  %v240_v37 = vld [vmem:[%s3784_s0 + $0x60] sm:$0xff]  ;;  %s2476_s30 = smov 1024   ;;  %s2477_s5 = smov 64  }
   0xa   :  { %v282_v24 = vsel %vm260_vm0, %v251_v21, 0.0  ;;  %v279_v25 = vsel %vm260_vm0, %v250_v22, 0.0  ;;  %v255_v32 = vmul.f32 %v2589_v29, %v2589_v29  ;;  %v242_v38 = vld [vmem:[%s3784_s0 + $0x70] sm:$0xff]  ;;  %v257_v39 = vmul.f32 %v241_v36, %v241_v36  ;;  %v243_v45 = vld [vmem:[%s3784_s0 + $0x78] sm:$0xff]  ;;  %v2619_v48 = vld [vmem:[%s3786_s2 + $0x40] sm:$0x1] }
   0xb   :  { %v285_v26 = vsel %vm260_vm0, %v252_v23, 0.0  ;;  %v288_v33 = vsel %vm260_vm0, %v253_v30, 0.0  ;;  %v291_v34 = vsel %vm260_vm0, %v254_v31, 0.0  ;;  %v256_v40 = vmul.f32 %v240_v37, %v240_v37  ;;  %v2624_v49 = vld [vmem:[%s3786_s2 + $0x48] sm:$0x1]  ;;  %v2634_v51 = vld [vmem:[%s3786_s2] sm:$0xff] }
   0xc   :  { %v294_v35 = vsel %vm260_vm0, %v255_v32, 0.0  ;;  %v258_v41 = vmul.f32 %v242_v38, %v242_v38  ;;  %v300_v42 = vsel %vm260_vm0, %v257_v39, 0.0  ;;  %v259_v46 = vmul.f32 %v243_v45, %v243_v45  ;;  %v2629_v50 = vld [vmem:[%s3786_s2 + $0x50] sm:$0x1]  ;;  %v2641_v53 = vld [vmem:[%s3786_s2 + $0x8] sm:$0xff]  ;;  %v2661_v60 = vld [vmem:[%s3786_s2 + $0x18] sm:$0xff] }
   0xd   :  { %271 = vadd.xlane.f32.xlu1 %v270_v15  ;;  %265 = vadd.xlane.f32.xlu0 %v264_v16  ;;  %v297_v43 = vsel %vm260_vm0, %v256_v40, 0.0  ;;  %v43_v52 = vmul.f32 %v2619_v48, %v2619_v48  ;;  %v44_v54 = vmul.f32 %v2624_v49, %v2624_v49  ;;  %v2648_v55 = vld [vmem:[%s3786_s2 + $0x10] sm:$0xff]  ;;  %v45_v56 = vmul.f32 %v2629_v50, %v2629_v50  ;;  %v2666_v61 = vld [vmem:[%s3786_s2 + $0x58] sm:$0x1]  ;;  %s2478_s3 = smov [#allocation4]   ;;  %s2180_s9 = sshll.u32 %s3788_s4, 4  ;;  %s2181_s9 = int_to_ptr.hbm [resolvable:$true] %s2180_s9 }
   0xe   :  { %277 = vadd.xlane.f32.xlu2 %v276_v17  ;;  %v303_v44 = vsel %vm260_vm0, %v258_v41, 0.0  ;;  %v306_v47 = vsel %vm260_vm0, %v259_v46, 0.0  ;;  %v35_v57 = vmul.f32 %v2634_v51, %v2634_v51  ;;  %v36_v58 = vmul.f32 %v2641_v53, %v2641_v53  ;;  %s2178_s6 = sshll.u32 %s2478_s3, 4  ;;  %s2179_s6 = int_to_ptr.vmem [resolvable:$true] %s2178_s6 }
   0xf   :  { %v37_v59 = vmul.f32 %v2648_v55, %v2648_v55  ;;  %v52_v62 = vsel %vm51_vm1, %v43_v52, 0.0  ;;  %v60_v63 = vsel %vm51_vm1, %v44_v54, 0.0  ;;  %v68_v2 = vsel %vm51_vm1, %v45_v56, 0.0 }
  0x10   :  { %v38_v3 = vmul.f32 %v2661_v60, %v2661_v60  ;;  %v53_v7 = vadd.f32 %v52_v62, %v35_v57  ;;  %v61_v8 = vadd.f32 %v60_v63, %v36_v58  ;;  %v46_v11 = vmul.f32 %v2666_v61, %v2666_v61 }
  0x11   :  { %v69_v9 = vadd.f32 %v68_v2, %v37_v59  ;;  %vm814_vm13 = vcmask 1044480  }
  0x12   :  { %v54_v12 = vrot.slane %v53_v7, 4  ;;  %v62_v13 = vrot.slane %v61_v8, 4  ;;  %v76_v15 = vsel %vm51_vm1, %v46_v11, 0.0 }
  0x13   :  { %v70_v14 = vrot.slane %v69_v9, 4  ;;  %v77_v16 = vadd.f32 %v76_v15, %v38_v3 }
  0x14   :  { %v55_v17 = vadd.f32 %v54_v12, %v53_v7  ;;  %v63_v21 = vadd.f32 %v62_v13, %v61_v8 }
  0x15   :  { %283 = vadd.xlane.f32.xlu1 %v282_v24  ;;  %280 = vadd.xlane.f32.xlu0 %v279_v25  ;;  %v71_v22 = vadd.f32 %v70_v14, %v69_v9  ;;  %v78_v23 = vrot.slane %v77_v16, 4 }
  0x16   :  { %286 = vadd.xlane.f32.xlu2 %v285_v26  ;;  %v56_v24 = vrot.slane %v55_v17, 2  ;;  %v64_v25 = vrot.slane %v63_v21, 2 }
  0x17   :  { %v72_v26 = vrot.slane %v71_v22, 2  ;;  %v79_v30 = vadd.f32 %v78_v23, %v77_v16 }
  0x18   :  { %v57_v31 = vadd.f32 %v56_v24, %v55_v17  ;;  %v65_v32 = vadd.f32 %v64_v25, %v63_v21 }
  0x1a   :  { %v66_v36 = vrot.slane %v65_v32, 1 }
  0x1c   :  { %v67_v40 = vadd.f32 %v66_v36, %v65_v32 }
  0x1d   :  { %289 = vadd.xlane.f32.xlu0 %v288_v33  ;;  %292 = vadd.xlane.f32.xlu1 %v291_v34  ;;  %v73_v33 = vadd.f32 %v72_v26, %v71_v22  ;;  %v80_v34 = vrot.slane %v79_v30, 2 }
  0x1e   :  { %295 = vadd.xlane.f32.xlu2 %v294_v35  ;;  %v58_v35 = vrot.slane %v57_v31, 1 }
  0x1f   :  { %v74_v37 = vrot.slane %v73_v33, 1  ;;  %v81_v38 = vadd.f32 %v80_v34, %v79_v30  ;;  %v2474_v34 = vmov 65535  }
  0x20   :  { %v59_v39 = vadd.f32 %v58_v35, %v57_v31  ;;  %v815_v35 = vsel %vm813_vm12, 4294967295, %v2474_v34 }
  0x21   :  { %v75_v41 = vadd.f32 %v74_v37, %v73_v33  ;;  %v2680_v37 = vsel %vm814_vm13, %v815_v35, 0 }
  0x23   :  { %v118_v45 = vmax.f32 %v75_v41, 1e-24 }
  0x25   :  { %301 = vadd.xlane.f32.xlu1 %v300_v42  ;;  %298 = vadd.xlane.f32.xlu0 %v297_v43  ;;  %v82_v42 = vrot.slane %v81_v38, 1  ;;  %v116_v43 = vmax.f32 %v59_v39, 1e-24  ;;  %vm150_vm7 = vweird.f32 %v118_v45 }
  0x26   :  { %304 = vadd.xlane.f32.xlu2 %v303_v44  ;;  %v117_v44 = vmax.f32 %v67_v40, 1e-24 }
  0x27   :  { %v83_v46 = vadd.f32 %v82_v42, %v81_v38  ;;  %2330 = vrsqrt.f32 %v116_v43  ;;  %vm130_vm2 = vweird.f32 %v116_v43 }
  0x28   :  { %2332 = vrsqrt.f32 %v117_v44  ;;  %vm140_vm4 = vweird.f32 %v117_v44 }
  0x29   :  { %2334 = vrsqrt.f32 %v118_v45 }
  0x2d   :  { %307 = vadd.xlane.f32.xlu0 %v306_v47  ;;  %v119_v47 = vmax.f32 %v83_v46, 1e-24  ;;  %v2331_v52 = vpop.eup %2330 }
  0x2e   :  { %v2333_v54 = vpop.eup %2332  ;;  %v125_v56 = vmul.f32 %v2331_v52, %v116_v43  ;;  %vm131_vm3 = vweird.f32 %v2331_v52 }
  0x2f   :  { %2336 = vrsqrt.f32 %v119_v47  ;;  %v2335_v57 = vpop.eup %2334  ;;  %v135_v58 = vmul.f32 %v2333_v54, %v117_v44  ;;  %vm132_vm5 = vmor %vm130_vm2, %vm131_vm3  ;;  %vm141_vm6 = vweird.f32 %v2333_v54  ;;  %vm160_vm10 = vweird.f32 %v119_v47 }
  0x30   :  { %v126_v62 = vmul.f32 %v2331_v52, %v125_v56  ;;  %v145_v63 = vmul.f32 %v2335_v57, %v118_v45  ;;  %vm142_vm8 = vmor %vm140_vm4, %vm141_vm6  ;;  %vm151_vm9 = vweird.f32 %v2335_v57 }
  0x31   :  { %v136_v2 = vmul.f32 %v2333_v54, %v135_v58  ;;  %vm152_vm11 = vmor %vm150_vm7, %vm151_vm9 }
  0x32   :  { %v127_v7 = vmul.f32 0.5, %v126_v62  ;;  %v146_v8 = vmul.f32 %v2335_v57, %v145_v63 }
  0x33   :  { %v137_v9 = vmul.f32 0.5, %v136_v2 }
  0x34   :  { %v128_v12 = vsub.f32 1.5, %v127_v7  ;;  %v147_v13 = vmul.f32 0.5, %v146_v8 }
  0x35   :  { %v2337_v59 = vpop.eup %2336  ;;  %v138_v14 = vsub.f32 1.5, %v137_v9 }
  0x36   :  { %v155_v3 = vmul.f32 %v2337_v59, %v119_v47  ;;  %v129_v16 = vmul.f32 %v2331_v52, %v128_v12  ;;  %v148_v21 = vsub.f32 1.5, %v147_v13  ;;  %vm161_vm14 = vweird.f32 %v2337_v59  ;;  %v2702_v47 = vld [vmem:[%s3786_s2 + $0x30] sm:$0xff] }
  0x37   :  { %v139_v17 = vmul.f32 %v2333_v54, %v138_v14  ;;  %vm162_vm15 = vmor %vm160_vm10, %vm161_vm14 }
  0x38   :  { %v156_v11 = vmul.f32 %v2337_v59, %v155_v3  ;;  %v133_v22 = vsel %vm132_vm5, %v2331_v52, %v129_v16  ;;  %v149_v30 = vmul.f32 %v2335_v57, %v148_v21  ;;  %v2707_v52 = vld [vmem:[%s3786_s2 + $0x70] sm:$0x1] }
  0x39   :  { %v204_v24 = vmul.f32 %v133_v22, %v2634_v51  ;;  %v212_v25 = vmul.f32 %v133_v22, %v2619_v48  ;;  %v143_v26 = vsel %vm142_vm8, %v2333_v54, %v139_v17 }
  0x3a   :  { %v157_v15 = vmul.f32 0.5, %v156_v11  ;;  %v205_v31 = vmul.f32 %v143_v26, %v2641_v53  ;;  %v213_v32 = vmul.f32 %v143_v26, %v2624_v49  ;;  %v153_v36 = vsel %vm152_vm11, %v2335_v57, %v149_v30 }
  0x3b   :  { %v220_v33 = vpack.c.bf16 %v212_v25, %v204_v24  ;;  %v206_v51 = vmul.f32 %v153_v36, %v2648_v55  ;;  %v214_v48 = vmul.f32 %v153_v36, %v2629_v50 }
  0x3c   :  { %v158_v23 = vsub.f32 1.5, %v157_v15  ;;  %v221_v38 = vpack.c.bf16 %v213_v32, %v205_v31  ;;  %v2735_v31 = vld [vmem:[%s3786_s2 + $0x38] sm:$0xff] }
  0x3d   :  { %v2685_v39 = vand.u32 %v2680_v37, %v220_v33  ;;  %v222_v49 = vpack.c.bf16 %v214_v48, %v206_v51  ;;  %v2740_v32 = vld [vmem:[%s3786_s2 + $0x78] sm:$0x1] }
  0x3e   :  { %v159_v40 = vmul.f32 %v2337_v59, %v158_v23  ;;  %v2688_v53 = vand.u32 %v2680_v37, %v221_v38  ;;  %v42_v38 = vmul.f32 %v2735_v31, %v2735_v31  ;;  %v50_v48 = vmul.f32 %v2740_v32, %v2740_v32 }
  0x3f   :  { %848 = vmatpush.bf16.msra.mxu0 %v2685_v39  ;;  %v2694_v50 = vand.u32 %v2680_v37, %v222_v49 }
  0x40   :  { %v163_v41 = vsel %vm162_vm15, %v2337_v59, %v159_v40  ;;  %897 = vmatpush.bf16.msra.mxu1 %v2688_v53 }
  0x41   :  { %v207_v55 = vmul.f32 %v163_v41, %v2661_v60  ;;  %v215_v44 = vmul.f32 %v163_v41, %v2666_v61  ;;  %946 = vmatpush.bf16.msra.mxu2 %v2694_v50  ;;  %v41_v60 = vmul.f32 %v2702_v47, %v2702_v47  ;;  %v49_v61 = vmul.f32 %v2707_v52, %v2707_v52 }
  0x43   :  { %v223_v46 = vpack.c.bf16 %v215_v44, %v207_v55  ;;  %v100_v56 = vsel %vm51_vm1, %v49_v61, 0.0 }
  0x44   :  { %v101_v59 = vadd.f32 %v100_v56, %v41_v60 }
  0x45   :  { %v2710_v54 = vand.u32 %v2680_v37, %v223_v46 }
  0x46   :  { %v102_v7 = vrot.slane %v101_v59, 4 }
  0x47   :  { %995 = vmatpush.bf16.msra.mxu3 %v2710_v54 }
  0x48   :  { %v103_v12 = vadd.f32 %v102_v7, %v101_v59 }
  0x4a   :  { %v104_v14 = vrot.slane %v103_v12, 2 }
  0x4c   :  { %v105_v24 = vadd.f32 %v104_v14, %v103_v12 }
  0x4e   :  { %v106_v36 = vrot.slane %v105_v24, 1 }
  0x50   :  { %v107_v41 = vadd.f32 %v106_v36, %v105_v24  ;;  %v2786_v24 = vld [vmem:[%s3786_s2 + $0x60] sm:$0x1] }
  0x52   :  { %v122_v46 = vmax.f32 %v107_v41, 1e-24 }
  0x54   :  { %vm190_vm13 = vweird.f32 %v122_v46 }
  0x78   :  { %v269_v42 = vpop.xlane.xlu1 %268  ;;  %v263_v43 = vpop.xlane.xlu0 %262 }
  0x79   :  { %v309_v45 = vmax.f32 %v263_v43, 1e-24  ;;  %v2718_v62 = vmax.f32 %v269_v42, 1e-24  ;;  %v275_v9 = vpop.xlane.xlu2 %274  ;;  %v108_v43 = vsel %vm51_vm1, %v50_v48, 0.0 }
  0x7a   :  { %v2726_v17 = vmax.f32 %v275_v9, 1e-24 }
  0x7b   :  { %2338 = vrsqrt.f32 %v309_v45  ;;  %vm331_vm3 = vweird.f32 %v309_v45  ;;  %vm351_vm8 = vweird.f32 %v2718_v62 }
  0x80   :  { %v272_v57 = vpop.xlane.xlu1 %271  ;;  %v266_v58 = vpop.xlane.xlu0 %265 }
  0x81   :  { %v2720_v63 = vmax.f32 %v272_v57, 1e-24  ;;  %v310_v2 = vmax.f32 %v266_v58, 1e-24  ;;  %v2339_v3 = vpop.eup %2338  ;;  %v278_v30 = vpop.xlane.xlu2 %277 }
  0x82   :  { %v326_v8 = vmul.f32 %v2339_v3, %v309_v45  ;;  %vm332_vm2 = vweird.f32 %v2339_v3  ;;  %v2747_v51 = vmax.f32 %v278_v30, 1e-24  ;;  %v109_v45 = vadd.f32 %v108_v43, %v42_v38 }
  0x83   :  { %2340 = vrsqrt.f32 %v2720_v63  ;;  %vm333_vm5 = vmor %vm331_vm3, %vm332_vm2  ;;  %vm341_vm6 = vweird.f32 %v310_v2  ;;  %vm361_vm9 = vweird.f32 %v2720_v63  ;;  %vm371_vm3 = vweird.f32 %v2726_v17 }
  0x84   :  { %2342 = vrsqrt.f32 %v310_v2  ;;  %v327_v11 = vmul.f32 %v2339_v3, %v326_v8  ;;  %v110_v59 = vrot.slane %v109_v45, 4 }
  0x85   :  { %2344 = vrsqrt.f32 %v2718_v62 }
  0x86   :  { %v328_v13 = vmul.f32 0.5, %v327_v11  ;;  %2346 = vrsqrt.f32 %v2726_v17  ;;  %v111_v8 = vadd.f32 %v110_v59, %v109_v45 }
  0x87   :  { %2348 = vrsqrt.f32 %v2747_v51 }
  0x88   :  { %v329_v22 = vsub.f32 1.5, %v328_v13  ;;  %2350 = vrsqrt.f32 %v122_v46  ;;  %v284_v13 = vpop.xlane.xlu1 %283 }
  0x89   :  { %v2724_v15 = vpop.eup %2340  ;;  %v2803_v48 = vmax.f32 %v284_v13, 1e-24 }
  0x8a   :  { %v2343_v16 = vpop.eup %2342  ;;  %v356_v25 = vmul.f32 %v2724_v15, %v2720_v63  ;;  %v330_v34 = vmul.f32 %v2339_v3, %v329_v22  ;;  %vm362_vm10 = vweird.f32 %v2724_v15  ;;  %v287_v63 = vpop.xlane.xlu2 %286 }
  0x8b   :  { %v2728_v21 = vpop.eup %2344  ;;  %v336_v23 = vmul.f32 %v2343_v16, %v310_v2  ;;  %vm342_vm4 = vweird.f32 %v2343_v16  ;;  %vm2799_vm12 = vmor %vm361_vm9, %vm362_vm10  ;;  %2352 = vrsqrt.f32 %v2803_v48 }
  0x8c   :  { %v346_v33 = vmul.f32 %v2728_v21, %v2718_v62  ;;  %v357_v40 = vmul.f32 %v2724_v15, %v356_v25  ;;  %v334_v55 = vsel %vm333_vm5, %v2339_v3, %v330_v34  ;;  %v2754_v60 = vpop.eup %2346  ;;  %vm343_vm7 = vmor %vm341_vm6, %vm342_vm4  ;;  %vm352_vm11 = vweird.f32 %v2728_v21  ;;  %v281_v25 = vpop.xlane.xlu0 %280 }
  0x8d   :  { %v337_v26 = vmul.f32 %v2343_v16, %v336_v23  ;;  %v485_v57 = vmul.f32 %v334_v55, %v2512_v1  ;;  %v366_v3 = vmul.f32 %v2754_v60, %v2726_v17  ;;  %v2763_v11 = vpop.eup %2348  ;;  %v112_v1 = vrot.slane %v111_v8, 2  ;;  %v2781_v23 = vld [vmem:[%s3786_s2 + $0x20] sm:$0xff]  ;;  %vm2813_vm14 = vmor %vm351_vm8, %vm352_vm11 }
  0x8e   :  { %v347_v42 = vmul.f32 %v2728_v21, %v346_v33  ;;  %v358_v61 = vmul.f32 0.5, %v357_v40  ;;  %v2351_v12 = vpop.eup %2350  ;;  %v376_v30 = vmul.f32 %v2763_v11, %v2747_v51  ;;  %v39_v33 = vmul.f32 %v2781_v23, %v2781_v23 }
  0x8f   :  { %v338_v35 = vmul.f32 0.5, %v337_v26  ;;  %v367_v14 = vmul.f32 %v2754_v60, %v366_v3  ;;  %v113_v22 = vadd.f32 %v112_v1, %v111_v8  ;;  %v47_v34 = vmul.f32 %v2786_v24, %v2786_v24 }
  0x90   :  { %v348_v2 = vmul.f32 0.5, %v347_v42  ;;  %v359_v9 = vsub.f32 1.5, %v358_v61  ;;  %v2807_v41 = vmax.f32 %v281_v25, 1e-24  ;;  %vm191_vm15 = vweird.f32 %v2351_v12 }
  0x91   :  { %v339_v49 = vsub.f32 1.5, %v338_v35  ;;  %v114_v38 = vrot.slane %v113_v22, 1  ;;  %v368_v45 = vmul.f32 0.5, %v367_v14  ;;  %v377_v61 = vmul.f32 %v2763_v11, %v376_v30  ;;  %vm192_vm2 = vmor %vm190_vm13, %vm191_vm15 }
  0x92   :  { %v360_v26 = vmul.f32 %v2724_v15, %v359_v9  ;;  %2354 = vrsqrt.f32 %v2807_v41  ;;  %vm372_vm4 = vweird.f32 %v2754_v60  ;;  %vm381_vm5 = vweird.f32 %v2747_v51 }
  0x93   :  { %v340_v44 = vmul.f32 %v2343_v16, %v339_v49  ;;  %v84_v49 = vsel %vm51_vm1, %v47_v34, 0.0  ;;  %v115_v43 = vadd.f32 %v114_v38, %v113_v22  ;;  %v378_v3 = vmul.f32 0.5, %v377_v61  ;;  %vm2866_vm6 = vmor %vm371_vm3, %vm372_vm4 }
  0x94   :  { %v85_v55 = vadd.f32 %v84_v49, %v39_v33  ;;  %v369_v9 = vsub.f32 1.5, %v368_v45  ;;  %vm401_vm11 = vweird.f32 %v2803_v48  ;;  %vm391_vm13 = vweird.f32 %v2807_v41 }
  0x95   :  { %v344_v56 = vsel %vm343_vm7, %v2343_v16, %v340_v44  ;;  %v185_v16 = vmul.f32 %v2351_v12, %v122_v46  ;;  %v364_v44 = vsel %vm2799_vm12, %v2724_v15, %v360_v26  ;;  %v2834_v46 = vpop.eup %2352  ;;  %vm382_vm7 = vweird.f32 %v2763_v11 }
  0x96   :  { %v486_v58 = vmul.f32 %v344_v56, %v2531_v6  ;;  %v349_v6 = vsub.f32 1.5, %v348_v2  ;;  %v488_v59 = vmul.f32 %v364_v44, %v2526_v5  ;;  %v370_v30 = vmul.f32 %v2754_v60, %v369_v9  ;;  %v290_v44 = vpop.xlane.xlu0 %289 }
  0x97   :  { %v186_v36 = vmul.f32 %v2351_v12, %v185_v16  ;;  %v396_v49 = vmul.f32 %v2834_v46, %v2803_v48  ;;  %vm402_vm12 = vweird.f32 %v2834_v46 }
  0x98   :  { %v2759_v7 = vpack.c.bf16 %v486_v58, %v485_v57  ;;  %v350_v40 = vmul.f32 %v2728_v21, %v349_v6  ;;  %v2821_v57 = vmax.f32 %v115_v43, 1e-24  ;;  %v86_v58 = vrot.slane %v85_v55, 4  ;;  %vm2946_vm3 = vmor %vm401_vm11, %vm402_vm12 }
  0x99   :  { %v187_v42 = vmul.f32 0.5, %v186_v36  ;;  %v374_v45 = vsel %vm2866_vm6, %v2754_v60, %v370_v30  ;;  %v397_v51 = vmul.f32 %v2834_v46, %v396_v49 }
  0x9a   :  { %2197 = vmatmul.msk.bf16.vlgmr.msra.gmra.mxu0 %vm260_vm0, %v2759_v7  ;;  %2205 = vmatmul.msk.bf16.vlgmr.msra.gmra.mxu1 %vm260_vm0, %v2759_v7  ;;  %v354_v62 = vsel %vm2813_vm14, %v2728_v21, %v350_v40  ;;  %2356 = vrsqrt.f32 %v2821_v57  ;;  %v87_v2 = vadd.f32 %v86_v58, %v85_v55  ;;  %vm200_vm8 = vweird.f32 %v2821_v57 }
  0x9b   :  { %2213 = vmatmul.msk.bf16.vlgmr.msra.gmra.mxu2 %vm260_vm0, %v2759_v7  ;;  %2221 = vmatmul.msk.bf16.vlgmr.msra.gmra.mxu3 %vm260_vm0, %v2759_v7  ;;  %v188_v56 = vsub.f32 1.5, %v187_v42  ;;  %v487_v8 = vmul.f32 %v354_v62, %v2507_v0  ;;  %v2843_v0 = vld [vmem:[%s3786_s2 + $0x28] sm:$0xff] }
  0x9c   :  { %v88_v6 = vrot.slane %v87_v2, 2  ;;  %v40_v22 = vmul.f32 %v2843_v0, %v2843_v0 }
  0x9d   :  { %v189_v15 = vmul.f32 %v2351_v12, %v188_v56  ;;  %v2836_v14 = vpack.c.bf16 %v488_v59, %v487_v8  ;;  %v2901_v59 = vmax.f32 %v287_v63, 1e-24 }
  0x9e   :  { %v89_v5 = vadd.f32 %v88_v6, %v87_v2 }
  0x9f   :  { %v193_v1 = vsel %vm192_vm2, %v2351_v12, %v189_v15  ;;  %v379_v12 = vsub.f32 1.5, %v378_v3  ;;  %v2905_v15 = vmax.f32 %v290_v44, 1e-24 }
  0xa0   :  { %v210_v13 = vmul.f32 %v193_v1, %v2702_v47  ;;  %v218_v21 = vmul.f32 %v193_v1, %v2707_v52  ;;  %v2848_v47 = vld [vmem:[%s3786_s2 + $0x68] sm:$0x1]  ;;  %v2850_v52 = vpop.eup %2354  ;;  %v90_v33 = vrot.slane %v89_v5, 1 }
  0xa1   :  { %v48_v25 = vmul.f32 %v2848_v47, %v2848_v47  ;;  %v2357_v26 = vpop.eup %2356  ;;  %v380_v42 = vmul.f32 %v2763_v11, %v379_v12  ;;  %v386_v55 = vmul.f32 %v2850_v52, %v2807_v41  ;;  %vm392_vm14 = vweird.f32 %v2850_v52 }
  0xa2   :  { %v226_v16 = vpack.c.bf16 %v218_v21, %v210_v13  ;;  %v195_v36 = vmul.f32 %v2357_v26, %v2821_v57  ;;  %v91_v17 = vadd.f32 %v90_v33, %v89_v5  ;;  %vm201_vm9 = vweird.f32 %v2357_v26  ;;  %vm2957_vm4 = vmor %vm391_vm13, %vm392_vm14 }
  0xa3   :  { %v92_v38 = vsel %vm51_vm1, %v48_v25, 0.0  ;;  %vm2893_vm1 = vmor %vm381_vm5, %vm382_vm7  ;;  %v489_v57 = vmul.f32 %v374_v45, %v2521_v4  ;;  %v398_v13 = vmul.f32 0.5, %v397_v51  ;;  %v293_v45 = vpop.xlane.xlu1 %292 }
  0xa4   :  { %v2872_v35 = vand.u32 %v2680_v37, %v226_v16  ;;  %v93_v40 = vadd.f32 %v92_v38, %v40_v22  ;;  %v196_v43 = vmul.f32 %v2357_v26, %v195_v36  ;;  %v2897_v56 = vmax.f32 %v91_v17, 1e-24  ;;  %vm202_vm10 = vmor %vm200_vm8, %vm201_vm9 }
  0xa5   :  { %v384_v2 = vsel %vm2893_vm1, %v2763_v11, %v380_v42  ;;  %v399_v34 = vsub.f32 1.5, %v398_v13  ;;  %v296_v42 = vpop.xlane.xlu2 %295  ;;  %vm411_vm8 = vweird.f32 %v2901_v59 }
  0xa6   :  { %1142 = vmatpush.bf16.msrb.mxu2 %v2872_v35  ;;  %v94_v58 = vrot.slane %v93_v40, 4  ;;  %v197_v62 = vmul.f32 0.5, %v196_v43  ;;  %2358 = vrsqrt.f32 %v2897_v56  ;;  %v490_v1 = vmul.f32 %v384_v2, %v2540_v10 }
  0xa7   :  { %2360 = vrsqrt.f32 %v2901_v59  ;;  %vm170_vm15 = vweird.f32 %v2897_v56 }
  0xa8   :  { %v95_v60 = vadd.f32 %v94_v58, %v93_v40  ;;  %v198_v3 = vsub.f32 1.5, %v197_v62  ;;  %2362 = vrsqrt.f32 %v2905_v15  ;;  %v2918_v4 = vpack.c.bf16 %v490_v1, %v489_v57 }
  0xa9   :  { %v400_v40 = vmul.f32 %v2834_v46, %v399_v34  ;;  %v2967_v58 = vmax.f32 %v296_v42, 1e-24 }
  0xaa   :  { %2198 = vmatmul.msk.bf16.gmra.mxu0 %vm260_vm0, %v2836_v14  ;;  %2206 = vmatmul.msk.bf16.gmra.mxu1 %vm260_vm0, %v2836_v14  ;;  %v96_v8 = vrot.slane %v95_v60, 2  ;;  %v199_v9 = vmul.f32 %v2357_v26, %v198_v3 }
  0xab   :  { %2214 = vmatmul.msk.bf16.gmra.mxu2 %vm260_vm0, %v2836_v14  ;;  %2222 = vmatmul.msk.bf16.gmra.mxu3 %vm260_vm0, %v2836_v14  ;;  %v404_v41 = vsel %vm2946_vm3, %v2834_v46, %v400_v40  ;;  %vm441_vm14 = vweird.f32 %v2967_v58 }
  0xac   :  { %1618 = vmatpush.bf16.msra.mxu2 %v2694_v50  ;;  %v387_v50 = vmul.f32 %v2850_v52, %v386_v55  ;;  %v97_v6 = vadd.f32 %v96_v8, %v95_v60  ;;  %v203_v21 = vsel %vm202_vm10, %v2357_v26, %v199_v9  ;;  %v2359_v12 = vpop.eup %2358  ;;  %v2973_v60 = vmax.f32 %v293_v45, 1e-24 }
  0xad   :  { %v211_v11 = vmul.f32 %v203_v21, %v2735_v31  ;;  %v219_v16 = vmul.f32 %v203_v21, %v2740_v32  ;;  %v165_v25 = vmul.f32 %v2359_v12, %v2897_v56  ;;  %v2920_v10 = vpop.eup %2360  ;;  %vm171_vm2 = vweird.f32 %v2359_v12 }
  0xae   :  { %v388_v5 = vmul.f32 0.5, %v387_v50  ;;  %v98_v22 = vrot.slane %v97_v6, 1  ;;  %v2924_v38 = vpop.eup %2362  ;;  %v406_v63 = vmul.f32 %v2920_v10, %v2901_v59  ;;  %vm172_vm5 = vmor %vm170_vm15, %vm171_vm2  ;;  %v492_v57 = vmul.f32 %v404_v41, %v2555_v18  ;;  %v302_v59 = vpop.xlane.xlu1 %301 }
  0xaf   :  { %v227_v30 = vpack.c.bf16 %v219_v16, %v211_v11  ;;  %v166_v36 = vmul.f32 %v2359_v12, %v165_v25  ;;  %v416_v48 = vmul.f32 %v2924_v38, %v2905_v15  ;;  %vm412_vm9 = vweird.f32 %v2920_v10 }
  0xb0   :  { %v99_v33 = vadd.f32 %v98_v22, %v97_v6  ;;  %v389_v26 = vsub.f32 1.5, %v388_v5  ;;  %v407_v62 = vmul.f32 %v2920_v10, %v406_v63  ;;  %vm421_vm10 = vweird.f32 %v2905_v15  ;;  %vm3009_vm12 = vmor %vm411_vm8, %vm412_vm9 }
  0xb1   :  { %v2927_v31 = vand.u32 %v2680_v37, %v227_v30  ;;  %v167_v17 = vmul.f32 0.5, %v166_v36  ;;  %v417_v2 = vmul.f32 %v2924_v38, %v416_v48  ;;  %vm422_vm11 = vweird.f32 %v2924_v38 }
  0xb2   :  { %v121_v32 = vmax.f32 %v99_v33, 1e-24  ;;  %v390_v55 = vmul.f32 %v2850_v52, %v389_v26  ;;  %v408_v1 = vmul.f32 0.5, %v407_v62  ;;  %v299_v33 = vpop.xlane.xlu0 %298  ;;  %vm423_vm13 = vmor %vm421_vm10, %vm422_vm11  ;;  %v3020_v26 = vmax.f32 %v302_v59, 1e-24 }
  0xb3   :  { %1191 = vmatpush.bf16.msrb.mxu3 %v2927_v31  ;;  %v168_v43 = vsub.f32 1.5, %v167_v17  ;;  %v3022_v17 = vmax.f32 %v299_v33, 1e-24  ;;  %vm431_vm2 = vweird.f32 %v2973_v60 }
  0xb4   :  { %2364 = vrsqrt.f32 %v121_v32  ;;  %vm180_vm6 = vweird.f32 %v121_v32  ;;  %v409_v18 = vsub.f32 1.5, %v408_v1 }
  0xb5   :  { %v169_v61 = vmul.f32 %v2359_v12, %v168_v43  ;;  %2366 = vrsqrt.f32 %v2967_v58 }
  0xb6   :  { %2368 = vrsqrt.f32 %v2973_v60 }
  0xb7   :  { %1667 = vmatpush.bf16.msra.mxu3 %v2710_v54  ;;  %v173_v51 = vsel %vm172_vm5, %v2359_v12, %v169_v61  ;;  %v394_v54 = vsel %vm2957_vm4, %v2850_v52, %v390_v55  ;;  %v418_v52 = vmul.f32 0.5, %v417_v2  ;;  %2370 = vrsqrt.f32 %v3020_v26 }
  0xb8   :  { %v208_v3 = vmul.f32 %v173_v51, %v2781_v23  ;;  %v216_v50 = vmul.f32 %v173_v51, %v2786_v24  ;;  %v491_v9 = vmul.f32 %v394_v54, %v2560_v19  ;;  %2372 = vrsqrt.f32 %v3022_v17 }
  0xb9   :  { %v419_v19 = vsub.f32 1.5, %v418_v52 }
  0xba   :  { %2199 = vmatmul.msk.bf16.gmra.mxu0 %vm260_vm0, %v2918_v4  ;;  %2207 = vmatmul.msk.bf16.gmra.mxu1 %vm260_vm0, %v2918_v4  ;;  %v2365_v56 = vpop.eup %2364  ;;  %v224_v46 = vpack.c.bf16 %v216_v50, %v208_v3  ;;  %v2989_v23 = vpack.c.bf16 %v492_v57, %v491_v9 }
  0xbb   :  { %2215 = vmatmul.msk.bf16.gmra.mxu2 %vm260_vm0, %v2918_v4  ;;  %2223 = vmatmul.msk.bf16.gmra.mxu3 %vm260_vm0, %v2918_v4  ;;  %v175_v8 = vmul.f32 %v2365_v56, %v121_v32  ;;  %vm181_vm7 = vweird.f32 %v2365_v56  ;;  %v2991_v24 = vpop.eup %2366  ;;  %v420_v25 = vmul.f32 %v2924_v38, %v419_v19 }
  0xbc   :  { %v2986_v13 = vand.u32 %v2680_v37, %v224_v46  ;;  %v2994_v12 = vpop.eup %2368  ;;  %vm182_vm1 = vmor %vm180_vm6, %vm181_vm7  ;;  %v436_v15 = vmul.f32 %v2991_v24, %v2967_v58  ;;  %vm442_vm15 = vweird.f32 %v2991_v24  ;;  %vm461_vm6 = vweird.f32 %v3020_v26 }
  0xbd   :  { %v176_v6 = vmul.f32 %v2365_v56, %v175_v8  ;;  %v426_v30 = vmul.f32 %v2994_v12, %v2973_v60  ;;  %v424_v49 = vsel %vm423_vm13, %v2924_v38, %v420_v25  ;;  %v3041_v44 = vpop.eup %2370  ;;  %vm432_vm3 = vweird.f32 %v2994_v12  ;;  %vm3072_vm4 = vmor %vm441_vm14, %vm442_vm15 }
  0xbe   :  { %1044 = vmatpush.bf16.msrb.mxu0 %v2986_v13  ;;  %v437_v63 = vmul.f32 %v2991_v24, %v436_v15  ;;  %v494_v43 = vmul.f32 %v424_v49, %v2579_v27  ;;  %v3043_v45 = vpop.eup %2372  ;;  %v3065_v27 = vld [vmem:[%s3785_s1] sm:$0xff]  ;;  %v456_v54 = vmul.f32 %v3041_v44, %v3020_v26  ;;  %vm433_vm5 = vmor %vm431_vm2, %vm432_vm3  ;;  %vm462_vm7 = vweird.f32 %v3041_v44 }
  0xbf   :  { %v177_v21 = vmul.f32 0.5, %v176_v6  ;;  %v427_v42 = vmul.f32 %v2994_v12, %v426_v30  ;;  %v525_v58 = vmul.f32 %v3065_v27, %v3065_v27  ;;  %v446_v2 = vmul.f32 %v3043_v45, %v3022_v17  ;;  %vm463_vm9 = vmor %vm461_vm6, %vm462_vm7  ;;  %v2411_v49 = vld [vmem:[%s3784_s0 + $0x60] sm:$0xff] }
  0xc0   :  { %v457_v1 = vmul.f32 %v3041_v44, %v456_v54  ;;  %vm452_vm8 = vweird.f32 %v3043_v45  ;;  %v2412_v54 = vld [vmem:[%s3784_s0 + $0x70] sm:$0xff] }
  0xc1   :  { %v178_v5 = vsub.f32 1.5, %v177_v21  ;;  %v428_v55 = vmul.f32 0.5, %v427_v42  ;;  %v541_v50 = vsel %vm260_vm0, %v525_v58, 0.0  ;;  %v447_v60 = vmul.f32 %v3043_v45, %v446_v2 }
  0xc2   :  { %1520 = vmatpush.bf16.msra.mxu0 %v2685_v39  ;;  %v410_v39 = vmul.f32 %v2920_v10, %v409_v18  ;;  %542 = vadd.xlane.f32.xlu1 %v541_v50  ;;  %v458_v21 = vmul.f32 0.5, %v457_v1 }
  0xc3   :  { %v179_v11 = vmul.f32 %v2365_v56, %v178_v5  ;;  %v429_v48 = vsub.f32 1.5, %v428_v55  ;;  %v448_v18 = vmul.f32 0.5, %v447_v60 }
  0xc4   :  { %v414_v40 = vsel %vm3009_vm12, %v2920_v10, %v410_v39  ;;  %v438_v10 = vmul.f32 0.5, %v437_v63 }
  0xc5   :  { %v183_v16 = vsel %vm182_vm1, %v2365_v56, %v179_v11  ;;  %v430_v51 = vmul.f32 %v2994_v12, %v429_v48  ;;  %v308_v56 = vpop.xlane.xlu0 %307  ;;  %vm451_vm1 = vweird.f32 %v3022_v17  ;;  %v2410_v17 = vld [vmem:[%s3784_s0 + $0x68] sm:$0xff]  ;;  %v3162_v48 = vld [vmem:[%s3785_s1 + $0x20] sm:$0xff] }
  0xc6   :  { %v209_v34 = vmul.f32 %v183_v16, %v2843_v0  ;;  %v217_v36 = vmul.f32 %v183_v16, %v2848_v47  ;;  %v493_v47 = vmul.f32 %v414_v40, %v2565_v20  ;;  %v3060_v20 = vld [vmem:[%s3785_s1 + $0x8] sm:$0xff]  ;;  %v3087_v57 = vmax.f32 %v308_v56, 1e-24  ;;  %vm453_vm10 = vmor %vm451_vm1, %vm452_vm8  ;;  %v2413_v56 = vld [vmem:[%s3784_s0 + $0x78] sm:$0xff] }
  0xc7   :  { %v526_v61 = vmul.f32 %v3060_v20, %v3060_v20  ;;  %v434_v9 = vsel %vm433_vm5, %v2994_v12, %v430_v51  ;;  %v449_v12 = vsub.f32 1.5, %v448_v18 }
  0xc8   :  { %v225_v32 = vpack.c.bf16 %v217_v36, %v209_v34  ;;  %v3039_v38 = vpack.c.bf16 %v494_v43, %v493_v47  ;;  %v495_v52 = vmul.f32 %v434_v9, %v2584_v28  ;;  %v3118_v28 = vld [vmem:[%s3785_s1 + $0x18] sm:$0xff]  ;;  %vm481_vm13 = vweird.f32 %v3087_v57 }
  0xc9   :  { %v544_v3 = vsel %vm260_vm0, %v526_v61, 0.0  ;;  %v528_v39 = vmul.f32 %v3118_v28, %v3118_v28  ;;  %v450_v22 = vmul.f32 %v3043_v45, %v449_v12 }
  0xca   :  { %2200 = vmatmul.msk.bf16.gmra.mxu0 %vm260_vm0, %v2989_v23  ;;  %2208 = vmatmul.msk.bf16.gmra.mxu1 %vm260_vm0, %v2989_v23  ;;  %v3031_v0 = vand.u32 %v2680_v37, %v225_v32  ;;  %v439_v37 = vsub.f32 1.5, %v438_v10 }
  0xcb   :  { %2216 = vmatmul.msk.bf16.gmra.mxu2 %vm260_vm0, %v2989_v23  ;;  %2224 = vmatmul.msk.bf16.gmra.mxu3 %vm260_vm0, %v2989_v23  ;;  %v550_v30 = vsel %vm260_vm0, %v528_v39, 0.0  ;;  %v454_v36 = vsel %vm453_vm10, %v3043_v45, %v450_v22  ;;  %v3167_v45 = vld [vmem:[%s3785_s1 + $0x28] sm:$0xff] }
  0xcc   :  { %1093 = vmatpush.bf16.msrb.mxu1 %v3031_v0  ;;  %v440_v41 = vmul.f32 %v2991_v24, %v439_v37  ;;  %545 = vadd.xlane.f32.xlu2 %v544_v3  ;;  %v497_v63 = vmul.f32 %v2411_v49, %v454_v36  ;;  %v530_v61 = vmul.f32 %v3167_v45, %v3167_v45  ;;  %v520_v49 = vld [vmem:[%s3785_s1 + $0x58] sm:$0xff] }
  0xcd   :  { %551 = vadd.xlane.f32.xlu1 %v550_v30 }
  0xce   :  { %v444_v46 = vsel %vm3072_vm4, %v2991_v24, %v440_v41  ;;  %v459_v24 = vsub.f32 1.5, %v458_v21  ;;  %v556_v41 = vsel %vm260_vm0, %v530_v61, 0.0 }
  0xcf   :  { %v496_v6 = vmul.f32 %v444_v46, %v2589_v29  ;;  %v3123_v29 = vld [vmem:[%s3785_s1 + $0x10] sm:$0xff] }
  0xd0   :  { %1569 = vmatpush.bf16.msra.mxu1 %v2688_v53  ;;  %v305_v53 = vpop.xlane.xlu2 %304  ;;  %v527_v59 = vmul.f32 %v3123_v29, %v3123_v29  ;;  %v460_v16 = vmul.f32 %v3041_v44, %v459_v24  ;;  %v517_v24 = vld [vmem:[%s3785_s1 + $0x40] sm:$0xff] }
  0xd1   :  { %v3085_v8 = vmax.f32 %v305_v53, 1e-24  ;;  %v3099_v5 = vpack.c.bf16 %v496_v6, %v495_v52  ;;  %v529_v53 = vmul.f32 %v3162_v48, %v3162_v48 }
  0xd2   :  { %v547_v33 = vsel %vm260_vm0, %v527_v59, 0.0  ;;  %v464_v34 = vsel %vm463_vm9, %v3041_v44, %v460_v16 }
  0xd3   :  { %2374 = vrsqrt.f32 %v3085_v8  ;;  %548 = vadd.xlane.f32.xlu0 %v547_v33  ;;  %v498_v40 = vmul.f32 %v2410_v17, %v464_v34  ;;  %vm471_vm11 = vweird.f32 %v3085_v8  ;;  %v553_v58 = vsel %vm260_vm0, %v529_v53, 0.0 }
  0xd4   :  { %2376 = vrsqrt.f32 %v3087_v57  ;;  %554 = vadd.xlane.f32.xlu2 %v553_v58 }
  0xd5   :  { %v3145_v43 = vpack.c.bf16 %v498_v40, %v497_v63  ;;  %v519_v40 = vld [vmem:[%s3785_s1 + $0x50] sm:$0xff] }
  0xd9   :  { %v3101_v19 = vpop.eup %2374 }
  0xda   :  { %2201 = vmatmul.msk.bf16.gmra.mxu0 %vm260_vm0, %v3039_v38  ;;  %2209 = vmatmul.msk.bf16.gmra.mxu1 %vm260_vm0, %v3039_v38  ;;  %v2377_v11 = vpop.eup %2376  ;;  %v466_v25 = vmul.f32 %v3101_v19, %v3085_v8  ;;  %vm472_vm12 = vweird.f32 %v3101_v19  ;;  %v3195_v8 = vld [vmem:[%s3785_s1 + $0x38] sm:$0xff] }
  0xdb   :  { %2217 = vmatmul.msk.bf16.gmra.mxu2 %vm260_vm0, %v3039_v38  ;;  %2225 = vmatmul.msk.bf16.gmra.mxu3 %vm260_vm0, %v3039_v38  ;;  %v476_v15 = vmul.f32 %v2377_v11, %v3087_v57  ;;  %vm482_vm14 = vweird.f32 %v2377_v11  ;;  %vm473_vm15 = vmor %vm471_vm11, %vm472_vm12  ;;  %v3200_v57 = vld [vmem:[%s3785_s1 + $0x30] sm:$0xff]  ;;  %v532_v46 = vmul.f32 %v3195_v8, %v3195_v8 }
  0xdc   :  { %v467_v26 = vmul.f32 %v3101_v19, %v466_v25  ;;  %vm483_vm2 = vmor %vm481_vm13, %vm482_vm14  ;;  %557 = vadd.xlane.f32.xlu0 %v556_v41  ;;  %v531_v9 = vmul.f32 %v3200_v57, %v3200_v57 }
  0xdd   :  { %v477_v32 = vmul.f32 %v2377_v11, %v476_v15  ;;  %v562_v1 = vsel %vm260_vm0, %v532_v46, 0.0 }
  0xde   :  { %v468_v42 = vmul.f32 0.5, %v467_v26  ;;  %v559_v60 = vsel %vm260_vm0, %v531_v9, 0.0  ;;  %563 = vadd.xlane.f32.xlu2 %v562_v1  ;;  %v522_v1 = vld [vmem:[%s3785_s1 + $0x68] sm:$0xff] }
  0xdf   :  { %v478_v47 = vmul.f32 0.5, %v477_v32  ;;  %560 = vadd.xlane.f32.xlu1 %v559_v60  ;;  %v521_v60 = vld [vmem:[%s3785_s1 + $0x60] sm:$0xff] }
  0xe0   :  { %v469_v10 = vsub.f32 1.5, %v468_v42 }
  0xe1   :  { %v479_v55 = vsub.f32 1.5, %v478_v47  ;;  %v535_v47 = vmul.f32 %v519_v40, %v519_v40 }
  0xe2   :  { %v470_v44 = vmul.f32 %v3101_v19, %v469_v10  ;;  %v536_v10 = vmul.f32 %v520_v49, %v520_v49 }
  0xe3   :  { %v480_v37 = vmul.f32 %v2377_v11, %v479_v55 }
  0xe4   :  { %v474_v62 = vsel %vm473_vm15, %v3101_v19, %v470_v44  ;;  %v518_v19 = vld [vmem:[%s3785_s1 + $0x48] sm:$0xff]  ;;  %v574_v41 = vsel %vm260_vm0, %v536_v10, 0.0 }
  0xe5   :  { %v484_v51 = vsel %vm483_vm2, %v2377_v11, %v480_v37  ;;  %v499_v2 = vmul.f32 %v2412_v54, %v474_v62  ;;  %v534_v39 = vmul.f32 %v518_v19, %v518_v19 }
  0xe6   :  { %v500_v3 = vmul.f32 %v2413_v56, %v484_v51 }
  0xe7   :  { %v568_v15 = vsel %vm260_vm0, %v534_v39, 0.0 }
  0xe8   :  { %v3182_v50 = vpack.c.bf16 %v500_v3, %v499_v2  ;;  %569 = vadd.xlane.f32.xlu1 %v568_v15 }
  0xea   :  { %2202 = vmatmul.msk.bf16.gmra.mxu0 %vm260_vm0, %v3099_v5  ;;  %2210 = vmatmul.msk.bf16.gmra.mxu1 %vm260_vm0, %v3099_v5 }
  0xeb   :  { %2218 = vmatmul.msk.bf16.gmra.mxu2 %vm260_vm0, %v3099_v5  ;;  %2226 = vmatmul.msk.bf16.gmra.mxu3 %vm260_vm0, %v3099_v5 }
  0xfa   :  { %2203 = vmatmul.msk.bf16.gmra.mxu0 %vm260_vm0, %v3145_v43  ;;  %2211 = vmatmul.msk.bf16.gmra.mxu1 %vm260_vm0, %v3145_v43 }
  0xfb   :  { %2219 = vmatmul.msk.bf16.gmra.mxu2 %vm260_vm0, %v3145_v43  ;;  %2227 = vmatmul.msk.bf16.gmra.mxu3 %vm260_vm0, %v3145_v43 }
 0x10a   :  { %2204 = vmatmul.msk.bf16.gmra.mxu0 %vm260_vm0, %v3182_v50  ;;  %2212 = vmatmul.msk.bf16.gmra.mxu1 %vm260_vm0, %v3182_v50 }
 0x10b   :  { %2220 = vmatmul.msk.bf16.gmra.mxu2 %vm260_vm0, %v3182_v50  ;;  %2228 = vmatmul.msk.bf16.gmra.mxu3 %vm260_vm0, %v3182_v50 }
 0x117   :  { %v850_v6 = vpop.f32.mrf.mxu0  ;;  %v899_v52 = vpop.f32.mrf.mxu1 }
 0x118   :  { %v1233_v21 = vmul.f32 100.0, %v850_v6  ;;  %v1234_v18 = vmul.f32 100.0, %v899_v52 }
 0x11a   :  { %1361 = vst [vmem:[#allocation2] sm:$0xff] %v1233_v21  ;;  %2229 = vmatmul.msk.bf16.vlgmr.msrb.gmra.mxu0 %vm260_vm0, %v2759_v7  ;;  %2237 = vmatmul.msk.bf16.vlgmr.msrb.gmra.mxu1 %vm260_vm0, %v2759_v7  ;;  %v538_v21 = vmul.f32 %v522_v1, %v522_v1 }
 0x11b   :  { %1362 = vst [vmem:[#allocation2 + $0x8] sm:$0xff] %v1234_v18  ;;  %2245 = vmatmul.msk.bf16.vlgmr.msrb.gmra.mxu2 %vm260_vm0, %v2759_v7  ;;  %2253 = vmatmul.msk.bf16.vlgmr.msrb.gmra.mxu3 %vm260_vm0, %v2759_v7  ;;  %v533_v7 = vmul.f32 %v517_v24, %v517_v24  ;;  %v537_v18 = vmul.f32 %v521_v60, %v521_v60 }
 0x11c   :  { %1814 = vmatpush.bf16.msrb.mxu2 %v2872_v35  ;;  %1863 = vmatpush.bf16.msrb.mxu3 %v2927_v31 }
 0x11d   :  { %1716 = vmatpush.bf16.msrb.mxu0 %v2986_v13  ;;  %1765 = vmatpush.bf16.msrb.mxu1 %v3031_v0  ;;  %v565_v30 = vsel %vm260_vm0, %v533_v7, 0.0 }
 0x11e   :  { %v948_v12 = vpop.f32.mrf.mxu2  ;;  %v997_v11 = vpop.f32.mrf.mxu3  ;;  %566 = vadd.xlane.f32.xlu0 %v565_v30 }
 0x11f   :  { %v1235_v59 = vmul.f32 100.0, %v948_v12  ;;  %v1236_v35 = vmul.f32 100.0, %v997_v11  ;;  %v852_v16 = vpop.f32.mrf.mxu0  ;;  %v901_v31 = vpop.f32.mrf.mxu1 }
 0x120   :  { %v1241_v22 = vmul.f32 100.0, %v852_v16  ;;  %v1242_v25 = vmul.f32 100.0, %v901_v31 }
 0x121   :  { %1363 = vst [vmem:[#allocation2 + $0x10] sm:$0xff] %v1235_v59  ;;  %v577_v59 = vsel %vm260_vm0, %v537_v18, 0.0 }
 0x122   :  { %1364 = vst [vmem:[#allocation2 + $0x18] sm:$0xff] %v1236_v35  ;;  %578 = vadd.xlane.f32.xlu1 %v577_v59 }
 0x123   :  { %1369 = vst [vmem:[#allocation2 + $0x40] sm:$0xff] %v1241_v22 }
 0x124   :  { %1370 = vst [vmem:[#allocation2 + $0x48] sm:$0xff] %v1242_v25 }
 0x126   :  { %v950_v13 = vpop.f32.mrf.mxu2  ;;  %v999_v0 = vpop.f32.mrf.mxu3  ;;  %575 = vadd.xlane.f32.xlu0 %v574_v41 }
 0x127   :  { %v1243_v33 = vmul.f32 100.0, %v950_v13  ;;  %v1244_v34 = vmul.f32 100.0, %v999_v0  ;;  %v855_v36 = vpop.f32.mrf.mxu0  ;;  %v904_v26 = vpop.f32.mrf.mxu1  ;;  %v524_v0 = vld [vmem:[%s3785_s1 + $0x78] sm:$0xff] }
 0x128   :  { %v1249_v32 = vmul.f32 100.0, %v855_v36  ;;  %v1250_v17 = vmul.f32 100.0, %v904_v26  ;;  %v540_v26 = vmul.f32 %v524_v0, %v524_v0 }
 0x129   :  { %1371 = vst [vmem:[#allocation2 + $0x50] sm:$0xff] %v1243_v33  ;;  %v523_v33 = vld [vmem:[%s3785_s1 + $0x70] sm:$0xff] }
 0x12a   :  { %1372 = vst [vmem:[#allocation2 + $0x58] sm:$0xff] %v1244_v34  ;;  %2230 = vmatmul.msk.bf16.gmra.mxu0 %vm260_vm0, %v2836_v14  ;;  %2238 = vmatmul.msk.bf16.gmra.mxu1 %vm260_vm0, %v2836_v14 }
 0x12b   :  { %1377 = vst [vmem:[#allocation2 + $0x80] sm:$0xff] %v1249_v32  ;;  %2246 = vmatmul.msk.bf16.gmra.mxu2 %vm260_vm0, %v2836_v14  ;;  %2254 = vmatmul.msk.bf16.gmra.mxu3 %vm260_vm0, %v2836_v14  ;;  %v571_v14 = vsel %vm260_vm0, %v535_v47, 0.0  ;;  %v539_v32 = vmul.f32 %v523_v33, %v523_v33 }
 0x12c   :  { %1378 = vst [vmem:[#allocation2 + $0x88] sm:$0xff] %v1250_v17  ;;  %572 = vadd.xlane.f32.xlu2 %v571_v14 }
 0x12d   :  { %v583_v10 = vsel %vm260_vm0, %v539_v32, 0.0 }
 0x12e   :  { %v953_v63 = vpop.f32.mrf.mxu2  ;;  %v1002_v42 = vpop.f32.mrf.mxu3  ;;  %584 = vadd.xlane.f32.xlu0 %v583_v10 }
 0x12f   :  { %v1251_v55 = vmul.f32 100.0, %v953_v63  ;;  %v1252_v44 = vmul.f32 100.0, %v1002_v42  ;;  %v857_v37 = vpop.f32.mrf.mxu0  ;;  %v906_v53 = vpop.f32.mrf.mxu1 }
 0x130   :  { %v1257_v61 = vmul.f32 100.0, %v857_v37  ;;  %v1258_v58 = vmul.f32 100.0, %v906_v53 }
 0x131   :  { %1379 = vst [vmem:[#allocation2 + $0x90] sm:$0xff] %v1251_v55 }
 0x132   :  { %1380 = vst [vmem:[#allocation2 + $0x98] sm:$0xff] %v1252_v44 }
 0x133   :  { %1385 = vst [vmem:[#allocation2 + $0xc0] sm:$0xff] %v1257_v61 }
 0x134   :  { %1386 = vst [vmem:[#allocation2 + $0xc8] sm:$0xff] %v1258_v58 }
 0x136   :  { %v955_v62 = vpop.f32.mrf.mxu2  ;;  %v1004_v51 = vpop.f32.mrf.mxu3 }
 0x137   :  { %v1259_v54 = vmul.f32 100.0, %v955_v62  ;;  %v1260_v2 = vmul.f32 100.0, %v1004_v51  ;;  %v860_v56 = vpop.f32.mrf.mxu0  ;;  %v909_v3 = vpop.f32.mrf.mxu1 }
 0x138   :  { %v1265_v46 = vmul.f32 100.0, %v860_v56  ;;  %v1266_v9 = vmul.f32 100.0, %v909_v3 }
 0x139   :  { %1387 = vst [vmem:[#allocation2 + $0xd0] sm:$0xff] %v1259_v54 }
 0x13a   :  { %1388 = vst [vmem:[#allocation2 + $0xd8] sm:$0xff] %v1260_v2  ;;  %2231 = vmatmul.msk.bf16.gmra.mxu0 %vm260_vm0, %v2918_v4  ;;  %2239 = vmatmul.msk.bf16.gmra.mxu1 %vm260_vm0, %v2918_v4 }
 0x13b   :  { %1393 = vst [vmem:[#allocation2 + $0x100] sm:$0xff] %v1265_v46  ;;  %2247 = vmatmul.msk.bf16.gmra.mxu2 %vm260_vm0, %v2918_v4  ;;  %2255 = vmatmul.msk.bf16.gmra.mxu3 %vm260_vm0, %v2918_v4  ;;  %v580_v4 = vsel %vm260_vm0, %v538_v21, 0.0 }
 0x13c   :  { %1394 = vst [vmem:[#allocation2 + $0x108] sm:$0xff] %v1266_v9  ;;  %581 = vadd.xlane.f32.xlu2 %v580_v4 }
 0x13e   :  { %v958_v6 = vpop.f32.mrf.mxu2  ;;  %v1007_v52 = vpop.f32.mrf.mxu3 }
 0x13f   :  { %v1267_v19 = vmul.f32 100.0, %v958_v6  ;;  %v1268_v24 = vmul.f32 100.0, %v1007_v52  ;;  %v862_v12 = vpop.f32.mrf.mxu0  ;;  %v911_v11 = vpop.f32.mrf.mxu1 }
 0x140   :  { %v1273_v39 = vmul.f32 100.0, %v862_v12  ;;  %v1274_v7 = vmul.f32 100.0, %v911_v11  ;;  %v543_v12 = vpop.xlane.xlu1 %542 }
 0x141   :  { %1395 = vst [vmem:[#allocation2 + $0x110] sm:$0xff] %v1267_v19 }
 0x142   :  { %1396 = vst [vmem:[#allocation2 + $0x118] sm:$0xff] %v1268_v24  ;;  %v546_v24 = vpop.xlane.xlu2 %545 }
 0x143   :  { %1401 = vst [vmem:[#allocation2 + $0x140] sm:$0xff] %v1273_v39 }
 0x144   :  { %1402 = vst [vmem:[#allocation2 + $0x148] sm:$0xff] %v1274_v7 }
 0x146   :  { %v960_v35 = vpop.f32.mrf.mxu2  ;;  %v1009_v16 = vpop.f32.mrf.mxu3 }
 0x147   :  { %v1275_v31 = vmul.f32 100.0, %v960_v35  ;;  %v1276_v22 = vmul.f32 100.0, %v1009_v16  ;;  %v865_v25 = vpop.f32.mrf.mxu0  ;;  %v914_v15 = vpop.f32.mrf.mxu1  ;;  %v3292_v16 = vmax.f32 %v546_v24, 1e-24 }
 0x148   :  { %v1281_v30 = vmul.f32 100.0, %v865_v25  ;;  %v1282_v13 = vmul.f32 100.0, %v914_v15  ;;  %v3294_v25 = vmax.f32 %v543_v12, 1e-24 }
 0x149   :  { %1403 = vst [vmem:[#allocation2 + $0x150] sm:$0xff] %v1275_v31  ;;  %2378 = vrsqrt.f32 %v3292_v16  ;;  %vm621_vm3 = vweird.f32 %v3292_v16 }
 0x14a   :  { %1404 = vst [vmem:[#allocation2 + $0x158] sm:$0xff] %v1276_v22  ;;  %2232 = vmatmul.msk.bf16.gmra.mxu0 %vm260_vm0, %v2989_v23  ;;  %2240 = vmatmul.msk.bf16.gmra.mxu1 %vm260_vm0, %v2989_v23  ;;  %2380 = vrsqrt.f32 %v3294_v25  ;;  %vm611_vm5 = vweird.f32 %v3294_v25 }
 0x14b   :  { %1409 = vst [vmem:[#allocation2 + $0x180] sm:$0xff] %v1281_v30  ;;  %2248 = vmatmul.msk.bf16.gmra.mxu2 %vm260_vm0, %v2989_v23  ;;  %2256 = vmatmul.msk.bf16.gmra.mxu3 %vm260_vm0, %v2989_v23  ;;  %v586_v23 = vsel %vm260_vm0, %v540_v26, 0.0 }
 0x14c   :  { %1410 = vst [vmem:[#allocation2 + $0x188] sm:$0xff] %v1282_v13  ;;  %587 = vadd.xlane.f32.xlu1 %v586_v23 }
 0x14e   :  { %v963_v34 = vpop.f32.mrf.mxu2  ;;  %v1012_v36 = vpop.f32.mrf.mxu3 }
 0x14f   :  { %v1283_v17 = vmul.f32 100.0, %v963_v34  ;;  %v1284_v40 = vmul.f32 100.0, %v1012_v36  ;;  %v867_v49 = vpop.f32.mrf.mxu0  ;;  %v916_v63 = vpop.f32.mrf.mxu1 }
 0x150   :  { %v1289_v42 = vmul.f32 100.0, %v867_v49  ;;  %v1290_v47 = vmul.f32 100.0, %v916_v63  ;;  %v3298_v26 = vpop.eup %2378  ;;  %v549_v63 = vpop.xlane.xlu0 %548 }
 0x151   :  { %1411 = vst [vmem:[#allocation2 + $0x190] sm:$0xff] %v1283_v17  ;;  %v3300_v32 = vpop.eup %2380  ;;  %v552_v17 = vpop.xlane.xlu1 %551  ;;  %vm622_vm4 = vweird.f32 %v3298_v26 }
 0x152   :  { %1412 = vst [vmem:[#allocation2 + $0x198] sm:$0xff] %v1284_v40  ;;  %v616_v40 = vmul.f32 %v3298_v26, %v3292_v16  ;;  %v606_v49 = vmul.f32 %v3300_v32, %v3294_v25  ;;  %vm612_vm6 = vweird.f32 %v3300_v32  ;;  %vm3339_vm7 = vmor %vm621_vm3, %vm622_vm4 }
 0x153   :  { %1417 = vst [vmem:[#allocation2 + $0x1c0] sm:$0xff] %v1289_v42  ;;  %vm3348_vm1 = vmor %vm611_vm5, %vm612_vm6 }
 0x154   :  { %1418 = vst [vmem:[#allocation2 + $0x1c8] sm:$0xff] %v1290_v47 }
 0x156   :  { %v965_v55 = vpop.f32.mrf.mxu2  ;;  %v1014_v44 = vpop.f32.mrf.mxu3 }
 0x157   :  { %v1291_v37 = vmul.f32 100.0, %v965_v55  ;;  %v1292_v53 = vmul.f32 100.0, %v1014_v44  ;;  %v870_v61 = vpop.f32.mrf.mxu0  ;;  %v919_v58 = vpop.f32.mrf.mxu1 }
 0x158   :  { %v1297_v14 = vmul.f32 100.0, %v870_v61  ;;  %v1298_v41 = vmul.f32 100.0, %v919_v58  ;;  %v617_v58 = vmul.f32 %v3298_v26, %v616_v40 }
 0x159   :  { %1419 = vst [vmem:[#allocation2 + $0x1d0] sm:$0xff] %v1291_v37  ;;  %v3314_v37 = vmax.f32 %v552_v17, 1e-24 }
 0x15a   :  { %1420 = vst [vmem:[#allocation2 + $0x1d8] sm:$0xff] %v1292_v53  ;;  %2233 = vmatmul.msk.bf16.gmra.mxu0 %vm260_vm0, %v3039_v38  ;;  %2241 = vmatmul.msk.bf16.gmra.mxu1 %vm260_vm0, %v3039_v38 }
 0x15b   :  { %1425 = vst [vmem:[#allocation2 + $0x200] sm:$0xff] %v1297_v14  ;;  %2249 = vmatmul.msk.bf16.gmra.mxu2 %vm260_vm0, %v3039_v38  ;;  %2257 = vmatmul.msk.bf16.gmra.mxu3 %vm260_vm0, %v3039_v38  ;;  %v607_v14 = vmul.f32 %v3300_v32, %v606_v49  ;;  %2382 = vrsqrt.f32 %v3314_v37  ;;  %vm641_vm8 = vweird.f32 %v3314_v37 }
 0x15c   :  { %1426 = vst [vmem:[#allocation2 + $0x208] sm:$0xff] %v1298_v41  ;;  %v618_v41 = vmul.f32 0.5, %v617_v58 }
 0x15e   :  { %v968_v62 = vpop.f32.mrf.mxu2  ;;  %v1017_v51 = vpop.f32.mrf.mxu3 }
 0x15f   :  { %v1299_v54 = vmul.f32 100.0, %v968_v62  ;;  %v1300_v2 = vmul.f32 100.0, %v1017_v51  ;;  %v872_v56 = vpop.f32.mrf.mxu0  ;;  %v921_v3 = vpop.f32.mrf.mxu1  ;;  %v608_v62 = vmul.f32 0.5, %v607_v14 }
 0x160   :  { %v1305_v46 = vmul.f32 100.0, %v872_v56  ;;  %v1306_v9 = vmul.f32 100.0, %v921_v3 }
 0x161   :  { %1427 = vst [vmem:[#allocation2 + $0x210] sm:$0xff] %v1299_v54 }
 0x162   :  { %1428 = vst [vmem:[#allocation2 + $0x218] sm:$0xff] %v1300_v2 }
 0x163   :  { %1433 = vst [vmem:[#allocation2 + $0x240] sm:$0xff] %v1305_v46 }
 0x164   :  { %1434 = vst [vmem:[#allocation2 + $0x248] sm:$0xff] %v1306_v9 }
 0x166   :  { %v970_v1 = vpop.f32.mrf.mxu2  ;;  %v1019_v60 = vpop.f32.mrf.mxu3 }
 0x167   :  { %v1307_v6 = vmul.f32 100.0, %v970_v1  ;;  %v1308_v52 = vmul.f32 100.0, %v1019_v60  ;;  %v875_v21 = vpop.f32.mrf.mxu0  ;;  %v924_v18 = vpop.f32.mrf.mxu1 }
 0x168   :  { %v1313_v38 = vmul.f32 100.0, %v875_v21  ;;  %v1314_v19 = vmul.f32 100.0, %v924_v18  ;;  %v3322_v60 = vpop.eup %2382  ;;  %v555_v18 = vpop.xlane.xlu2 %554 }
 0x169   :  { %1435 = vst [vmem:[#allocation2 + $0x250] sm:$0xff] %v1307_v6  ;;  %v619_v6 = vsub.f32 1.5, %v618_v41  ;;  %v636_v12 = vmul.f32 %v3322_v60, %v3314_v37  ;;  %vm642_vm9 = vweird.f32 %v3322_v60 }
 0x16a   :  { %1436 = vst [vmem:[#allocation2 + $0x258] sm:$0xff] %v1308_v52  ;;  %2234 = vmatmul.msk.bf16.gmra.mxu0 %vm260_vm0, %v3099_v5  ;;  %2242 = vmatmul.msk.bf16.gmra.mxu1 %vm260_vm0, %v3099_v5  ;;  %v609_v52 = vsub.f32 1.5, %v608_v62  ;;  %vm3387_vm12 = vmor %vm641_vm8, %vm642_vm9  ;;  %v561_v62 = vpop.xlane.xlu1 %560 }
 0x16b   :  { %1441 = vst [vmem:[#allocation2 + $0x280] sm:$0xff] %v1313_v38  ;;  %2250 = vmatmul.msk.bf16.gmra.mxu2 %vm260_vm0, %v3099_v5  ;;  %2258 = vmatmul.msk.bf16.gmra.mxu3 %vm260_vm0, %v3099_v5  ;;  %v620_v38 = vmul.f32 %v3298_v26, %v619_v6 }
 0x16c   :  { %1442 = vst [vmem:[#allocation2 + $0x288] sm:$0xff] %v1314_v19  ;;  %v610_v24 = vmul.f32 %v3300_v32, %v609_v52 }
 0x16e   :  { %v973_v11 = vpop.f32.mrf.mxu2  ;;  %v1022_v39 = vpop.f32.mrf.mxu3 }
 0x16f   :  { %v1315_v7 = vmul.f32 100.0, %v973_v11  ;;  %v1316_v4 = vmul.f32 100.0, %v1022_v39  ;;  %v877_v59 = vpop.f32.mrf.mxu0  ;;  %v926_v35 = vpop.f32.mrf.mxu1 }
 0x170   :  { %v1321_v31 = vmul.f32 100.0, %v877_v59  ;;  %v1322_v22 = vmul.f32 100.0, %v926_v35  ;;  %v558_v39 = vpop.xlane.xlu0 %557  ;;  %v564_v37 = vpop.xlane.xlu2 %563 }
 0x171   :  { %1443 = vst [vmem:[#allocation2 + $0x290] sm:$0xff] %v1315_v7 }
 0x172   :  { %1444 = vst [vmem:[#allocation2 + $0x298] sm:$0xff] %v1316_v4 }
 0x173   :  { %1449 = vst [vmem:[#allocation2 + $0x2c0] sm:$0xff] %v1321_v31 }
 0x174   :  { %1450 = vst [vmem:[#allocation2 + $0x2c8] sm:$0xff] %v1322_v22  ;;  %v3352_v22 = vmax.f32 %v555_v18, 1e-24  ;;  %v3402_v18 = vmax.f32 %v561_v62, 1e-24 }
 0x176   :  { %v975_v5 = vpop.f32.mrf.mxu2  ;;  %v1024_v15 = vpop.f32.mrf.mxu3  ;;  %vm651_vm14 = vweird.f32 %v3352_v22 }
 0x177   :  { %v1323_v30 = vmul.f32 100.0, %v975_v5  ;;  %v1324_v13 = vmul.f32 100.0, %v1024_v15  ;;  %v880_v0 = vpop.f32.mrf.mxu0  ;;  %v929_v33 = vpop.f32.mrf.mxu1  ;;  %v3354_v15 = vmax.f32 %v558_v39, 1e-24 }
 0x178   :  { %v1329_v34 = vmul.f32 100.0, %v880_v0  ;;  %v1330_v36 = vmul.f32 100.0, %v929_v33  ;;  %v637_v0 = vmul.f32 %v3322_v60, %v636_v12 }
 0x179   :  { %1451 = vst [vmem:[#allocation2 + $0x2d0] sm:$0xff] %v1323_v30  ;;  %v624_v30 = vsel %vm3339_vm7, %v3298_v26, %v620_v38  ;;  %vm661_vm2 = vweird.f32 %v3354_v15 }
 0x17a   :  { %1452 = vst [vmem:[#allocation2 + $0x2d8] sm:$0xff] %v1324_v13  ;;  %2235 = vmatmul.msk.bf16.gmra.mxu0 %vm260_vm0, %v3145_v43  ;;  %2243 = vmatmul.msk.bf16.gmra.mxu1 %vm260_vm0, %v3145_v43  ;;  %v614_v13 = vsel %vm3348_vm1, %v3300_v32, %v610_v24  ;;  %v638_v26 = vmul.f32 0.5, %v637_v0  ;;  %vm671_vm1 = vweird.f32 %v3402_v18 }
 0x17b   :  { %1457 = vst [vmem:[#allocation2 + $0x300] sm:$0xff] %v1329_v34  ;;  %2251 = vmatmul.msk.bf16.gmra.mxu2 %vm260_vm0, %v3145_v43  ;;  %2259 = vmatmul.msk.bf16.gmra.mxu3 %vm260_vm0, %v3145_v43  ;;  %v3316_v43 = vmax.f32 %v549_v63, 1e-24  ;;  %v766_v34 = vmul.f32 %v624_v30, %v3060_v20 }
 0x17c   :  { %1458 = vst [vmem:[#allocation2 + $0x308] sm:$0xff] %v1330_v36  ;;  %v765_v36 = vmul.f32 %v614_v13, %v3065_v27  ;;  %v639_v20 = vsub.f32 1.5, %v638_v26 }
 0x17d   :  { %2384 = vrsqrt.f32 %v3316_v43  ;;  %vm631_vm10 = vweird.f32 %v3316_v43 }
 0x17e   :  { %v978_v42 = vpop.f32.mrf.mxu2  ;;  %v1027_v47 = vpop.f32.mrf.mxu3  ;;  %2386 = vrsqrt.f32 %v3352_v22 }
 0x17f   :  { %v1331_v23 = vmul.f32 100.0, %v978_v42  ;;  %v1332_v10 = vmul.f32 100.0, %v1027_v47  ;;  %v882_v55 = vpop.f32.mrf.mxu0  ;;  %v931_v44 = vpop.f32.mrf.mxu1  ;;  %2388 = vrsqrt.f32 %v3354_v15 }
 0x180   :  { %v1337_v53 = vmul.f32 100.0, %v882_v55  ;;  %v1338_v61 = vmul.f32 100.0, %v931_v44 }
 0x181   :  { %1459 = vst [vmem:[#allocation2 + $0x310] sm:$0xff] %v1331_v23  ;;  %v3368_v23 = vpack.c.bf16 %v766_v34, %v765_v36 }
 0x182   :  { %1460 = vst [vmem:[#allocation2 + $0x318] sm:$0xff] %v1332_v10 }
 0x183   :  { %1465 = vst [vmem:[#allocation2 + $0x340] sm:$0xff] %v1337_v53  ;;  %v3324_v21 = vpop.eup %2384 }
 0x184   :  { %1466 = vst [vmem:[#allocation2 + $0x348] sm:$0xff] %v1338_v61  ;;  %v626_v11 = vmul.f32 %v3324_v21, %v3316_v43  ;;  %v3370_v44 = vpop.eup %2386  ;;  %vm632_vm11 = vweird.f32 %v3324_v21  ;;  %v640_v61 = vmul.f32 %v3322_v60, %v639_v20 }
 0x185   :  { %v3372_v27 = vpop.eup %2388  ;;  %v646_v43 = vmul.f32 %v3370_v44, %v3352_v22  ;;  %vm3396_vm13 = vmor %vm631_vm10, %vm632_vm11  ;;  %vm652_vm15 = vweird.f32 %v3370_v44  ;;  %v570_v22 = vpop.xlane.xlu1 %569 }
 0x186   :  { %v980_v51 = vpop.f32.mrf.mxu2  ;;  %v1029_v54 = vpop.f32.mrf.mxu3  ;;  %v627_v33 = vmul.f32 %v3324_v21, %v626_v11  ;;  %v656_v41 = vmul.f32 %v3372_v27, %v3354_v15  ;;  %v644_v38 = vsel %vm3387_vm12, %v3322_v60, %v640_v61  ;;  %vm662_vm3 = vweird.f32 %v3372_v27  ;;  %vm3435_vm4 = vmor %vm651_vm14, %vm652_vm15 }
 0x187   :  { %v1339_v2 = vmul.f32 100.0, %v980_v51  ;;  %v1340_v56 = vmul.f32 100.0, %v1029_v54  ;;  %v885_v3 = vpop.f32.mrf.mxu0  ;;  %v934_v46 = vpop.f32.mrf.mxu1  ;;  %v647_v24 = vmul.f32 %v3370_v44, %v646_v43  ;;  %v768_v11 = vmul.f32 %v644_v38, %v3118_v28  ;;  %vm3444_vm5 = vmor %vm661_vm2, %vm662_vm3 }
 0x188   :  { %v1345_v9 = vmul.f32 100.0, %v885_v3  ;;  %v1346_v1 = vmul.f32 100.0, %v934_v46  ;;  %v628_v17 = vmul.f32 0.5, %v627_v33  ;;  %v657_v12 = vmul.f32 %v3372_v27, %v656_v41 }
 0x189   :  { %1467 = vst [vmem:[#allocation2 + $0x350] sm:$0xff] %v1339_v2  ;;  %v648_v60 = vmul.f32 0.5, %v647_v24  ;;  %v2414_v24 = vld [vmem:[%s3785_s1 + $0x48] sm:$0xff] }
 0x18a   :  { %1468 = vst [vmem:[#allocation2 + $0x358] sm:$0xff] %v1340_v56  ;;  %2236 = vmatmul.msk.bf16.gmra.mxu0 %vm260_vm0, %v3182_v50  ;;  %2244 = vmatmul.msk.bf16.gmra.mxu1 %vm260_vm0, %v3182_v50  ;;  %v629_v53 = vsub.f32 1.5, %v628_v17  ;;  %v658_v7 = vmul.f32 0.5, %v657_v12 }
 0x18b   :  { %1473 = vst [vmem:[#allocation2 + $0x380] sm:$0xff] %v1345_v9  ;;  %2252 = vmatmul.msk.bf16.gmra.mxu2 %vm260_vm0, %v3182_v50  ;;  %2260 = vmatmul.msk.bf16.gmra.mxu3 %vm260_vm0, %v3182_v50  ;;  %v649_v28 = vsub.f32 1.5, %v648_v60 }
 0x18c   :  { %1474 = vst [vmem:[#allocation2 + $0x388] sm:$0xff] %v1346_v1  ;;  %v630_v14 = vmul.f32 %v3324_v21, %v629_v53  ;;  %v3400_v1 = vmax.f32 %v564_v37, 1e-24  ;;  %v659_v13 = vsub.f32 1.5, %v658_v7 }
 0x18d   :  { %v650_v0 = vmul.f32 %v3370_v44, %v649_v28 }
 0x18e   :  { %v983_v50 = vpop.f32.mrf.mxu2  ;;  %v1032_v4 = vpop.f32.mrf.mxu3  ;;  %v634_v19 = vsel %vm3396_vm13, %v3324_v21, %v630_v14  ;;  %2390 = vrsqrt.f32 %v3400_v1  ;;  %v660_v34 = vmul.f32 %v3372_v27, %v659_v13  ;;  %vm681_vm6 = vweird.f32 %v3400_v1 }
 0x18f   :  { %v1347_v59 = vmul.f32 100.0, %v983_v50  ;;  %v1348_v35 = vmul.f32 100.0, %v1032_v4  ;;  %v887_v16 = vpop.f32.mrf.mxu0  ;;  %v936_v31 = vpop.f32.mrf.mxu1  ;;  %v767_v39 = vmul.f32 %v634_v19, %v3123_v29  ;;  %2392 = vrsqrt.f32 %v3402_v18 }
 0x190   :  { %v1353_v25 = vmul.f32 100.0, %v887_v16  ;;  %v1354_v5 = vmul.f32 100.0, %v936_v31  ;;  %v654_v37 = vsel %vm3435_vm4, %v3370_v44, %v650_v0  ;;  %v664_v61 = vsel %vm3444_vm5, %v3372_v27, %v660_v34 }
 0x191   :  { %1475 = vst [vmem:[#allocation2 + $0x390] sm:$0xff] %v1347_v59  ;;  %v3416_v31 = vpack.c.bf16 %v768_v11, %v767_v39  ;;  %v567_v26 = vpop.xlane.xlu0 %566  ;;  %v769_v43 = vmul.f32 %v654_v37, %v3162_v48  ;;  %v770_v41 = vmul.f32 %v664_v61, %v3167_v45 }
 0x192   :  { %1476 = vst [vmem:[#allocation2 + $0x398] sm:$0xff] %v1348_v35  ;;  %v3450_v53 = vmax.f32 %v567_v26, 1e-24 }
 0x193   :  { %1481 = vst [vmem:[#allocation2 + $0x3c0] sm:$0xff] %v1353_v25 }
 0x194   :  { %1482 = vst [vmem:[#allocation2 + $0x3c8] sm:$0xff] %v1354_v5  ;;  %v3418_v30 = vpop.eup %2390  ;;  %vm691_vm13 = vweird.f32 %v3450_v53 }
 0x195   :  { %v3420_v29 = vpop.eup %2392  ;;  %v676_v15 = vmul.f32 %v3418_v30, %v3400_v1  ;;  %vm682_vm7 = vweird.f32 %v3418_v30 }
 0x196   :  { %v985_v40 = vpop.f32.mrf.mxu2  ;;  %v1034_v32 = vpop.f32.mrf.mxu3  ;;  %v666_v36 = vmul.f32 %v3420_v29, %v3402_v18  ;;  %vm672_vm8 = vweird.f32 %v3420_v29  ;;  %vm3483_vm9 = vmor %vm681_vm6, %vm682_vm7 }
 0x197   :  { %v1355_v49 = vmul.f32 100.0, %v985_v40  ;;  %v1356_v63 = vmul.f32 100.0, %v1034_v32  ;;  %v1046_v42 = vpop.f32.mrf.mxu0  ;;  %v1095_v47 = vpop.f32.mrf.mxu1  ;;  %v677_v58 = vmul.f32 %v3418_v30, %v676_v15  ;;  %vm3492_vm10 = vmor %vm671_vm1, %vm672_vm8 }
 0x198   :  { %v1237_v10 = vmul.f32 100.0, %v1046_v42  ;;  %v1238_v55 = vmul.f32 100.0, %v1095_v47  ;;  %v667_v14 = vmul.f32 %v3420_v29, %v666_v36 }
 0x199   :  { %1483 = vst [vmem:[#allocation2 + $0x3d0] sm:$0xff] %v1355_v49  ;;  %v678_v44 = vmul.f32 0.5, %v677_v58  ;;  %v576_v39 = vpop.xlane.xlu0 %575 }
 0x19a   :  { %1484 = vst [vmem:[#allocation2 + $0x3d8] sm:$0xff] %v1356_v63  ;;  %2261 = vmatmul.msk.bf16.vlgmr.msra.gmra.mxu0 %vm260_vm0, %v3368_v23  ;;  %2269 = vmatmul.msk.bf16.vlgmr.msra.gmra.mxu1 %vm260_vm0, %v3368_v23  ;;  %v668_v62 = vmul.f32 0.5, %v667_v14  ;;  %v3498_v28 = vmax.f32 %v576_v39, 1e-24 }
 0x19b   :  { %1365 = vst [vmem:[#allocation2 + $0x20] sm:$0xff] %v1237_v10  ;;  %2277 = vmatmul.msk.bf16.vlgmr.msra.gmra.mxu2 %vm260_vm0, %v3368_v23  ;;  %2285 = vmatmul.msk.bf16.vlgmr.msra.gmra.mxu3 %vm260_vm0, %v3368_v23  ;;  %v3448_v10 = vmax.f32 %v570_v22, 1e-24  ;;  %v679_v48 = vsub.f32 1.5, %v678_v44 }
 0x19c   :  { %1366 = vst [vmem:[#allocation2 + $0x28] sm:$0xff] %v1238_v55  ;;  %v669_v38 = vsub.f32 1.5, %v668_v62  ;;  %vm721_vm5 = vweird.f32 %v3498_v28 }
 0x19d   :  { %2394 = vrsqrt.f32 %v3448_v10  ;;  %v680_v19 = vmul.f32 %v3418_v30, %v679_v48  ;;  %vm701_vm11 = vweird.f32 %v3448_v10 }
 0x19e   :  { %v1144_v54 = vpop.f32.mrf.mxu2  ;;  %v1193_v2 = vpop.f32.mrf.mxu3  ;;  %2396 = vrsqrt.f32 %v3450_v53  ;;  %v670_v12 = vmul.f32 %v3420_v29, %v669_v38 }
 0x19f   :  { %v1239_v56 = vmul.f32 100.0, %v1144_v54  ;;  %v1240_v3 = vmul.f32 100.0, %v1193_v2  ;;  %v1048_v46 = vpop.f32.mrf.mxu0  ;;  %v1097_v9 = vpop.f32.mrf.mxu1  ;;  %v684_v13 = vsel %vm3483_vm9, %v3418_v30, %v680_v19 }
 0x1a0   :  { %v1245_v6 = vmul.f32 100.0, %v1048_v46  ;;  %v1246_v52 = vmul.f32 100.0, %v1097_v9  ;;  %v3464_v46 = vpack.c.bf16 %v770_v41, %v769_v43  ;;  %v573_v1 = vpop.xlane.xlu2 %572  ;;  %v674_v22 = vsel %vm3492_vm10, %v3420_v29, %v670_v12  ;;  %v579_v43 = vpop.xlane.xlu1 %578 }
 0x1a1   :  { %1367 = vst [vmem:[#allocation2 + $0x30] sm:$0xff] %v1239_v56  ;;  %v772_v34 = vmul.f32 %v684_v13, %v3195_v8  ;;  %v771_v15 = vmul.f32 %v674_v22, %v3200_v57 }
 0x1a2   :  { %1368 = vst [vmem:[#allocation2 + $0x38] sm:$0xff] %v1240_v3 }
 0x1a3   :  { %1373 = vst [vmem:[#allocation2 + $0x60] sm:$0xff] %v1245_v6 }
 0x1a4   :  { %1374 = vst [vmem:[#allocation2 + $0x68] sm:$0xff] %v1246_v52  ;;  %v3466_v52 = vpop.eup %2394 }
 0x1a5   :  { %v3468_v45 = vpop.eup %2396  ;;  %v696_v18 = vmul.f32 %v3466_v52, %v3448_v10  ;;  %vm702_vm12 = vweird.f32 %v3466_v52 }
 0x1a6   :  { %v1146_v50 = vpop.f32.mrf.mxu2  ;;  %v1195_v21 = vpop.f32.mrf.mxu3  ;;  %v686_v11 = vmul.f32 %v3468_v45, %v3450_v53  ;;  %vm692_vm14 = vweird.f32 %v3468_v45  ;;  %vm3531_vm15 = vmor %vm701_vm11, %vm702_vm12 }
 0x1a7   :  { %v1247_v4 = vmul.f32 100.0, %v1146_v50  ;;  %v1248_v59 = vmul.f32 100.0, %v1195_v21  ;;  %v1051_v35 = vpop.f32.mrf.mxu0  ;;  %v1100_v16 = vpop.f32.mrf.mxu1  ;;  %v697_v0 = vmul.f32 %v3466_v52, %v696_v18  ;;  %vm3540_vm2 = vmor %vm691_vm13, %vm692_vm14 }
 0x1a8   :  { %v1253_v25 = vmul.f32 100.0, %v1051_v35  ;;  %v1254_v5 = vmul.f32 100.0, %v1100_v16  ;;  %v3496_v16 = vmax.f32 %v573_v1, 1e-24  ;;  %v687_v33 = vmul.f32 %v3468_v45, %v686_v11 }
 0x1a9   :  { %1375 = vst [vmem:[#allocation2 + $0x70] sm:$0xff] %v1247_v4  ;;  %v698_v30 = vmul.f32 0.5, %v697_v0 }
 0x1aa   :  { %1376 = vst [vmem:[#allocation2 + $0x78] sm:$0xff] %v1248_v59  ;;  %2262 = vmatmul.msk.bf16.gmra.mxu0 %vm260_vm0, %v3416_v31  ;;  %2270 = vmatmul.msk.bf16.gmra.mxu1 %vm260_vm0, %v3416_v31  ;;  %2398 = vrsqrt.f32 %v3496_v16  ;;  %v688_v36 = vmul.f32 0.5, %v687_v33  ;;  %vm711_vm3 = vweird.f32 %v3496_v16 }
 0x1ab   :  { %1381 = vst [vmem:[#allocation2 + $0xa0] sm:$0xff] %v1253_v25  ;;  %2278 = vmatmul.msk.bf16.gmra.mxu2 %vm260_vm0, %v3416_v31  ;;  %2286 = vmatmul.msk.bf16.gmra.mxu3 %vm260_vm0, %v3416_v31  ;;  %2400 = vrsqrt.f32 %v3498_v28  ;;  %v699_v8 = vsub.f32 1.5, %v698_v30 }
 0x1ac   :  { %1382 = vst [vmem:[#allocation2 + $0xa8] sm:$0xff] %v1254_v5 }
 0x1ad   :  { %v700_v37 = vmul.f32 %v3466_v52, %v699_v8 }
 0x1ae   :  { %v1149_v40 = vpop.f32.mrf.mxu2  ;;  %v1198_v32 = vpop.f32.mrf.mxu3 }
 0x1af   :  { %v1255_v49 = vmul.f32 100.0, %v1149_v40  ;;  %v1256_v63 = vmul.f32 100.0, %v1198_v32  ;;  %v1053_v42 = vpop.f32.mrf.mxu0  ;;  %v1102_v47 = vpop.f32.mrf.mxu1  ;;  %v704_v48 = vsel %vm3531_vm15, %v3466_v52, %v700_v37  ;;  %v2415_v52 = vld [vmem:[%s3785_s1 + $0x40] sm:$0xff] }
 0x1b0   :  { %v1261_v55 = vmul.f32 100.0, %v1053_v42  ;;  %v1262_v20 = vmul.f32 100.0, %v1102_v47  ;;  %v582_v10 = vpop.xlane.xlu2 %581  ;;  %v774_v12 = vmul.f32 %v2414_v24, %v704_v48 }
 0x1b1   :  { %1383 = vst [vmem:[#allocation2 + $0xb0] sm:$0xff] %v1255_v49 }
 0x1b2   :  { %1384 = vst [vmem:[#allocation2 + $0xb8] sm:$0xff] %v1256_v63  ;;  %v3512_v63 = vpack.c.bf16 %v772_v34, %v771_v15  ;;  %v2418_v34 = vld [vmem:[%s3785_s1 + $0x68] sm:$0xff] }
 0x1b3   :  { %1389 = vst [vmem:[#allocation2 + $0xe0] sm:$0xff] %v1261_v55  ;;  %v3514_v55 = vpop.eup %2398 }
 0x1b4   :  { %1390 = vst [vmem:[#allocation2 + $0xe8] sm:$0xff] %v1262_v20  ;;  %v689_v20 = vsub.f32 1.5, %v688_v36  ;;  %v3516_v57 = vpop.eup %2400  ;;  %v706_v53 = vmul.f32 %v3514_v55, %v3496_v16  ;;  %vm712_vm4 = vweird.f32 %v3514_v55  ;;  %v585_v36 = vpop.xlane.xlu0 %584 }
 0x1b5   :  { %v716_v14 = vmul.f32 %v3516_v57, %v3498_v28  ;;  %vm722_vm6 = vweird.f32 %v3516_v57  ;;  %vm3583_vm7 = vmor %vm711_vm3, %vm712_vm4 }
 0x1b6   :  { %v1151_v51 = vpop.f32.mrf.mxu2  ;;  %v1200_v27 = vpop.f32.mrf.mxu3  ;;  %v690_v58 = vmul.f32 %v3468_v45, %v689_v20  ;;  %v707_v1 = vmul.f32 %v3514_v55, %v706_v53  ;;  %vm3592_vm1 = vmor %vm721_vm5, %vm722_vm6 }
 0x1b7   :  { %v1263_v54 = vmul.f32 100.0, %v1151_v51  ;;  %v1264_v2 = vmul.f32 100.0, %v1200_v27  ;;  %v1056_v56 = vpop.f32.mrf.mxu0  ;;  %v1105_v3 = vpop.f32.mrf.mxu1  ;;  %v717_v19 = vmul.f32 %v3516_v57, %v716_v14  ;;  %v2416_v14 = vld [vmem:[%s3785_s1 + $0x50] sm:$0xff] }
 0x1b8   :  { %v1269_v9 = vmul.f32 100.0, %v1056_v56  ;;  %v1270_v6 = vmul.f32 100.0, %v1105_v3  ;;  %v3544_v56 = vmax.f32 %v582_v10, 1e-24  ;;  %v694_v38 = vsel %vm3540_vm2, %v3468_v45, %v690_v58 }
 0x1b9   :  { %1391 = vst [vmem:[#allocation2 + $0xf0] sm:$0xff] %v1263_v54  ;;  %v773_v18 = vmul.f32 %v2415_v52, %v694_v38  ;;  %v708_v45 = vmul.f32 0.5, %v707_v1  ;;  %v718_v11 = vmul.f32 0.5, %v717_v19  ;;  %v3598_v10 = vmax.f32 %v585_v36, 1e-24 }
 0x1ba   :  { %1392 = vst [vmem:[#allocation2 + $0xf8] sm:$0xff] %v1264_v2  ;;  %2263 = vmatmul.msk.bf16.gmra.mxu0 %vm260_vm0, %v3464_v46  ;;  %2271 = vmatmul.msk.bf16.gmra.mxu1 %vm260_vm0, %v3464_v46  ;;  %2402 = vrsqrt.f32 %v3544_v56  ;;  %vm741_vm8 = vweird.f32 %v3544_v56 }
 0x1bb   :  { %1397 = vst [vmem:[#allocation2 + $0x120] sm:$0xff] %v1269_v9  ;;  %2279 = vmatmul.msk.bf16.gmra.mxu2 %vm260_vm0, %v3464_v46  ;;  %2287 = vmatmul.msk.bf16.gmra.mxu3 %vm260_vm0, %v3464_v46  ;;  %v709_v13 = vsub.f32 1.5, %v708_v45  ;;  %v719_v22 = vsub.f32 1.5, %v718_v11  ;;  %vm751_vm2 = vweird.f32 %v3598_v10 }
 0x1bc   :  { %1398 = vst [vmem:[#allocation2 + $0x128] sm:$0xff] %v1270_v6  ;;  %v3546_v6 = vmax.f32 %v579_v43, 1e-24 }
 0x1bd   :  { %v710_v33 = vmul.f32 %v3514_v55, %v709_v13  ;;  %v720_v15 = vmul.f32 %v3516_v57, %v719_v22 }
 0x1be   :  { %v1154_v7 = vpop.f32.mrf.mxu2  ;;  %v1203_v50 = vpop.f32.mrf.mxu3  ;;  %2404 = vrsqrt.f32 %v3546_v6  ;;  %vm731_vm10 = vweird.f32 %v3546_v6 }
 0x1bf   :  { %v1271_v21 = vmul.f32 100.0, %v1154_v7  ;;  %v1272_v4 = vmul.f32 100.0, %v1203_v50  ;;  %v1058_v59 = vpop.f32.mrf.mxu0  ;;  %v1107_v35 = vpop.f32.mrf.mxu1  ;;  %v714_v37 = vsel %vm3583_vm7, %v3514_v55, %v710_v33  ;;  %v724_v61 = vsel %vm3592_vm1, %v3516_v57, %v720_v15  ;;  %v2417_v55 = vld [vmem:[%s3785_s1 + $0x58] sm:$0xff] }
 0x1c0   :  { %v1277_v25 = vmul.f32 100.0, %v1058_v59  ;;  %v1278_v5 = vmul.f32 100.0, %v1107_v35  ;;  %v3564_v59 = vpack.c.bf16 %v774_v12, %v773_v18  ;;  %v588_v16 = vpop.xlane.xlu1 %587  ;;  %v775_v43 = vmul.f32 %v2416_v14, %v714_v37 }
 0x1c1   :  { %1399 = vst [vmem:[#allocation2 + $0x130] sm:$0xff] %v1271_v21  ;;  %v776_v41 = vmul.f32 %v2417_v55, %v724_v61 }
 0x1c2   :  { %1400 = vst [vmem:[#allocation2 + $0x138] sm:$0xff] %v1272_v4 }
 0x1c3   :  { %1405 = vst [vmem:[#allocation2 + $0x160] sm:$0xff] %v1277_v25 }
 0x1c4   :  { %1406 = vst [vmem:[#allocation2 + $0x168] sm:$0xff] %v1278_v5  ;;  %v3566_v5 = vpop.eup %2402 }
 0x1c5   :  { %v3568_v0 = vpop.eup %2404  ;;  %v736_v28 = vmul.f32 %v3566_v5, %v3544_v56  ;;  %vm742_vm9 = vweird.f32 %v3566_v5 }
 0x1c6   :  { %v1156_v26 = vpop.f32.mrf.mxu2  ;;  %v1205_v29 = vpop.f32.mrf.mxu3  ;;  %v726_v30 = vmul.f32 %v3568_v0, %v3546_v6  ;;  %vm732_vm11 = vweird.f32 %v3568_v0  ;;  %vm3635_vm12 = vmor %vm741_vm8, %vm742_vm9 }
 0x1c7   :  { %v1279_v17 = vmul.f32 100.0, %v1156_v26  ;;  %v1280_v40 = vmul.f32 100.0, %v1205_v29  ;;  %v1061_v32 = vpop.f32.mrf.mxu0  ;;  %v1110_v49 = vpop.f32.mrf.mxu1  ;;  %v737_v58 = vmul.f32 %v3566_v5, %v736_v28  ;;  %vm3644_vm13 = vmor %vm731_vm10, %vm732_vm11 }
 0x1c8   :  { %v1285_v42 = vmul.f32 100.0, %v1061_v32  ;;  %v1286_v47 = vmul.f32 100.0, %v1110_v49  ;;  %v727_v53 = vmul.f32 %v3568_v0, %v726_v30 }
 0x1c9   :  { %1407 = vst [vmem:[#allocation2 + $0x170] sm:$0xff] %v1279_v17  ;;  %v738_v57 = vmul.f32 0.5, %v737_v58 }
 0x1ca   :  { %1408 = vst [vmem:[#allocation2 + $0x178] sm:$0xff] %v1280_v40  ;;  %2264 = vmatmul.msk.bf16.gmra.mxu0 %vm260_vm0, %v3512_v63  ;;  %2272 = vmatmul.msk.bf16.gmra.mxu1 %vm260_vm0, %v3512_v63 }
 0x1cb   :  { %1413 = vst [vmem:[#allocation2 + $0x1a0] sm:$0xff] %v1285_v42  ;;  %2280 = vmatmul.msk.bf16.gmra.mxu2 %vm260_vm0, %v3512_v63  ;;  %2288 = vmatmul.msk.bf16.gmra.mxu3 %vm260_vm0, %v3512_v63  ;;  %v739_v19 = vsub.f32 1.5, %v738_v57 }
 0x1cc   :  { %1414 = vst [vmem:[#allocation2 + $0x1a8] sm:$0xff] %v1286_v47  ;;  %v3596_v47 = vmax.f32 %v588_v16, 1e-24 }
 0x1cd   :  { %v740_v56 = vmul.f32 %v3566_v5, %v739_v19 }
 0x1ce   :  { %v1159_v44 = vpop.f32.mrf.mxu2  ;;  %v1208_v62 = vpop.f32.mrf.mxu3  ;;  %2406 = vrsqrt.f32 %v3596_v47  ;;  %vm761_vm14 = vweird.f32 %v3596_v47 }
 0x1cf   :  { %v1287_v51 = vmul.f32 100.0, %v1159_v44  ;;  %v1288_v27 = vmul.f32 100.0, %v1208_v62  ;;  %v1063_v54 = vpop.f32.mrf.mxu0  ;;  %v1112_v2 = vpop.f32.mrf.mxu1  ;;  %2408 = vrsqrt.f32 %v3598_v10  ;;  %v728_v44 = vmul.f32 0.5, %v727_v53 }
 0x1d0   :  { %v1293_v3 = vmul.f32 100.0, %v1063_v54  ;;  %v1294_v9 = vmul.f32 100.0, %v1112_v2  ;;  %v744_v13 = vsel %vm3635_vm12, %v3566_v5, %v740_v56  ;;  %v2419_v5 = vld [vmem:[%s3785_s1 + $0x60] sm:$0xff] }
 0x1d1   :  { %1415 = vst [vmem:[#allocation2 + $0x1b0] sm:$0xff] %v1287_v51  ;;  %v729_v24 = vsub.f32 1.5, %v728_v44  ;;  %v778_v15 = vmul.f32 %v2418_v34, %v744_v13 }
 0x1d2   :  { %1416 = vst [vmem:[#allocation2 + $0x1b8] sm:$0xff] %v1288_v27 }
 0x1d3   :  { %1421 = vst [vmem:[#allocation2 + $0x1e0] sm:$0xff] %v1293_v3  ;;  %v730_v18 = vmul.f32 %v3568_v0, %v729_v24 }
 0x1d4   :  { %1422 = vst [vmem:[#allocation2 + $0x1e8] sm:$0xff] %v1294_v9  ;;  %v3616_v9 = vpack.c.bf16 %v776_v41, %v775_v43  ;;  %v3618_v1 = vpop.eup %2406 }
 0x1d5   :  { %v3620_v12 = vpop.eup %2408  ;;  %v756_v6 = vmul.f32 %v3618_v1, %v3596_v47  ;;  %v734_v22 = vsel %vm3644_vm13, %v3568_v0, %v730_v18  ;;  %vm762_vm15 = vweird.f32 %v3618_v1 }
 0x1d6   :  { %v1161_v39 = vpop.f32.mrf.mxu2  ;;  %v1210_v60 = vpop.f32.mrf.mxu3  ;;  %v746_v45 = vmul.f32 %v3620_v12, %v3598_v10  ;;  %v777_v28 = vmul.f32 %v2419_v5, %v734_v22  ;;  %vm752_vm3 = vweird.f32 %v3620_v12  ;;  %vm3677_vm4 = vmor %vm761_vm14, %vm762_vm15 }
 0x1d7   :  { %v1295_v7 = vmul.f32 100.0, %v1161_v39  ;;  %v1296_v50 = vmul.f32 100.0, %v1210_v60  ;;  %v1066_v21 = vpop.f32.mrf.mxu0  ;;  %v1115_v4 = vpop.f32.mrf.mxu1  ;;  %v757_v16 = vmul.f32 %v3618_v1, %v756_v6  ;;  %vm3682_vm5 = vmor %vm751_vm2, %vm752_vm3 }
 0x1d8   :  { %v1301_v35 = vmul.f32 100.0, %v1066_v21  ;;  %v1302_v25 = vmul.f32 100.0, %v1115_v4  ;;  %v747_v33 = vmul.f32 %v3620_v12, %v746_v45 }
 0x1d9   :  { %1423 = vst [vmem:[#allocation2 + $0x1f0] sm:$0xff] %v1295_v7  ;;  %v758_v30 = vmul.f32 0.5, %v757_v16 }
 0x1da   :  { %1424 = vst [vmem:[#allocation2 + $0x1f8] sm:$0xff] %v1296_v50  ;;  %2265 = vmatmul.msk.bf16.gmra.mxu0 %vm260_vm0, %v3564_v59  ;;  %2273 = vmatmul.msk.bf16.gmra.mxu1 %vm260_vm0, %v3564_v59  ;;  %v748_v0 = vmul.f32 0.5, %v747_v33 }
 0x1db   :  { %1429 = vst [vmem:[#allocation2 + $0x220] sm:$0xff] %v1301_v35  ;;  %2281 = vmatmul.msk.bf16.gmra.mxu2 %vm260_vm0, %v3564_v59  ;;  %2289 = vmatmul.msk.bf16.gmra.mxu3 %vm260_vm0, %v3564_v59 }
 0x1dc   :  { %1430 = vst [vmem:[#allocation2 + $0x228] sm:$0xff] %v1302_v25  ;;  %v749_v37 = vsub.f32 1.5, %v748_v0 }
 0x1de   :  { %v1164_v29 = vpop.f32.mrf.mxu2  ;;  %v1213_v17 = vpop.f32.mrf.mxu3  ;;  %v750_v58 = vmul.f32 %v3620_v12, %v749_v37 }
 0x1df   :  { %v1303_v40 = vmul.f32 100.0, %v1164_v29  ;;  %v1304_v32 = vmul.f32 100.0, %v1213_v17  ;;  %v1068_v49 = vpop.f32.mrf.mxu0  ;;  %v1117_v42 = vpop.f32.mrf.mxu1 }
 0x1e0   :  { %v1309_v8 = vmul.f32 100.0, %v1068_v49  ;;  %v1310_v20 = vmul.f32 100.0, %v1117_v42  ;;  %v3662_v49 = vpack.c.bf16 %v778_v15, %v777_v28 }
 0x1e1   :  { %1431 = vst [vmem:[#allocation2 + $0x230] sm:$0xff] %v1303_v40 }
 0x1e2   :  { %1432 = vst [vmem:[#allocation2 + $0x238] sm:$0xff] %v1304_v32 }
 0x1e3   :  { %1437 = vst [vmem:[#allocation2 + $0x260] sm:$0xff] %v1309_v8 }
 0x1e4   :  { %1438 = vst [vmem:[#allocation2 + $0x268] sm:$0xff] %v1310_v20  ;;  %v759_v20 = vsub.f32 1.5, %v758_v30 }
 0x1e6   :  { %v1166_v62 = vpop.f32.mrf.mxu2  ;;  %v1215_v51 = vpop.f32.mrf.mxu3  ;;  %v760_v47 = vmul.f32 %v3618_v1, %v759_v20 }
 0x1e7   :  { %v1311_v27 = vmul.f32 100.0, %v1166_v62  ;;  %v1312_v54 = vmul.f32 100.0, %v1215_v51  ;;  %v1071_v2 = vpop.f32.mrf.mxu0  ;;  %v1120_v3 = vpop.f32.mrf.mxu1 }
 0x1e8   :  { %v1317_v48 = vmul.f32 100.0, %v1071_v2  ;;  %v1318_v38 = vmul.f32 100.0, %v1120_v3  ;;  %v764_v51 = vsel %vm3677_vm4, %v3618_v1, %v760_v47  ;;  %v2421_v3 = vld [vmem:[%s3785_s1 + $0x70] sm:$0xff] }
 0x1e9   :  { %1439 = vst [vmem:[#allocation2 + $0x270] sm:$0xff] %v1311_v27  ;;  %v754_v27 = vsel %vm3682_vm5, %v3620_v12, %v750_v58 }
 0x1ea   :  { %1440 = vst [vmem:[#allocation2 + $0x278] sm:$0xff] %v1312_v54  ;;  %2266 = vmatmul.msk.bf16.gmra.mxu0 %vm260_vm0, %v3616_v9  ;;  %2274 = vmatmul.msk.bf16.gmra.mxu1 %vm260_vm0, %v3616_v9  ;;  %v2420_v54 = vld [vmem:[%s3785_s1 + $0x78] sm:$0xff]  ;;  %s2475_s1 = smov [#allocation2]  }
 0x1eb   :  { %1445 = vst [vmem:[#allocation2 + $0x2a0] sm:$0xff] %v1317_v48  ;;  %2282 = vmatmul.msk.bf16.gmra.mxu2 %vm260_vm0, %v3616_v9  ;;  %2290 = vmatmul.msk.bf16.gmra.mxu3 %vm260_vm0, %v3616_v9  ;;  %v780_v2 = vmul.f32 %v2420_v54, %v764_v51  ;;  %v779_v48 = vmul.f32 %v2421_v3, %v754_v27  ;;  %s2165_s2 = sshll.u32 %s2475_s1, 4  ;;  %s2166_s2 = int_to_ptr.vmem [resolvable:$true] %s2165_s2 }
 0x1ec   :  { %1446 = vst [vmem:[#allocation2 + $0x2a8] sm:$0xff] %v1318_v38 }
 0x1ed   :  { %v3698_v52 = vpack.c.bf16 %v780_v2, %v779_v48 }
 0x1ee   :  { %v1169_v39 = vpop.f32.mrf.mxu2  ;;  %v1218_v60 = vpop.f32.mrf.mxu3 }
 0x1ef   :  { %v1319_v7 = vmul.f32 100.0, %v1169_v39  ;;  %v1320_v50 = vmul.f32 100.0, %v1218_v60  ;;  %v1073_v21 = vpop.f32.mrf.mxu0  ;;  %v1122_v4 = vpop.f32.mrf.mxu1 }
 0x1f0   :  { %v1325_v35 = vmul.f32 100.0, %v1073_v21  ;;  %v1326_v25 = vmul.f32 100.0, %v1122_v4 }
 0x1f1   :  { %1447 = vst [vmem:[#allocation2 + $0x2b0] sm:$0xff] %v1319_v7 }
 0x1f2   :  { %1448 = vst [vmem:[#allocation2 + $0x2b8] sm:$0xff] %v1320_v50 }
 0x1f3   :  { %1453 = vst [vmem:[#allocation2 + $0x2e0] sm:$0xff] %v1325_v35 }
 0x1f4   :  { %1454 = vst [vmem:[#allocation2 + $0x2e8] sm:$0xff] %v1326_v25 }
 0x1f6   :  { %v1171_v36 = vpop.f32.mrf.mxu2  ;;  %v1220_v26 = vpop.f32.mrf.mxu3 }
 0x1f7   :  { %v1327_v29 = vmul.f32 100.0, %v1171_v36  ;;  %v1328_v17 = vmul.f32 100.0, %v1220_v26  ;;  %v1076_v40 = vpop.f32.mrf.mxu0  ;;  %v1125_v32 = vpop.f32.mrf.mxu1 }
 0x1f8   :  { %v1333_v42 = vmul.f32 100.0, %v1076_v40  ;;  %v1334_v8 = vmul.f32 100.0, %v1125_v32 }
 0x1f9   :  { %1455 = vst [vmem:[#allocation2 + $0x2f0] sm:$0xff] %v1327_v29 }
 0x1fa   :  { %1456 = vst [vmem:[#allocation2 + $0x2f8] sm:$0xff] %v1328_v17  ;;  %2267 = vmatmul.msk.bf16.gmra.mxu0 %vm260_vm0, %v3662_v49  ;;  %2275 = vmatmul.msk.bf16.gmra.mxu1 %vm260_vm0, %v3662_v49 }
 0x1fb   :  { %1461 = vst [vmem:[#allocation2 + $0x320] sm:$0xff] %v1333_v42  ;;  %2283 = vmatmul.msk.bf16.gmra.mxu2 %vm260_vm0, %v3662_v49  ;;  %2291 = vmatmul.msk.bf16.gmra.mxu3 %vm260_vm0, %v3662_v49 }
 0x1fc   :  { %1462 = vst [vmem:[#allocation2 + $0x328] sm:$0xff] %v1334_v8 }
 0x1fe   :  { %v1174_v53 = vpop.f32.mrf.mxu2  ;;  %v1223_v14 = vpop.f32.mrf.mxu3 }
 0x1ff   :  { %v1335_v43 = vmul.f32 100.0, %v1174_v53  ;;  %v1336_v55 = vmul.f32 100.0, %v1223_v14  ;;  %v1078_v41 = vpop.f32.mrf.mxu0  ;;  %v1127_v57 = vpop.f32.mrf.mxu1 }
 0x200   :  { %v1341_v44 = vmul.f32 100.0, %v1078_v41  ;;  %v1342_v62 = vmul.f32 100.0, %v1127_v57 }
 0x201   :  { %1463 = vst [vmem:[#allocation2 + $0x330] sm:$0xff] %v1335_v43 }
 0x202   :  { %1464 = vst [vmem:[#allocation2 + $0x338] sm:$0xff] %v1336_v55 }
 0x203   :  { %1469 = vst [vmem:[#allocation2 + $0x360] sm:$0xff] %v1341_v44 }
 0x204   :  { %1470 = vst [vmem:[#allocation2 + $0x368] sm:$0xff] %v1342_v62 }
 0x206   :  { %v1176_v38 = vpop.f32.mrf.mxu2  ;;  %v1225_v1 = vpop.f32.mrf.mxu3 }
 0x207   :  { %v1343_v19 = vmul.f32 100.0, %v1176_v38  ;;  %v1344_v24 = vmul.f32 100.0, %v1225_v1  ;;  %v1081_v56 = vpop.f32.mrf.mxu0  ;;  %v1130_v12 = vpop.f32.mrf.mxu1 }
 0x208   :  { %v1349_v18 = vmul.f32 100.0, %v1081_v56  ;;  %v1350_v6 = vmul.f32 100.0, %v1130_v12 }
 0x209   :  { %1471 = vst [vmem:[#allocation2 + $0x370] sm:$0xff] %v1343_v19 }
 0x20a   :  { %1472 = vst [vmem:[#allocation2 + $0x378] sm:$0xff] %v1344_v24  ;;  %2268 = vmatmul.msk.bf16.gmra.mxu0 %vm260_vm0, %v3698_v52  ;;  %2276 = vmatmul.msk.bf16.gmra.mxu1 %vm260_vm0, %v3698_v52 }
 0x20b   :  { %1477 = vst [vmem:[#allocation2 + $0x3a0] sm:$0xff] %v1349_v18  ;;  %2284 = vmatmul.msk.bf16.gmra.mxu2 %vm260_vm0, %v3698_v52  ;;  %2292 = vmatmul.msk.bf16.gmra.mxu3 %vm260_vm0, %v3698_v52 }
 0x20c   :  { %1478 = vst [vmem:[#allocation2 + $0x3a8] sm:$0xff] %v1350_v6 }
 0x20e   :  { %v1179_v45 = vpop.f32.mrf.mxu2  ;;  %v1228_v11 = vpop.f32.mrf.mxu3 }
 0x20f   :  { %v1351_v39 = vmul.f32 100.0, %v1179_v45  ;;  %v1352_v60 = vmul.f32 100.0, %v1228_v11  ;;  %v1083_v7 = vpop.f32.mrf.mxu0  ;;  %v1132_v50 = vpop.f32.mrf.mxu1 }
 0x210   :  { %v1357_v21 = vmul.f32 100.0, %v1083_v7  ;;  %v1358_v4 = vmul.f32 100.0, %v1132_v50 }
 0x211   :  { %1479 = vst [vmem:[#allocation2 + $0x3b0] sm:$0xff] %v1351_v39 }
 0x212   :  { %1480 = vst [vmem:[#allocation2 + $0x3b8] sm:$0xff] %v1352_v60 }
 0x213   :  { %1485 = vst [vmem:[#allocation2 + $0x3e0] sm:$0xff] %v1357_v21 }
 0x214   :  { %1486 = vst [vmem:[#allocation2 + $0x3e8] sm:$0xff] %v1358_v4 }
 0x216   :  { %v1181_v35 = vpop.f32.mrf.mxu2  ;;  %v1230_v25 = vpop.f32.mrf.mxu3 }
 0x217   :  { %v1359_v13 = vmul.f32 100.0, %v1181_v35  ;;  %v1360_v22 = vmul.f32 100.0, %v1230_v25  ;;  %v1522_v16 = vpop.f32.mrf.mxu0  ;;  %v1571_v33 = vpop.f32.mrf.mxu1 }
 0x218   :  { %v1905_v34 = vmul.f32 10.0, %v1522_v16  ;;  %v1906_v15 = vmul.f32 10.0, %v1571_v33 }
 0x219   :  { %1487 = vst [vmem:[#allocation2 + $0x3f0] sm:$0xff] %v1359_v13 }
 0x21a   :  { %1488 = vst [vmem:[#allocation2 + $0x3f8] sm:$0xff] %v1360_v22  ;;  %2293 = vmatmul.msk.bf16.vlgmr.msrb.gmra.mxu0 %vm260_vm0, %v3368_v23  ;;  %2301 = vmatmul.msk.bf16.vlgmr.msrb.gmra.mxu1 %vm260_vm0, %v3368_v23 }
 0x21b   :  { %2033 = vst [vmem:[#allocation4] sm:$0xff] %v1905_v34  ;;  %2309 = vmatmul.msk.bf16.vlgmr.msrb.gmra.mxu2 %vm260_vm0, %v3368_v23  ;;  %2317 = vmatmul.msk.bf16.vlgmr.msrb.gmra.mxu3 %vm260_vm0, %v3368_v23  ;;  %2173 = dma.vmem_to_hbm [thread:$0]  %s2166_s2, 16384, %s2168_s29, [#allocation3], %s2476_s30, %s2476_s30, %s2477_s5  }
 0x21c   :  { %2034 = vst [vmem:[#allocation4 + $0x8] sm:$0xff] %v1906_v15 }
 0x21e   :  { %v1620_v5 = vpop.f32.mrf.mxu2  ;;  %v1669_v28 = vpop.f32.mrf.mxu3 }
 0x21f   :  { %v1907_v30 = vmul.f32 10.0, %v1620_v5  ;;  %v1908_v0 = vmul.f32 10.0, %v1669_v28  ;;  %v1524_v36 = vpop.f32.mrf.mxu0  ;;  %v1573_v26 = vpop.f32.mrf.mxu1 }
 0x220   :  { %v1913_v29 = vmul.f32 10.0, %v1524_v36  ;;  %v1914_v17 = vmul.f32 10.0, %v1573_v26 }
 0x221   :  { %2035 = vst [vmem:[#allocation4 + $0x10] sm:$0xff] %v1907_v30 }
 0x222   :  { %2036 = vst [vmem:[#allocation4 + $0x18] sm:$0xff] %v1908_v0 }
 0x223   :  { %2041 = vst [vmem:[#allocation4 + $0x40] sm:$0xff] %v1913_v29 }
 0x224   :  { %2042 = vst [vmem:[#allocation4 + $0x48] sm:$0xff] %v1914_v17 }
 0x226   :  { %v1622_v40 = vpop.f32.mrf.mxu2  ;;  %v1671_v32 = vpop.f32.mrf.mxu3 }
 0x227   :  { %v1915_v42 = vmul.f32 10.0, %v1622_v40  ;;  %v1916_v8 = vmul.f32 10.0, %v1671_v32  ;;  %v1527_v20 = vpop.f32.mrf.mxu0  ;;  %v1576_v37 = vpop.f32.mrf.mxu1 }
 0x228   :  { %v1921_v23 = vmul.f32 10.0, %v1527_v20  ;;  %v1922_v47 = vmul.f32 10.0, %v1576_v37 }
 0x229   :  { %2043 = vst [vmem:[#allocation4 + $0x50] sm:$0xff] %v1915_v42 }
 0x22a   :  { %2044 = vst [vmem:[#allocation4 + $0x58] sm:$0xff] %v1916_v8  ;;  %2294 = vmatmul.msk.bf16.gmra.mxu0 %vm260_vm0, %v3416_v31  ;;  %2302 = vmatmul.msk.bf16.gmra.mxu1 %vm260_vm0, %v3416_v31 }
 0x22b   :  { %2049 = vst [vmem:[#allocation4 + $0x80] sm:$0xff] %v1921_v23  ;;  %2310 = vmatmul.msk.bf16.gmra.mxu2 %vm260_vm0, %v3416_v31  ;;  %2318 = vmatmul.msk.bf16.gmra.mxu3 %vm260_vm0, %v3416_v31 }
 0x22c   :  { %2050 = vst [vmem:[#allocation4 + $0x88] sm:$0xff] %v1922_v47 }
 0x22e   :  { %v1625_v61 = vpop.f32.mrf.mxu2  ;;  %v1674_v58 = vpop.f32.mrf.mxu3 }
 0x22f   :  { %v1923_v10 = vmul.f32 10.0, %v1625_v61  ;;  %v1924_v53 = vmul.f32 10.0, %v1674_v58  ;;  %v1529_v14 = vpop.f32.mrf.mxu0  ;;  %v1578_v43 = vpop.f32.mrf.mxu1 }
 0x230   :  { %v1929_v55 = vmul.f32 10.0, %v1529_v14  ;;  %v1930_v41 = vmul.f32 10.0, %v1578_v43 }
 0x231   :  { %2051 = vst [vmem:[#allocation4 + $0x90] sm:$0xff] %v1923_v10 }
 0x232   :  { %2052 = vst [vmem:[#allocation4 + $0x98] sm:$0xff] %v1924_v53 }
 0x233   :  { %2057 = vst [vmem:[#allocation4 + $0xc0] sm:$0xff] %v1929_v55 }
 0x234   :  { %2058 = vst [vmem:[#allocation4 + $0xc8] sm:$0xff] %v1930_v41 }
 0x236   :  { %v1627_v57 = vpop.f32.mrf.mxu2  ;;  %v1676_v44 = vpop.f32.mrf.mxu3 }
 0x237   :  { %v1931_v62 = vmul.f32 10.0, %v1627_v57  ;;  %v1932_v51 = vmul.f32 10.0, %v1676_v44  ;;  %v1532_v27 = vpop.f32.mrf.mxu0  ;;  %v1581_v54 = vpop.f32.mrf.mxu1 }
 0x238   :  { %v1937_v31 = vmul.f32 10.0, %v1532_v27  ;;  %v1938_v2 = vmul.f32 10.0, %v1581_v54 }
 0x239   :  { %2059 = vst [vmem:[#allocation4 + $0xd0] sm:$0xff] %v1931_v62 }
 0x23a   :  { %2060 = vst [vmem:[#allocation4 + $0xd8] sm:$0xff] %v1932_v51  ;;  %2295 = vmatmul.msk.bf16.gmra.mxu0 %vm260_vm0, %v3464_v46  ;;  %2303 = vmatmul.msk.bf16.gmra.mxu1 %vm260_vm0, %v3464_v46 }
 0x23b   :  { %2065 = vst [vmem:[#allocation4 + $0x100] sm:$0xff] %v1937_v31  ;;  %2311 = vmatmul.msk.bf16.gmra.mxu2 %vm260_vm0, %v3464_v46  ;;  %2319 = vmatmul.msk.bf16.gmra.mxu3 %vm260_vm0, %v3464_v46 }
 0x23c   :  { %2066 = vst [vmem:[#allocation4 + $0x108] sm:$0xff] %v1938_v2 }
 0x23e   :  { %v1630_v3 = vpop.f32.mrf.mxu2  ;;  %v1679_v48 = vpop.f32.mrf.mxu3 }
 0x23f   :  { %v1939_v38 = vmul.f32 10.0, %v1630_v3  ;;  %v1940_v1 = vmul.f32 10.0, %v1679_v48  ;;  %v1534_v19 = vpop.f32.mrf.mxu0  ;;  %v1583_v24 = vpop.f32.mrf.mxu1 }
 0x240   :  { %v1945_v56 = vmul.f32 10.0, %v1534_v19  ;;  %v1946_v12 = vmul.f32 10.0, %v1583_v24 }
 0x241   :  { %2067 = vst [vmem:[#allocation4 + $0x110] sm:$0xff] %v1939_v38 }
 0x242   :  { %2068 = vst [vmem:[#allocation4 + $0x118] sm:$0xff] %v1940_v1 }
 0x243   :  { %2073 = vst [vmem:[#allocation4 + $0x140] sm:$0xff] %v1945_v56 }
 0x244   :  { %2074 = vst [vmem:[#allocation4 + $0x148] sm:$0xff] %v1946_v12 }
 0x246   :  { %v1632_v18 = vpop.f32.mrf.mxu2  ;;  %v1681_v6 = vpop.f32.mrf.mxu3 }
 0x247   :  { %v1947_v45 = vmul.f32 10.0, %v1632_v18  ;;  %v1948_v11 = vmul.f32 10.0, %v1681_v6  ;;  %v1537_v39 = vpop.f32.mrf.mxu0  ;;  %v1586_v60 = vpop.f32.mrf.mxu1 }
 0x248   :  { %v1953_v46 = vmul.f32 10.0, %v1537_v39  ;;  %v1954_v7 = vmul.f32 10.0, %v1586_v60 }
 0x249   :  { %2075 = vst [vmem:[#allocation4 + $0x150] sm:$0xff] %v1947_v45 }
 0x24a   :  { %2076 = vst [vmem:[#allocation4 + $0x158] sm:$0xff] %v1948_v11  ;;  %2296 = vmatmul.msk.bf16.gmra.mxu0 %vm260_vm0, %v3512_v63  ;;  %2304 = vmatmul.msk.bf16.gmra.mxu1 %vm260_vm0, %v3512_v63 }
 0x24b   :  { %2081 = vst [vmem:[#allocation4 + $0x180] sm:$0xff] %v1953_v46  ;;  %2312 = vmatmul.msk.bf16.gmra.mxu2 %vm260_vm0, %v3512_v63  ;;  %2320 = vmatmul.msk.bf16.gmra.mxu3 %vm260_vm0, %v3512_v63 }
 0x24c   :  { %2082 = vst [vmem:[#allocation4 + $0x188] sm:$0xff] %v1954_v7 }
 0x24e   :  { %v1635_v50 = vpop.f32.mrf.mxu2  ;;  %v1684_v21 = vpop.f32.mrf.mxu3 }
 0x24f   :  { %v1955_v4 = vmul.f32 10.0, %v1635_v50  ;;  %v1956_v35 = vmul.f32 10.0, %v1684_v21  ;;  %v1539_v25 = vpop.f32.mrf.mxu0  ;;  %v1588_v13 = vpop.f32.mrf.mxu1 }
 0x250   :  { %v1961_v22 = vmul.f32 10.0, %v1539_v25  ;;  %v1962_v16 = vmul.f32 10.0, %v1588_v13 }
 0x251   :  { %2083 = vst [vmem:[#allocation4 + $0x190] sm:$0xff] %v1955_v4 }
 0x252   :  { %2084 = vst [vmem:[#allocation4 + $0x198] sm:$0xff] %v1956_v35 }
 0x253   :  { %2089 = vst [vmem:[#allocation4 + $0x1c0] sm:$0xff] %v1961_v22 }
 0x254   :  { %2090 = vst [vmem:[#allocation4 + $0x1c8] sm:$0xff] %v1962_v16 }
 0x256   :  { %v1637_v33 = vpop.f32.mrf.mxu2  ;;  %v1686_v34 = vpop.f32.mrf.mxu3 }
 0x257   :  { %v1963_v15 = vmul.f32 10.0, %v1637_v33  ;;  %v1964_v5 = vmul.f32 10.0, %v1686_v34  ;;  %v1542_v28 = vpop.f32.mrf.mxu0  ;;  %v1591_v30 = vpop.f32.mrf.mxu1 }
 0x258   :  { %v1969_v63 = vmul.f32 10.0, %v1542_v28  ;;  %v1970_v0 = vmul.f32 10.0, %v1591_v30 }
 0x259   :  { %2091 = vst [vmem:[#allocation4 + $0x1d0] sm:$0xff] %v1963_v15 }
 0x25a   :  { %2092 = vst [vmem:[#allocation4 + $0x1d8] sm:$0xff] %v1964_v5  ;;  %2297 = vmatmul.msk.bf16.gmra.mxu0 %vm260_vm0, %v3564_v59  ;;  %2305 = vmatmul.msk.bf16.gmra.mxu1 %vm260_vm0, %v3564_v59 }
 0x25b   :  { %2097 = vst [vmem:[#allocation4 + $0x200] sm:$0xff] %v1969_v63  ;;  %2313 = vmatmul.msk.bf16.gmra.mxu2 %vm260_vm0, %v3564_v59  ;;  %2321 = vmatmul.msk.bf16.gmra.mxu3 %vm260_vm0, %v3564_v59 }
 0x25c   :  { %2098 = vst [vmem:[#allocation4 + $0x208] sm:$0xff] %v1970_v0 }
 0x25e   :  { %v1640_v36 = vpop.f32.mrf.mxu2  ;;  %v1689_v26 = vpop.f32.mrf.mxu3 }
 0x25f   :  { %v1971_v29 = vmul.f32 10.0, %v1640_v36  ;;  %v1972_v17 = vmul.f32 10.0, %v1689_v26  ;;  %v1544_v40 = vpop.f32.mrf.mxu0  ;;  %v1593_v32 = vpop.f32.mrf.mxu1 }
 0x260   :  { %v1977_v42 = vmul.f32 10.0, %v1544_v40  ;;  %v1978_v8 = vmul.f32 10.0, %v1593_v32 }
 0x261   :  { %2099 = vst [vmem:[#allocation4 + $0x210] sm:$0xff] %v1971_v29 }
 0x262   :  { %2100 = vst [vmem:[#allocation4 + $0x218] sm:$0xff] %v1972_v17 }
 0x263   :  { %2105 = vst [vmem:[#allocation4 + $0x240] sm:$0xff] %v1977_v42 }
 0x264   :  { %2106 = vst [vmem:[#allocation4 + $0x248] sm:$0xff] %v1978_v8 }
 0x266   :  { %v1642_v20 = vpop.f32.mrf.mxu2  ;;  %v1691_v37 = vpop.f32.mrf.mxu3 }
 0x267   :  { %v1979_v23 = vmul.f32 10.0, %v1642_v20  ;;  %v1980_v47 = vmul.f32 10.0, %v1691_v37  ;;  %v1547_v61 = vpop.f32.mrf.mxu0  ;;  %v1596_v58 = vpop.f32.mrf.mxu1 }
 0x268   :  { %v1985_v59 = vmul.f32 10.0, %v1547_v61  ;;  %v1986_v10 = vmul.f32 10.0, %v1596_v58 }
 0x269   :  { %2107 = vst [vmem:[#allocation4 + $0x250] sm:$0xff] %v1979_v23 }
 0x26a   :  { %2108 = vst [vmem:[#allocation4 + $0x258] sm:$0xff] %v1980_v47  ;;  %2298 = vmatmul.msk.bf16.gmra.mxu0 %vm260_vm0, %v3616_v9  ;;  %2306 = vmatmul.msk.bf16.gmra.mxu1 %vm260_vm0, %v3616_v9 }
 0x26b   :  { %2113 = vst [vmem:[#allocation4 + $0x280] sm:$0xff] %v1985_v59  ;;  %2314 = vmatmul.msk.bf16.gmra.mxu2 %vm260_vm0, %v3616_v9  ;;  %2322 = vmatmul.msk.bf16.gmra.mxu3 %vm260_vm0, %v3616_v9 }
 0x26c   :  { %2114 = vst [vmem:[#allocation4 + $0x288] sm:$0xff] %v1986_v10 }
 0x26e   :  { %v1645_v53 = vpop.f32.mrf.mxu2  ;;  %v1694_v14 = vpop.f32.mrf.mxu3 }
 0x26f   :  { %v1987_v43 = vmul.f32 10.0, %v1645_v53  ;;  %v1988_v55 = vmul.f32 10.0, %v1694_v14  ;;  %v1549_v41 = vpop.f32.mrf.mxu0  ;;  %v1598_v57 = vpop.f32.mrf.mxu1 }
 0x270   :  { %v1993_v44 = vmul.f32 10.0, %v1549_v41  ;;  %v1994_v62 = vmul.f32 10.0, %v1598_v57 }
 0x271   :  { %2115 = vst [vmem:[#allocation4 + $0x290] sm:$0xff] %v1987_v43 }
 0x272   :  { %2116 = vst [vmem:[#allocation4 + $0x298] sm:$0xff] %v1988_v55 }
 0x273   :  { %2121 = vst [vmem:[#allocation4 + $0x2c0] sm:$0xff] %v1993_v44 }
 0x274   :  { %2122 = vst [vmem:[#allocation4 + $0x2c8] sm:$0xff] %v1994_v62 }
 0x276   :  { %v1647_v51 = vpop.f32.mrf.mxu2  ;;  %v1696_v27 = vpop.f32.mrf.mxu3 }
 0x277   :  { %v1995_v54 = vmul.f32 10.0, %v1647_v51  ;;  %v1996_v31 = vmul.f32 10.0, %v1696_v27  ;;  %v1552_v2 = vpop.f32.mrf.mxu0  ;;  %v1601_v3 = vpop.f32.mrf.mxu1 }
 0x278   :  { %v2001_v9 = vmul.f32 10.0, %v1552_v2  ;;  %v2002_v48 = vmul.f32 10.0, %v1601_v3 }
 0x279   :  { %2123 = vst [vmem:[#allocation4 + $0x2d0] sm:$0xff] %v1995_v54 }
 0x27a   :  { %2124 = vst [vmem:[#allocation4 + $0x2d8] sm:$0xff] %v1996_v31  ;;  %2299 = vmatmul.msk.bf16.gmra.mxu0 %vm260_vm0, %v3662_v49  ;;  %2307 = vmatmul.msk.bf16.gmra.mxu1 %vm260_vm0, %v3662_v49 }
 0x27b   :  { %2129 = vst [vmem:[#allocation4 + $0x300] sm:$0xff] %v2001_v9  ;;  %2315 = vmatmul.msk.bf16.gmra.mxu2 %vm260_vm0, %v3662_v49  ;;  %2323 = vmatmul.msk.bf16.gmra.mxu3 %vm260_vm0, %v3662_v49 }
 0x27c   :  { %2130 = vst [vmem:[#allocation4 + $0x308] sm:$0xff] %v2002_v48 }
 0x27e   :  { %v1650_v38 = vpop.f32.mrf.mxu2  ;;  %v1699_v1 = vpop.f32.mrf.mxu3 }
 0x27f   :  { %v2003_v19 = vmul.f32 10.0, %v1650_v38  ;;  %v2004_v24 = vmul.f32 10.0, %v1699_v1  ;;  %v1554_v56 = vpop.f32.mrf.mxu0  ;;  %v1603_v12 = vpop.f32.mrf.mxu1 }
 0x280   :  { %v2009_v18 = vmul.f32 10.0, %v1554_v56  ;;  %v2010_v6 = vmul.f32 10.0, %v1603_v12 }
 0x281   :  { %2131 = vst [vmem:[#allocation4 + $0x310] sm:$0xff] %v2003_v19 }
 0x282   :  { %2132 = vst [vmem:[#allocation4 + $0x318] sm:$0xff] %v2004_v24 }
 0x283   :  { %2137 = vst [vmem:[#allocation4 + $0x340] sm:$0xff] %v2009_v18 }
 0x284   :  { %2138 = vst [vmem:[#allocation4 + $0x348] sm:$0xff] %v2010_v6 }
 0x286   :  { %v1652_v45 = vpop.f32.mrf.mxu2  ;;  %v1701_v11 = vpop.f32.mrf.mxu3 }
 0x287   :  { %v2011_v39 = vmul.f32 10.0, %v1652_v45  ;;  %v2012_v60 = vmul.f32 10.0, %v1701_v11  ;;  %v1557_v46 = vpop.f32.mrf.mxu0  ;;  %v1606_v7 = vpop.f32.mrf.mxu1 }
 0x288   :  { %v2017_v49 = vmul.f32 10.0, %v1557_v46  ;;  %v2018_v50 = vmul.f32 10.0, %v1606_v7 }
 0x289   :  { %2139 = vst [vmem:[#allocation4 + $0x350] sm:$0xff] %v2011_v39 }
 0x28a   :  { %2140 = vst [vmem:[#allocation4 + $0x358] sm:$0xff] %v2012_v60  ;;  %2300 = vmatmul.msk.bf16.gmra.mxu0 %vm260_vm0, %v3698_v52  ;;  %2308 = vmatmul.msk.bf16.gmra.mxu1 %vm260_vm0, %v3698_v52 }
 0x28b   :  { %2145 = vst [vmem:[#allocation4 + $0x380] sm:$0xff] %v2017_v49  ;;  %2316 = vmatmul.msk.bf16.gmra.mxu2 %vm260_vm0, %v3698_v52  ;;  %2324 = vmatmul.msk.bf16.gmra.mxu3 %vm260_vm0, %v3698_v52 }
 0x28c   :  { %2146 = vst [vmem:[#allocation4 + $0x388] sm:$0xff] %v2018_v50 }
 0x28e   :  { %v1655_v21 = vpop.f32.mrf.mxu2  ;;  %v1704_v4 = vpop.f32.mrf.mxu3 }
 0x28f   :  { %v2019_v35 = vmul.f32 10.0, %v1655_v21  ;;  %v2020_v25 = vmul.f32 10.0, %v1704_v4  ;;  %v1559_v13 = vpop.f32.mrf.mxu0  ;;  %v1608_v22 = vpop.f32.mrf.mxu1 }
 0x290   :  { %v2025_v16 = vmul.f32 10.0, %v1559_v13  ;;  %v2026_v33 = vmul.f32 10.0, %v1608_v22 }
 0x291   :  { %2147 = vst [vmem:[#allocation4 + $0x390] sm:$0xff] %v2019_v35 }
 0x292   :  { %2148 = vst [vmem:[#allocation4 + $0x398] sm:$0xff] %v2020_v25 }
 0x293   :  { %2153 = vst [vmem:[#allocation4 + $0x3c0] sm:$0xff] %v2025_v16 }
 0x294   :  { %2154 = vst [vmem:[#allocation4 + $0x3c8] sm:$0xff] %v2026_v33 }
 0x296   :  { %v1657_v34 = vpop.f32.mrf.mxu2  ;;  %v1706_v15 = vpop.f32.mrf.mxu3 }
 0x297   :  { %v2027_v5 = vmul.f32 10.0, %v1657_v34  ;;  %v2028_v28 = vmul.f32 10.0, %v1706_v15  ;;  %v1718_v30 = vpop.f32.mrf.mxu0  ;;  %v1767_v63 = vpop.f32.mrf.mxu1 }
 0x298   :  { %v1909_v52 = vmul.f32 10.0, %v1718_v30  ;;  %v1910_v0 = vmul.f32 10.0, %v1767_v63 }
 0x299   :  { %2155 = vst [vmem:[#allocation4 + $0x3d0] sm:$0xff] %v2027_v5 }
 0x29a   :  { %2156 = vst [vmem:[#allocation4 + $0x3d8] sm:$0xff] %v2028_v28 }
 0x29b   :  { %2037 = vst [vmem:[#allocation4 + $0x20] sm:$0xff] %v1909_v52 }
 0x29c   :  { %2038 = vst [vmem:[#allocation4 + $0x28] sm:$0xff] %v1910_v0 }
 0x29e   :  { %v1816_v36 = vpop.f32.mrf.mxu2  ;;  %v1865_v26 = vpop.f32.mrf.mxu3 }
 0x29f   :  { %v1911_v29 = vmul.f32 10.0, %v1816_v36  ;;  %v1912_v17 = vmul.f32 10.0, %v1865_v26  ;;  %v1720_v40 = vpop.f32.mrf.mxu0  ;;  %v1769_v32 = vpop.f32.mrf.mxu1 }
 0x2a0   :  { %v1917_v42 = vmul.f32 10.0, %v1720_v40  ;;  %v1918_v8 = vmul.f32 10.0, %v1769_v32 }
 0x2a1   :  { %2039 = vst [vmem:[#allocation4 + $0x30] sm:$0xff] %v1911_v29 }
 0x2a2   :  { %2040 = vst [vmem:[#allocation4 + $0x38] sm:$0xff] %v1912_v17 }
 0x2a3   :  { %2045 = vst [vmem:[#allocation4 + $0x60] sm:$0xff] %v1917_v42 }
 0x2a4   :  { %2046 = vst [vmem:[#allocation4 + $0x68] sm:$0xff] %v1918_v8 }
 0x2a6   :  { %v1818_v20 = vpop.f32.mrf.mxu2  ;;  %v1867_v37 = vpop.f32.mrf.mxu3 }
 0x2a7   :  { %v1919_v23 = vmul.f32 10.0, %v1818_v20  ;;  %v1920_v47 = vmul.f32 10.0, %v1867_v37  ;;  %v1723_v61 = vpop.f32.mrf.mxu0  ;;  %v1772_v58 = vpop.f32.mrf.mxu1 }
 0x2a8   :  { %v1925_v59 = vmul.f32 10.0, %v1723_v61  ;;  %v1926_v10 = vmul.f32 10.0, %v1772_v58 }
 0x2a9   :  { %2047 = vst [vmem:[#allocation4 + $0x70] sm:$0xff] %v1919_v23 }
 0x2aa   :  { %2048 = vst [vmem:[#allocation4 + $0x78] sm:$0xff] %v1920_v47 }
 0x2ab   :  { %2053 = vst [vmem:[#allocation4 + $0xa0] sm:$0xff] %v1925_v59 }
 0x2ac   :  { %2054 = vst [vmem:[#allocation4 + $0xa8] sm:$0xff] %v1926_v10 }
 0x2ae   :  { %v1821_v53 = vpop.f32.mrf.mxu2  ;;  %v1870_v14 = vpop.f32.mrf.mxu3 }
 0x2af   :  { %v1927_v43 = vmul.f32 10.0, %v1821_v53  ;;  %v1928_v55 = vmul.f32 10.0, %v1870_v14  ;;  %v1725_v41 = vpop.f32.mrf.mxu0  ;;  %v1774_v57 = vpop.f32.mrf.mxu1 }
 0x2b0   :  { %v1933_v44 = vmul.f32 10.0, %v1725_v41  ;;  %v1934_v62 = vmul.f32 10.0, %v1774_v57 }
 0x2b1   :  { %2055 = vst [vmem:[#allocation4 + $0xb0] sm:$0xff] %v1927_v43 }
 0x2b2   :  { %2056 = vst [vmem:[#allocation4 + $0xb8] sm:$0xff] %v1928_v55 }
 0x2b3   :  { %2061 = vst [vmem:[#allocation4 + $0xe0] sm:$0xff] %v1933_v44 }
 0x2b4   :  { %2062 = vst [vmem:[#allocation4 + $0xe8] sm:$0xff] %v1934_v62 }
 0x2b6   :  { %v1823_v51 = vpop.f32.mrf.mxu2  ;;  %v1872_v27 = vpop.f32.mrf.mxu3 }
 0x2b7   :  { %v1935_v54 = vmul.f32 10.0, %v1823_v51  ;;  %v1936_v31 = vmul.f32 10.0, %v1872_v27  ;;  %v1728_v2 = vpop.f32.mrf.mxu0  ;;  %v1777_v3 = vpop.f32.mrf.mxu1 }
 0x2b8   :  { %v1941_v9 = vmul.f32 10.0, %v1728_v2  ;;  %v1942_v48 = vmul.f32 10.0, %v1777_v3 }
 0x2b9   :  { %2063 = vst [vmem:[#allocation4 + $0xf0] sm:$0xff] %v1935_v54 }
 0x2ba   :  { %2064 = vst [vmem:[#allocation4 + $0xf8] sm:$0xff] %v1936_v31 }
 0x2bb   :  { %2069 = vst [vmem:[#allocation4 + $0x120] sm:$0xff] %v1941_v9 }
 0x2bc   :  { %2070 = vst [vmem:[#allocation4 + $0x128] sm:$0xff] %v1942_v48 }
 0x2be   :  { %v1826_v38 = vpop.f32.mrf.mxu2  ;;  %v1875_v1 = vpop.f32.mrf.mxu3 }
 0x2bf   :  { %v1943_v19 = vmul.f32 10.0, %v1826_v38  ;;  %v1944_v24 = vmul.f32 10.0, %v1875_v1  ;;  %v1730_v56 = vpop.f32.mrf.mxu0  ;;  %v1779_v12 = vpop.f32.mrf.mxu1 }
 0x2c0   :  { %v1949_v18 = vmul.f32 10.0, %v1730_v56  ;;  %v1950_v6 = vmul.f32 10.0, %v1779_v12 }
 0x2c1   :  { %2071 = vst [vmem:[#allocation4 + $0x130] sm:$0xff] %v1943_v19 }
 0x2c2   :  { %2072 = vst [vmem:[#allocation4 + $0x138] sm:$0xff] %v1944_v24 }
 0x2c3   :  { %2077 = vst [vmem:[#allocation4 + $0x160] sm:$0xff] %v1949_v18 }
 0x2c4   :  { %2078 = vst [vmem:[#allocation4 + $0x168] sm:$0xff] %v1950_v6 }
 0x2c6   :  { %v1828_v45 = vpop.f32.mrf.mxu2  ;;  %v1877_v11 = vpop.f32.mrf.mxu3 }
 0x2c7   :  { %v1951_v39 = vmul.f32 10.0, %v1828_v45  ;;  %v1952_v60 = vmul.f32 10.0, %v1877_v11  ;;  %v1733_v46 = vpop.f32.mrf.mxu0  ;;  %v1782_v7 = vpop.f32.mrf.mxu1 }
 0x2c8   :  { %v1957_v49 = vmul.f32 10.0, %v1733_v46  ;;  %v1958_v50 = vmul.f32 10.0, %v1782_v7 }
 0x2c9   :  { %2079 = vst [vmem:[#allocation4 + $0x170] sm:$0xff] %v1951_v39 }
 0x2ca   :  { %2080 = vst [vmem:[#allocation4 + $0x178] sm:$0xff] %v1952_v60 }
 0x2cb   :  { %2085 = vst [vmem:[#allocation4 + $0x1a0] sm:$0xff] %v1957_v49 }
 0x2cc   :  { %2086 = vst [vmem:[#allocation4 + $0x1a8] sm:$0xff] %v1958_v50 }
 0x2ce   :  { %v1831_v21 = vpop.f32.mrf.mxu2  ;;  %v1880_v4 = vpop.f32.mrf.mxu3 }
 0x2cf   :  { %v1959_v35 = vmul.f32 10.0, %v1831_v21  ;;  %v1960_v25 = vmul.f32 10.0, %v1880_v4  ;;  %v1735_v13 = vpop.f32.mrf.mxu0  ;;  %v1784_v22 = vpop.f32.mrf.mxu1 }
 0x2d0   :  { %v1965_v16 = vmul.f32 10.0, %v1735_v13  ;;  %v1966_v33 = vmul.f32 10.0, %v1784_v22 }
 0x2d1   :  { %2087 = vst [vmem:[#allocation4 + $0x1b0] sm:$0xff] %v1959_v35 }
 0x2d2   :  { %2088 = vst [vmem:[#allocation4 + $0x1b8] sm:$0xff] %v1960_v25 }
 0x2d3   :  { %2093 = vst [vmem:[#allocation4 + $0x1e0] sm:$0xff] %v1965_v16 }
 0x2d4   :  { %2094 = vst [vmem:[#allocation4 + $0x1e8] sm:$0xff] %v1966_v33 }
 0x2d6   :  { %v1833_v34 = vpop.f32.mrf.mxu2  ;;  %v1882_v15 = vpop.f32.mrf.mxu3 }
 0x2d7   :  { %v1967_v5 = vmul.f32 10.0, %v1833_v34  ;;  %v1968_v28 = vmul.f32 10.0, %v1882_v15  ;;  %v1738_v30 = vpop.f32.mrf.mxu0  ;;  %v1787_v63 = vpop.f32.mrf.mxu1 }
 0x2d8   :  { %v1973_v52 = vmul.f32 10.0, %v1738_v30  ;;  %v1974_v0 = vmul.f32 10.0, %v1787_v63 }
 0x2d9   :  { %2095 = vst [vmem:[#allocation4 + $0x1f0] sm:$0xff] %v1967_v5 }
 0x2da   :  { %2096 = vst [vmem:[#allocation4 + $0x1f8] sm:$0xff] %v1968_v28 }
 0x2db   :  { %2101 = vst [vmem:[#allocation4 + $0x220] sm:$0xff] %v1973_v52 }
 0x2dc   :  { %2102 = vst [vmem:[#allocation4 + $0x228] sm:$0xff] %v1974_v0 }
 0x2de   :  { %v1836_v36 = vpop.f32.mrf.mxu2  ;;  %v1885_v26 = vpop.f32.mrf.mxu3 }
 0x2df   :  { %v1975_v29 = vmul.f32 10.0, %v1836_v36  ;;  %v1976_v17 = vmul.f32 10.0, %v1885_v26  ;;  %v1740_v40 = vpop.f32.mrf.mxu0  ;;  %v1789_v32 = vpop.f32.mrf.mxu1 }
 0x2e0   :  { %v1981_v42 = vmul.f32 10.0, %v1740_v40  ;;  %v1982_v8 = vmul.f32 10.0, %v1789_v32 }
 0x2e1   :  { %2103 = vst [vmem:[#allocation4 + $0x230] sm:$0xff] %v1975_v29 }
 0x2e2   :  { %2104 = vst [vmem:[#allocation4 + $0x238] sm:$0xff] %v1976_v17 }
 0x2e3   :  { %2109 = vst [vmem:[#allocation4 + $0x260] sm:$0xff] %v1981_v42 }
 0x2e4   :  { %2110 = vst [vmem:[#allocation4 + $0x268] sm:$0xff] %v1982_v8 }
 0x2e6   :  { %v1838_v20 = vpop.f32.mrf.mxu2  ;;  %v1887_v37 = vpop.f32.mrf.mxu3 }
 0x2e7   :  { %v1983_v23 = vmul.f32 10.0, %v1838_v20  ;;  %v1984_v47 = vmul.f32 10.0, %v1887_v37  ;;  %v1743_v61 = vpop.f32.mrf.mxu0  ;;  %v1792_v58 = vpop.f32.mrf.mxu1 }
 0x2e8   :  { %v1989_v59 = vmul.f32 10.0, %v1743_v61  ;;  %v1990_v10 = vmul.f32 10.0, %v1792_v58 }
 0x2e9   :  { %2111 = vst [vmem:[#allocation4 + $0x270] sm:$0xff] %v1983_v23 }
 0x2ea   :  { %2112 = vst [vmem:[#allocation4 + $0x278] sm:$0xff] %v1984_v47 }
 0x2eb   :  { %2117 = vst [vmem:[#allocation4 + $0x2a0] sm:$0xff] %v1989_v59 }
 0x2ec   :  { %2118 = vst [vmem:[#allocation4 + $0x2a8] sm:$0xff] %v1990_v10 }
 0x2ee   :  { %v1841_v53 = vpop.f32.mrf.mxu2  ;;  %v1890_v14 = vpop.f32.mrf.mxu3 }
 0x2ef   :  { %v1991_v43 = vmul.f32 10.0, %v1841_v53  ;;  %v1992_v55 = vmul.f32 10.0, %v1890_v14  ;;  %v1745_v41 = vpop.f32.mrf.mxu0  ;;  %v1794_v57 = vpop.f32.mrf.mxu1 }
 0x2f0   :  { %v1997_v44 = vmul.f32 10.0, %v1745_v41  ;;  %v1998_v62 = vmul.f32 10.0, %v1794_v57 }
 0x2f1   :  { %2119 = vst [vmem:[#allocation4 + $0x2b0] sm:$0xff] %v1991_v43 }
 0x2f2   :  { %2120 = vst [vmem:[#allocation4 + $0x2b8] sm:$0xff] %v1992_v55 }
 0x2f3   :  { %2125 = vst [vmem:[#allocation4 + $0x2e0] sm:$0xff] %v1997_v44 }
 0x2f4   :  { %2126 = vst [vmem:[#allocation4 + $0x2e8] sm:$0xff] %v1998_v62 }
 0x2f6   :  { %v1843_v51 = vpop.f32.mrf.mxu2  ;;  %v1892_v27 = vpop.f32.mrf.mxu3 }
 0x2f7   :  { %v1999_v54 = vmul.f32 10.0, %v1843_v51  ;;  %v2000_v31 = vmul.f32 10.0, %v1892_v27  ;;  %v1748_v2 = vpop.f32.mrf.mxu0  ;;  %v1797_v3 = vpop.f32.mrf.mxu1 }
 0x2f8   :  { %v2005_v9 = vmul.f32 10.0, %v1748_v2  ;;  %v2006_v48 = vmul.f32 10.0, %v1797_v3 }
 0x2f9   :  { %2127 = vst [vmem:[#allocation4 + $0x2f0] sm:$0xff] %v1999_v54 }
 0x2fa   :  { %2128 = vst [vmem:[#allocation4 + $0x2f8] sm:$0xff] %v2000_v31 }
 0x2fb   :  { %2133 = vst [vmem:[#allocation4 + $0x320] sm:$0xff] %v2005_v9 }
 0x2fc   :  { %2134 = vst [vmem:[#allocation4 + $0x328] sm:$0xff] %v2006_v48 }
 0x2fe   :  { %v1846_v38 = vpop.f32.mrf.mxu2  ;;  %v1895_v1 = vpop.f32.mrf.mxu3 }
 0x2ff   :  { %v2007_v19 = vmul.f32 10.0, %v1846_v38  ;;  %v2008_v24 = vmul.f32 10.0, %v1895_v1  ;;  %v1750_v56 = vpop.f32.mrf.mxu0  ;;  %v1799_v12 = vpop.f32.mrf.mxu1 }
 0x300   :  { %v2013_v18 = vmul.f32 10.0, %v1750_v56  ;;  %v2014_v6 = vmul.f32 10.0, %v1799_v12 }
 0x301   :  { %2135 = vst [vmem:[#allocation4 + $0x330] sm:$0xff] %v2007_v19 }
 0x302   :  { %2136 = vst [vmem:[#allocation4 + $0x338] sm:$0xff] %v2008_v24 }
 0x303   :  { %2141 = vst [vmem:[#allocation4 + $0x360] sm:$0xff] %v2013_v18 }
 0x304   :  { %2142 = vst [vmem:[#allocation4 + $0x368] sm:$0xff] %v2014_v6 }
 0x306   :  { %v1848_v45 = vpop.f32.mrf.mxu2  ;;  %v1897_v11 = vpop.f32.mrf.mxu3 }
 0x307   :  { %v2015_v39 = vmul.f32 10.0, %v1848_v45  ;;  %v2016_v60 = vmul.f32 10.0, %v1897_v11  ;;  %v1753_v46 = vpop.f32.mrf.mxu0  ;;  %v1802_v7 = vpop.f32.mrf.mxu1 }
 0x308   :  { %v2021_v49 = vmul.f32 10.0, %v1753_v46  ;;  %v2022_v50 = vmul.f32 10.0, %v1802_v7 }
 0x309   :  { %2143 = vst [vmem:[#allocation4 + $0x370] sm:$0xff] %v2015_v39 }
 0x30a   :  { %2144 = vst [vmem:[#allocation4 + $0x378] sm:$0xff] %v2016_v60 }
 0x30b   :  { %2149 = vst [vmem:[#allocation4 + $0x3a0] sm:$0xff] %v2021_v49 }
 0x30c   :  { %2150 = vst [vmem:[#allocation4 + $0x3a8] sm:$0xff] %v2022_v50 }
 0x30e   :  { %v1851_v21 = vpop.f32.mrf.mxu2  ;;  %v1900_v4 = vpop.f32.mrf.mxu3 }
 0x30f   :  { %v2023_v35 = vmul.f32 10.0, %v1851_v21  ;;  %v2024_v25 = vmul.f32 10.0, %v1900_v4  ;;  %v1755_v13 = vpop.f32.mrf.mxu0  ;;  %v1804_v22 = vpop.f32.mrf.mxu1 }
 0x310   :  { %v2029_v16 = vmul.f32 10.0, %v1755_v13  ;;  %v2030_v33 = vmul.f32 10.0, %v1804_v22 }
 0x311   :  { %2151 = vst [vmem:[#allocation4 + $0x3b0] sm:$0xff] %v2023_v35 }
 0x312   :  { %2152 = vst [vmem:[#allocation4 + $0x3b8] sm:$0xff] %v2024_v25 }
 0x313   :  { %2157 = vst [vmem:[#allocation4 + $0x3e0] sm:$0xff] %v2029_v16 }
 0x314   :  { %2158 = vst [vmem:[#allocation4 + $0x3e8] sm:$0xff] %v2030_v33 }
 0x316   :  { %v1853_v34 = vpop.f32.mrf.mxu2  ;;  %v1902_v15 = vpop.f32.mrf.mxu3 }
 0x317   :  { %v2031_v5 = vmul.f32 10.0, %v1853_v34  ;;  %v2032_v28 = vmul.f32 10.0, %v1902_v15 }
 0x319   :  { %2159 = vst [vmem:[#allocation4 + $0x3f0] sm:$0xff] %v2031_v5 }
 0x31a   :  { %2160 = vst [vmem:[#allocation4 + $0x3f8] sm:$0xff] %v2032_v28 }
 0x31b   :  { %2186 = dma.vmem_to_hbm [thread:$0]  %s2179_s6, 16384, %s2181_s9, [#allocation5], %s2476_s30, %s2476_s30, %s2477_s5  }
 0x31c   :  { %2470 = dma.done.wait [#allocation3], 16384  }
 0x31d   :  { %2471 = vsyncadd [#allocation3], 4294950912 }
 0x31e   :  { %2472 = dma.done.wait [#allocation5], 16384  }
 0x31f   :  { %2473 = vsyncadd [#allocation5], 4294950912 }
 0x320   :  { %2195 = vsyncpa [#allocation3], 1 }
 0x321   :  { %2196 = vsyncpa [#allocation5], 1 }

</bundles_post_ra>
